<compile_context>
chip_gen: v6e
topology: v6e:2x2x1
jax: 0.10.0
libtpu: 0.0.40
codegen_flags: <defaults>
</compile_context>

<pallas_src>
import jax
import jax.numpy as jnp
from jax.experimental import pallas as pl
from jax.experimental.pallas import tpu as pltpu


def _round_up(x, m):
    return (x + m - 1) // m * m


# ----------------------------------------------------------------------------
# Pallas kernels
# ----------------------------------------------------------------------------
def _conv_relu_pool_kernel(p_ref, w_ref, b_ref, o_ref):
    """Fused im2col-matmul + bias + ReLU + 2x2 max-pool.

    p_ref: (4, TM, Kp)  -- 4 = pool-window corners, rows = pooled positions
    w_ref: (Kp, Cop)    b_ref: (1, Cop)    o_ref: (TM, Cop)
    """
    w = w_ref[...]
    acc = jnp.dot(p_ref[0], w, preferred_element_type=jnp.float32)
    for c in range(1, 4):
        acc = jnp.maximum(
            acc, jnp.dot(p_ref[c], w, preferred_element_type=jnp.float32))
    # max_c(relu(z_c + b)) == relu(max_c(z_c) + b): bias is per-channel const.
    o_ref[...] = jnp.maximum(acc + b_ref[...], 0.0)


def _fc_tail_kernel(a_ref, w1_ref, b1_ref, w2_ref, b2_ref, w3_ref, b3_ref,
                    o_ref):
    """fc1+ReLU -> fc2+ReLU -> fc3; all intermediates stay in VMEM/vregs."""
    h = jnp.dot(a_ref[...], w1_ref[...], preferred_element_type=jnp.float32)
    h = jnp.maximum(h + b1_ref[...], 0.0)
    h = jnp.dot(h, w2_ref[...], preferred_element_type=jnp.float32)
    h = jnp.maximum(h + b2_ref[...], 0.0)
    o_ref[...] = (jnp.dot(h, w3_ref[...], preferred_element_type=jnp.float32)
                  + b3_ref[...])


# ----------------------------------------------------------------------------
# Pallas wrappers (M-tiled grids, lane-dense padded operands)
# ----------------------------------------------------------------------------
def _conv_relu_pool(patches, w, b, *, tm_max=512):
    """patches: (4, M, K) f32, w: (Kp, Cop), b: (1, Cop) -> (M, Cop)."""
    _, m, k = patches.shape
    kp, cop = w.shape
    if kp != k:
        patches = jnp.pad(patches, ((0, 0), (0, 0), (0, kp - k)))
    m_al = _round_up(m, 8)
    tm = min(tm_max, m_al)
    m_pad = _round_up(m_al, tm)
    if m_pad != m:
        patches = jnp.pad(patches, ((0, 0), (0, m_pad - m), (0, 0)))
    out = pl.pallas_call(
        _conv_relu_pool_kernel,
        out_shape=jax.ShapeDtypeStruct((m_pad, cop), jnp.float32),
        grid=(m_pad // tm,),
        in_specs=[pl.BlockSpec((4, tm, kp), lambda i: (0, i, 0)),
                  pl.BlockSpec((kp, cop), lambda i: (0, 0)),
                  pl.BlockSpec((1, cop), lambda i: (0, 0))],
        out_specs=pl.BlockSpec((tm, cop), lambda i: (i, 0)),
        compiler_params=pltpu.CompilerParams(
            dimension_semantics=("parallel",)),
    )(patches, w, b)
    return out[:m]


def _fc_tail(feat, w1, b1, w2, b2, w3, b3, *, tm_max=512):
    """feat: (N, K1p) -> (N, Cop) with the whole FC stack fused."""
    n, k1 = feat.shape
    cop = w3.shape[1]
    n_al = _round_up(n, 8)
    tm = min(tm_max, n_al)
    n_pad = _round_up(n_al, tm)
    if n_pad != n:
        feat = jnp.pad(feat, ((0, n_pad - n), (0, 0)))
    out = pl.pallas_call(
        _fc_tail_kernel,
        out_shape=jax.ShapeDtypeStruct((n_pad, cop), jnp.float32),
        grid=(n_pad // tm,),
        in_specs=[pl.BlockSpec((tm, k1), lambda i: (i, 0)),
                  pl.BlockSpec(w1.shape, lambda i: (0, 0)),
                  pl.BlockSpec(b1.shape, lambda i: (0, 0)),
                  pl.BlockSpec(w2.shape, lambda i: (0, 0)),
                  pl.BlockSpec(b2.shape, lambda i: (0, 0)),
                  pl.BlockSpec(w3.shape, lambda i: (0, 0)),
                  pl.BlockSpec(b3.shape, lambda i: (0, 0))],
        out_specs=pl.BlockSpec((tm, cop), lambda i: (i, 0)),
        compiler_params=pltpu.CompilerParams(
            dimension_semantics=("parallel",)),
    )(feat, w1, b1, w2, b2, w3, b3)
    return out[:n]


# ----------------------------------------------------------------------------
# Patch construction (XLA-side gather, consumed by the fused conv kernel)
# ----------------------------------------------------------------------------
def _pool_patches(x, k):
    """x: (N, H, W, C) NHWC -> (4, N*PH*PW, k*k*C) im2col patches grouped by
    2x2 pool-window corner, plus (N, PH, PW).

    K ordering is (kh, kw, c); row ordering is (n, ph, pw); corner index is
    di*2 + dj for conv-output offset (2*ph + di, 2*pw + dj).
    """
    # TODO(synk): move this gather inside the Pallas kernel (shifted VMEM
    # reads / BlockSpec index_map) to avoid materializing patches in HBM.
    n, h, w, c = x.shape
    ho, wo = h - k + 1, w - k + 1
    ph, pw = ho // 2, wo // 2
    cols = [x[:, kh:kh + ho, kw:kw + wo, :]
            for kh in range(k) for kw in range(k)]
    pat = jnp.stack(cols, axis=3)                    # (N, Ho, Wo, k*k, C)
    pat = pat[:, :2 * ph, :2 * pw]                   # crop odd edge (no-op here)
    pat = pat.reshape(n, ph, 2, pw, 2, k * k, c)
    pat = pat.transpose(2, 4, 0, 1, 3, 5, 6)         # (di, dj, N, PH, PW, kk, C)
    return pat.reshape(4, n * ph * pw, k * k * c), (n, ph, pw)


# ----------------------------------------------------------------------------
# Parameter init (PyTorch-like uniform) and one-time prep (pad / transpose)
# ----------------------------------------------------------------------------
def _uniform(key, shape, fan_in):
    bound = 1.0 / jnp.sqrt(jnp.float32(fan_in))
    return jax.random.uniform(key, shape, jnp.float32, -bound, bound)


def init_cnn_params(key):
    keys = jax.random.split(key, 10)
    return {
        "conv1_w": _uniform(keys[0], (6, 3, 5, 5), 3 * 5 * 5),
        "conv1_b": _uniform(keys[1], (6,), 3 * 5 * 5),
        "conv2_w": _uniform(keys[2], (16, 6, 5, 5), 6 * 5 * 5),
        "conv2_b": _uniform(keys[3], (16,), 6 * 5 * 5),
        "fc1_w": _uniform(keys[4], (120, 400), 400),
        "fc1_b": _uniform(keys[5], (120,), 400),
        "fc2_w": _uniform(keys[6], (84, 120), 120),
        "fc2_b": _uniform(keys[7], (84,), 120),
        "fc3_w": _uniform(keys[8], (10, 84), 84),
        "fc3_b": _uniform(keys[9], (10,), 84),
    }


def prepare_params(params):
    """One-time padding/transposition into lane-dense, (8,128)-aligned
    Pallas operands (no per-forward reshape/.T of weights)."""
    def pad2(a, rows, cols):
        return jnp.pad(a, ((0, rows - a.shape[0]), (0, cols - a.shape[1])))

    def prep_conv(w, b):
        co, ci, kh, kw = w.shape
        k = kh * kw * ci
        w2 = w.transpose(2, 3, 1, 0).reshape(k, co)          # (kh,kw,ci) x co
        return (pad2(w2, _round_up(k, 128), _round_up(co, 128)),
                pad2(b.reshape(1, co), 1, _round_up(co, 128)))

    def prep_fc(w, b, k_pad):
        o = w.shape[0]
        return (pad2(w.T, k_pad, _round_up(o, 128)),
                pad2(b.reshape(1, o), 1, _round_up(o, 128)))

    c1w, c1b = prep_conv(params["conv1_w"], params["conv1_b"])
    c2w, c2b = prep_conv(params["conv2_w"], params["conv2_b"])
    # fc1 consumes our (h, w, c) flatten; reorder its PyTorch (c, h, w) columns.
    fc1_w = (params["fc1_w"].reshape(120, 16, 5, 5)
             .transpose(0, 2, 3, 1).reshape(120, 400))
    f1w, f1b = prep_fc(fc1_w, params["fc1_b"], _round_up(400, 128))
    f2w, f2b = prep_fc(params["fc2_w"], params["fc2_b"], 128)
    f3w, f3b = prep_fc(params["fc3_w"], params["fc3_b"], 128)
    return {"c1w": c1w, "c1b": c1b, "c2w": c2w, "c2b": c2b,
            "f1w": f1w, "f1b": f1b, "f2w": f2w, "f2b": f2b,
            "f3w": f3w, "f3b": f3b}


# ----------------------------------------------------------------------------
# Forward pass (LeNet-style CNN, identical semantics to the PyTorch module)
# ----------------------------------------------------------------------------
@jax.jit
def cnn_forward(prep, x):
    # x: (N, 3, 32, 32) NCHW float32 -> logits (N, 10)
    n = x.shape[0]
    x = x.transpose(0, 2, 3, 1)                                    # NHWC
    p1, (_, ph1, pw1) = _pool_patches(x, 5)                        # (4, N*14*14, 75)
    y1 = _conv_relu_pool(p1, prep["c1w"], prep["c1b"])             # (N*14*14, 128)
    x2 = y1.reshape(n, ph1, pw1, -1)[..., :6]                      # (N, 14, 14, 6)
    p2, (_, ph2, pw2) = _pool_patches(x2, 5)                       # (4, N*5*5, 150)
    y2 = _conv_relu_pool(p2, prep["c2w"], prep["c2b"])             # (N*5*5, 128)
    feat = y2.reshape(n, ph2, pw2, -1)[..., :16].reshape(n, 400)   # (h,w,c) flatten
    feat = jnp.pad(feat, ((0, 0), (0, prep["f1w"].shape[0] - feat.shape[1])))
    logits = _fc_tail(feat, prep["f1w"], prep["f1b"], prep["f2w"],
                      prep["f2b"], prep["f3w"], prep["f3b"])       # (N, 128)
    return logits[:, :10]


# ----------------------------------------------------------------------------
# Pure-JAX reference (PyTorch semantics) for self-check
# ----------------------------------------------------------------------------
@jax.jit
def _reference_forward(params, x):
    hi = jax.lax.Precision.HIGHEST

    def conv(x, w, b):
        y = jax.lax.conv_general_dilated(
            x, w, window_strides=(1, 1), padding="VALID",
            dimension_numbers=("NCHW", "OIHW", "NCHW"), precision=hi)
        return y + b.reshape(1, -1, 1, 1)

    def pool(x):
        n, c, h, w = x.shape
        return x.reshape(n, c, h // 2, 2, w // 2, 2).max(axis=(3, 5))

    x = pool(jax.nn.relu(conv(x, params["conv1_w"], params["conv1_b"])))
    x = pool(jax.nn.relu(conv(x, params["conv2_w"], params["conv2_b"])))
    x = x.reshape(x.shape[0], -1)
    x = jax.nn.relu(jnp.dot(x, params["fc1_w"].T, precision=hi) + params["fc1_b"])
    x = jax.nn.relu(jnp.dot(x, params["fc2_w"].T, precision=hi) + params["fc2_b"])
    return jnp.dot(x, params["fc3_w"].T, precision=hi) + params["fc3_b"]


if __name__ == "__main__":
    key = jax.random.PRNGKey(0)
    pkey, xkey = jax.random.split(key)
    params = init_cnn_params(pkey)
    prep = prepare_params(params)
    # 32x32 spatial is required by the module (16*5*5 flatten); small batch=2.
    x = jax.random.normal(xkey, (2, 3, 32, 32), dtype=jnp.float32)

    out = cnn_forward(prep, x)
    jax.block_until_ready(out)
    assert out.shape == (2, 10) and out.dtype == jnp.float32

    ref = _reference_forward(params, x)
    err = float(jnp.max(jnp.abs(out - ref)))
    assert err < 5e-3, f"mismatch vs reference: {err}"
    print("KERNEL_OK")
</pallas_src>

<mosaic_0001>
module attributes {stable_mosaic.version = 11 : i64} {
  func.func @_conv_relu_pool_kernel(%arg0: i32, %arg1: memref<4x392x128xf32, #tpu.memory_space<vmem>>, %arg2: memref<128x128xf32, #tpu.memory_space<vmem>>, %arg3: memref<1x128xf32, #tpu.memory_space<vmem>>, %arg4: memref<392x128xf32, #tpu.memory_space<vmem>>) attributes {dimension_semantics = [#tpu.dimension_semantics<parallel>], iteration_bounds = array<i64: 1>, scalar_prefetch = 0 : i64, scratch_operands = 0 : i64, tpu.core_type = #tpu.core_type<tc>, window_params = [{transform_indices = @transform_0, window_bounds = array<i64: 4, 392, 128>}, {pipeline_mode = #tpu.pipeline_mode<synchronous>, transform_indices = @transform_1, window_bounds = array<i64: 128, 128>}, {pipeline_mode = #tpu.pipeline_mode<synchronous>, transform_indices = @transform_2, window_bounds = array<i64: 1, 128>}, {transform_indices = @transform_3, window_bounds = array<i64: 392, 128>}]} {
    %c0 = arith.constant 0 : index
    %c0_0 = arith.constant 0 : index
    %0 = vector.load %arg2[%c0, %c0_0] : memref<128x128xf32, #tpu.memory_space<vmem>>, vector<128x128xf32>
    %c0_1 = arith.constant 0 : index
    %c0_2 = arith.constant 0 : index
    %c0_3 = arith.constant 0 : index
    %1 = vector.load %arg1[%c0_1, %c0_2, %c0_3] : memref<4x392x128xf32, #tpu.memory_space<vmem>>, vector<1x392x128xf32>
    %2 = vector.shape_cast %1 : vector<1x392x128xf32> to vector<392x128xf32>
    %cst = arith.constant dense<0.000000e+00> : vector<392x128xf32>
    %3 = tpu.matmul %2, %0, %cst {dimension_numbers = #tpu.dot_dimension_numbers<[1], [0], [0], [1], [0, 0, 1, 1], [], []>} : vector<392x128xf32>, vector<128x128xf32>, vector<392x128xf32> -> vector<392x128xf32>
    %c1 = arith.constant 1 : index
    %c0_4 = arith.constant 0 : index
    %c0_5 = arith.constant 0 : index
    %4 = vector.load %arg1[%c1, %c0_4, %c0_5] : memref<4x392x128xf32, #tpu.memory_space<vmem>>, vector<1x392x128xf32>
    %5 = vector.shape_cast %4 : vector<1x392x128xf32> to vector<392x128xf32>
    %cst_6 = arith.constant dense<0.000000e+00> : vector<392x128xf32>
    %6 = tpu.matmul %5, %0, %cst_6 {dimension_numbers = #tpu.dot_dimension_numbers<[1], [0], [0], [1], [0, 0, 1, 1], [], []>} : vector<392x128xf32>, vector<128x128xf32>, vector<392x128xf32> -> vector<392x128xf32>
    %7 = arith.maximumf %3, %6 : vector<392x128xf32>
    %c2 = arith.constant 2 : index
    %c0_7 = arith.constant 0 : index
    %c0_8 = arith.constant 0 : index
    %8 = vector.load %arg1[%c2, %c0_7, %c0_8] : memref<4x392x128xf32, #tpu.memory_space<vmem>>, vector<1x392x128xf32>
    %9 = vector.shape_cast %8 : vector<1x392x128xf32> to vector<392x128xf32>
    %cst_9 = arith.constant dense<0.000000e+00> : vector<392x128xf32>
    %10 = tpu.matmul %9, %0, %cst_9 {dimension_numbers = #tpu.dot_dimension_numbers<[1], [0], [0], [1], [0, 0, 1, 1], [], []>} : vector<392x128xf32>, vector<128x128xf32>, vector<392x128xf32> -> vector<392x128xf32>
    %11 = arith.maximumf %7, %10 : vector<392x128xf32>
    %c3 = arith.constant 3 : index
    %c0_10 = arith.constant 0 : index
    %c0_11 = arith.constant 0 : index
    %12 = vector.load %arg1[%c3, %c0_10, %c0_11] : memref<4x392x128xf32, #tpu.memory_space<vmem>>, vector<1x392x128xf32>
    %13 = vector.shape_cast %12 : vector<1x392x128xf32> to vector<392x128xf32>
    %cst_12 = arith.constant dense<0.000000e+00> : vector<392x128xf32>
    %14 = tpu.matmul %13, %0, %cst_12 {dimension_numbers = #tpu.dot_dimension_numbers<[1], [0], [0], [1], [0, 0, 1, 1], [], []>} : vector<392x128xf32>, vector<128x128xf32>, vector<392x128xf32> -> vector<392x128xf32>
    %15 = arith.maximumf %11, %14 : vector<392x128xf32>
    %c0_13 = arith.constant 0 : index
    %c0_14 = arith.constant 0 : index
    %16 = vector.load %arg3[%c0_13, %c0_14] : memref<1x128xf32, #tpu.memory_space<vmem>>, vector<1x128xf32>
    %17 = vector.broadcast %16 : vector<1x128xf32> to vector<392x128xf32>
    %18 = arith.addf %15, %17 : vector<392x128xf32>
    %cst_15 = arith.constant 0.000000e+00 : f32
    %19 = vector.broadcast %cst_15 : f32 to vector<392x128xf32>
    %20 = arith.maximumf %18, %19 : vector<392x128xf32>
    %c0_16 = arith.constant 0 : index
    %c0_17 = arith.constant 0 : index
    %21 = vector.load %arg4[%c0_16, %c0_17] : memref<392x128xf32, #tpu.memory_space<vmem>>, vector<392x128xf32>
    tpu.vector_store %arg4[%c0_16, %c0_17], %20 {strides = array<i32>} : memref<392x128xf32, #tpu.memory_space<vmem>>, vector<392x128xf32>,
    return
  }
  func.func @transform_0(%arg0: i32) -> (i32, i32, i32) {
    %c0_i32 = arith.constant 0 : i32
    %c0_i32_0 = arith.constant 0 : i32
    %c0_i32_1 = arith.constant 0 : i32
    return %c0_i32, %arg0, %c0_i32_0 : i32, i32, i32
  }
  func.func @transform_1(%arg0: i32) -> (i32, i32) {
    %c0_i32 = arith.constant 0 : i32
    %c0_i32_0 = arith.constant 0 : i32
    %c0_i32_1 = arith.constant 0 : i32
    return %c0_i32, %c0_i32_0 : i32, i32
  }
  func.func @transform_2(%arg0: i32) -> (i32, i32) {
    %c0_i32 = arith.constant 0 : i32
    %c0_i32_0 = arith.constant 0 : i32
    %c0_i32_1 = arith.constant 0 : i32
    return %c0_i32, %c0_i32_0 : i32, i32
  }
  func.func @transform_3(%arg0: i32) -> (i32, i32) {
    %c0_i32 = arith.constant 0 : i32
    %c0_i32_0 = arith.constant 0 : i32
    return %arg0, %c0_i32 : i32, i32
  }
}

module attributes {stable_mosaic.version = 11 : i64} {
  func.func @_conv_relu_pool_kernel(%arg0: i32, %arg1: memref<4x56x256xf32, #tpu.memory_space<vmem>>, %arg2: memref<256x128xf32, #tpu.memory_space<vmem>>, %arg3: memref<1x128xf32, #tpu.memory_space<vmem>>, %arg4: memref<56x128xf32, #tpu.memory_space<vmem>>) attributes {dimension_semantics = [#tpu.dimension_semantics<parallel>], iteration_bounds = array<i64: 1>, scalar_prefetch = 0 : i64, scratch_operands = 0 : i64, tpu.core_type = #tpu.core_type<tc>, window_params = [{transform_indices = @transform_0, window_bounds = array<i64: 4, 56, 256>}, {pipeline_mode = #tpu.pipeline_mode<synchronous>, transform_indices = @transform_1, window_bounds = array<i64: 256, 128>}, {pipeline_mode = #tpu.pipeline_mode<synchronous>, transform_indices = @transform_2, window_bounds = array<i64: 1, 128>}, {transform_indices = @transform_3, window_bounds = array<i64: 56, 128>}]} {
    %c0 = arith.constant 0 : index
    %c0_0 = arith.constant 0 : index
    %0 = vector.load %arg2[%c0, %c0_0] : memref<256x128xf32, #tpu.memory_space<vmem>>, vector<256x128xf32>
    %c0_1 = arith.constant 0 : index
    %c0_2 = arith.constant 0 : index
    %c0_3 = arith.constant 0 : index
    %1 = vector.load %arg1[%c0_1, %c0_2, %c0_3] : memref<4x56x256xf32, #tpu.memory_space<vmem>>, vector<1x56x256xf32>
    %2 = vector.shape_cast %1 : vector<1x56x256xf32> to vector<56x256xf32>
    %cst = arith.constant dense<0.000000e+00> : vector<56x128xf32>
    %3 = tpu.matmul %2, %0, %cst {dimension_numbers = #tpu.dot_dimension_numbers<[1], [0], [0], [1], [0, 0, 1, 1], [], []>} : vector<56x256xf32>, vector<256x128xf32>, vector<56x128xf32> -> vector<56x128xf32>
    %c1 = arith.constant 1 : index
    %c0_4 = arith.constant 0 : index
    %c0_5 = arith.constant 0 : index
    %4 = vector.load %arg1[%c1, %c0_4, %c0_5] : memref<4x56x256xf32, #tpu.memory_space<vmem>>, vector<1x56x256xf32>
    %5 = vector.shape_cast %4 : vector<1x56x256xf32> to vector<56x256xf32>
    %cst_6 = arith.constant dense<0.000000e+00> : vector<56x128xf32>
    %6 = tpu.matmul %5, %0, %cst_6 {dimension_numbers = #tpu.dot_dimension_numbers<[1], [0], [0], [1], [0, 0, 1, 1], [], []>} : vector<56x256xf32>, vector<256x128xf32>, vector<56x128xf32> -> vector<56x128xf32>
    %7 = arith.maximumf %3, %6 : vector<56x128xf32>
    %c2 = arith.constant 2 : index
    %c0_7 = arith.constant 0 : index
    %c0_8 = arith.constant 0 : index
    %8 = vector.load %arg1[%c2, %c0_7, %c0_8] : memref<4x56x256xf32, #tpu.memory_space<vmem>>, vector<1x56x256xf32>
    %9 = vector.shape_cast %8 : vector<1x56x256xf32> to vector<56x256xf32>
    %cst_9 = arith.constant dense<0.000000e+00> : vector<56x128xf32>
    %10 = tpu.matmul %9, %0, %cst_9 {dimension_numbers = #tpu.dot_dimension_numbers<[1], [0], [0], [1], [0, 0, 1, 1], [], []>} : vector<56x256xf32>, vector<256x128xf32>, vector<56x128xf32> -> vector<56x128xf32>
    %11 = arith.maximumf %7, %10 : vector<56x128xf32>
    %c3 = arith.constant 3 : index
    %c0_10 = arith.constant 0 : index
    %c0_11 = arith.constant 0 : index
    %12 = vector.load %arg1[%c3, %c0_10, %c0_11] : memref<4x56x256xf32, #tpu.memory_space<vmem>>, vector<1x56x256xf32>
    %13 = vector.shape_cast %12 : vector<1x56x256xf32> to vector<56x256xf32>
    %cst_12 = arith.constant dense<0.000000e+00> : vector<56x128xf32>
    %14 = tpu.matmul %13, %0, %cst_12 {dimension_numbers = #tpu.dot_dimension_numbers<[1], [0], [0], [1], [0, 0, 1, 1], [], []>} : vector<56x256xf32>, vector<256x128xf32>, vector<56x128xf32> -> vector<56x128xf32>
    %15 = arith.maximumf %11, %14 : vector<56x128xf32>
    %c0_13 = arith.constant 0 : index
    %c0_14 = arith.constant 0 : index
    %16 = vector.load %arg3[%c0_13, %c0_14] : memref<1x128xf32, #tpu.memory_space<vmem>>, vector<1x128xf32>
    %17 = vector.broadcast %16 : vector<1x128xf32> to vector<56x128xf32>
    %18 = arith.addf %15, %17 : vector<56x128xf32>
    %cst_15 = arith.constant 0.000000e+00 : f32
    %19 = vector.broadcast %cst_15 : f32 to vector<56x128xf32>
    %20 = arith.maximumf %18, %19 : vector<56x128xf32>
    %c0_16 = arith.constant 0 : index
    %c0_17 = arith.constant 0 : index
    %21 = vector.load %arg4[%c0_16, %c0_17] : memref<56x128xf32, #tpu.memory_space<vmem>>, vector<56x128xf32>
    tpu.vector_store %arg4[%c0_16, %c0_17], %20 {strides = array<i32>} : memref<56x128xf32, #tpu.memory_space<vmem>>, vector<56x128xf32>,
    return
  }
  func.func @transform_0(%arg0: i32) -> (i32, i32, i32) {
    %c0_i32 = arith.constant 0 : i32
    %c0_i32_0 = arith.constant 0 : i32
    %c0_i32_1 = arith.constant 0 : i32
    return %c0_i32, %arg0, %c0_i32_0 : i32, i32, i32
  }
  func.func @transform_1(%arg0: i32) -> (i32, i32) {
    %c0_i32 = arith.constant 0 : i32
    %c0_i32_0 = arith.constant 0 : i32
    %c0_i32_1 = arith.constant 0 : i32
    return %c0_i32, %c0_i32_0 : i32, i32
  }
  func.func @transform_2(%arg0: i32) -> (i32, i32) {
    %c0_i32 = arith.constant 0 : i32
    %c0_i32_0 = arith.constant 0 : i32
    %c0_i32_1 = arith.constant 0 : i32
    return %c0_i32, %c0_i32_0 : i32, i32
  }
  func.func @transform_3(%arg0: i32) -> (i32, i32) {
    %c0_i32 = arith.constant 0 : i32
    %c0_i32_0 = arith.constant 0 : i32
    return %arg0, %c0_i32 : i32, i32
  }
}

module attributes {stable_mosaic.version = 11 : i64} {
  func.func @_fc_tail_kernel(%arg0: i32, %arg1: memref<8x512xf32, #tpu.memory_space<vmem>>, %arg2: memref<512x128xf32, #tpu.memory_space<vmem>>, %arg3: memref<1x128xf32, #tpu.memory_space<vmem>>, %arg4: memref<128x128xf32, #tpu.memory_space<vmem>>, %arg5: memref<1x128xf32, #tpu.memory_space<vmem>>, %arg6: memref<128x128xf32, #tpu.memory_space<vmem>>, %arg7: memref<1x128xf32, #tpu.memory_space<vmem>>, %arg8: memref<8x128xf32, #tpu.memory_space<vmem>>) attributes {dimension_semantics = [#tpu.dimension_semantics<parallel>], iteration_bounds = array<i64: 1>, scalar_prefetch = 0 : i64, scratch_operands = 0 : i64, tpu.core_type = #tpu.core_type<tc>, window_params = [{transform_indices = @transform_0, window_bounds = array<i64: 8, 512>}, {pipeline_mode = #tpu.pipeline_mode<synchronous>, transform_indices = @transform_1, window_bounds = array<i64: 512, 128>}, {pipeline_mode = #tpu.pipeline_mode<synchronous>, transform_indices = @transform_2, window_bounds = array<i64: 1, 128>}, {pipeline_mode = #tpu.pipeline_mode<synchronous>, transform_indices = @transform_3, window_bounds = array<i64: 128, 128>}, {pipeline_mode = #tpu.pipeline_mode<synchronous>, transform_indices = @transform_4, window_bounds = array<i64: 1, 128>}, {pipeline_mode = #tpu.pipeline_mode<synchronous>, transform_indices = @transform_5, window_bounds = array<i64: 128, 128>}, {pipeline_mode = #tpu.pipeline_mode<synchronous>, transform_indices = @transform_6, window_bounds = array<i64: 1, 128>}, {transform_indices = @transform_7, window_bounds = array<i64: 8, 128>}]} {
    %c0 = arith.constant 0 : index
    %c0_0 = arith.constant 0 : index
    %0 = vector.load %arg1[%c0, %c0_0] : memref<8x512xf32, #tpu.memory_space<vmem>>, vector<8x512xf32>
    %c0_1 = arith.constant 0 : index
    %c0_2 = arith.constant 0 : index
    %1 = vector.load %arg2[%c0_1, %c0_2] : memref<512x128xf32, #tpu.memory_space<vmem>>, vector<512x128xf32>
    %cst = arith.constant dense<0.000000e+00> : vector<8x128xf32>
    %2 = tpu.matmul %0, %1, %cst {dimension_numbers = #tpu.dot_dimension_numbers<[1], [0], [0], [1], [0, 0, 1, 1], [], []>} : vector<8x512xf32>, vector<512x128xf32>, vector<8x128xf32> -> vector<8x128xf32>
    %c0_3 = arith.constant 0 : index
    %c0_4 = arith.constant 0 : index
    %3 = vector.load %arg3[%c0_3, %c0_4] : memref<1x128xf32, #tpu.memory_space<vmem>>, vector<1x128xf32>
    %4 = vector.broadcast %3 : vector<1x128xf32> to vector<8x128xf32>
    %5 = arith.addf %2, %4 : vector<8x128xf32>
    %cst_5 = arith.constant 0.000000e+00 : f32
    %6 = vector.broadcast %cst_5 : f32 to vector<8x128xf32>
    %7 = arith.maximumf %5, %6 : vector<8x128xf32>
    %c0_6 = arith.constant 0 : index
    %c0_7 = arith.constant 0 : index
    %8 = vector.load %arg4[%c0_6, %c0_7] : memref<128x128xf32, #tpu.memory_space<vmem>>, vector<128x128xf32>
    %cst_8 = arith.constant dense<0.000000e+00> : vector<8x128xf32>
    %9 = tpu.matmul %7, %8, %cst_8 {dimension_numbers = #tpu.dot_dimension_numbers<[1], [0], [0], [1], [0, 0, 1, 1], [], []>} : vector<8x128xf32>, vector<128x128xf32>, vector<8x128xf32> -> vector<8x128xf32>
    %c0_9 = arith.constant 0 : index
    %c0_10 = arith.constant 0 : index
    %10 = vector.load %arg5[%c0_9, %c0_10] : memref<1x128xf32, #tpu.memory_space<vmem>>, vector<1x128xf32>
    %11 = vector.broadcast %10 : vector<1x128xf32> to vector<8x128xf32>
    %12 = arith.addf %9, %11 : vector<8x128xf32>
    %cst_11 = arith.constant 0.000000e+00 : f32
    %13 = vector.broadcast %cst_11 : f32 to vector<8x128xf32>
    %14 = arith.maximumf %12, %13 : vector<8x128xf32>
    %c0_12 = arith.constant 0 : index
    %c0_13 = arith.constant 0 : index
    %15 = vector.load %arg6[%c0_12, %c0_13] : memref<128x128xf32, #tpu.memory_space<vmem>>, vector<128x128xf32>
    %cst_14 = arith.constant dense<0.000000e+00> : vector<8x128xf32>
    %16 = tpu.matmul %14, %15, %cst_14 {dimension_numbers = #tpu.dot_dimension_numbers<[1], [0], [0], [1], [0, 0, 1, 1], [], []>} : vector<8x128xf32>, vector<128x128xf32>, vector<8x128xf32> -> vector<8x128xf32>
    %c0_15 = arith.constant 0 : index
    %c0_16 = arith.constant 0 : index
    %17 = vector.load %arg7[%c0_15, %c0_16] : memref<1x128xf32, #tpu.memory_space<vmem>>, vector<1x128xf32>
    %18 = vector.broadcast %17 : vector<1x128xf32> to vector<8x128xf32>
    %19 = arith.addf %16, %18 : vector<8x128xf32>
    %c0_17 = arith.constant 0 : index
    %c0_18 = arith.constant 0 : index
    %20 = vector.load %arg8[%c0_17, %c0_18] : memref<8x128xf32, #tpu.memory_space<vmem>>, vector<8x128xf32>
    tpu.vector_store %arg8[%c0_17, %c0_18], %19 {strides = array<i32>} : memref<8x128xf32, #tpu.memory_space<vmem>>, vector<8x128xf32>,
    return
  }
  func.func @transform_0(%arg0: i32) -> (i32, i32) {
    %c0_i32 = arith.constant 0 : i32
    %c0_i32_0 = arith.constant 0 : i32
    return %arg0, %c0_i32 : i32, i32
  }
  func.func @transform_1(%arg0: i32) -> (i32, i32) {
    %c0_i32 = arith.constant 0 : i32
    %c0_i32_0 = arith.constant 0 : i32
    %c0_i32_1 = arith.constant 0 : i32
    return %c0_i32, %c0_i32_0 : i32, i32
  }
  func.func @transform_2(%arg0: i32) -> (i32, i32) {
    %c0_i32 = arith.constant 0 : i32
    %c0_i32_0 = arith.constant 0 : i32
    %c0_i32_1 = arith.constant 0 : i32
    return %c0_i32, %c0_i32_0 : i32, i32
  }
  func.func @transform_3(%arg0: i32) -> (i32, i32) {
    %c0_i32 = arith.constant 0 : i32
    %c0_i32_0 = arith.constant 0 : i32
    %c0_i32_1 = arith.constant 0 : i32
    return %c0_i32, %c0_i32_0 : i32, i32
  }
  func.func @transform_4(%arg0: i32) -> (i32, i32) {
    %c0_i32 = arith.constant 0 : i32
    %c0_i32_0 = arith.constant 0 : i32
    %c0_i32_1 = arith.constant 0 : i32
    return %c0_i32, %c0_i32_0 : i32, i32
  }
  func.func @transform_5(%arg0: i32) -> (i32, i32) {
    %c0_i32 = arith.constant 0 : i32
    %c0_i32_0 = arith.constant 0 : i32
    %c0_i32_1 = arith.constant 0 : i32
    return %c0_i32, %c0_i32_0 : i32, i32
  }
  func.func @transform_6(%arg0: i32) -> (i32, i32) {
    %c0_i32 = arith.constant 0 : i32
    %c0_i32_0 = arith.constant 0 : i32
    %c0_i32_1 = arith.constant 0 : i32
    return %c0_i32, %c0_i32_0 : i32, i32
  }
  func.func @transform_7(%arg0: i32) -> (i32, i32) {
    %c0_i32 = arith.constant 0 : i32
    %c0_i32_0 = arith.constant 0 : i32
    return %arg0, %c0_i32 : i32, i32
  }
}

</mosaic_0001>

<bundles_post_ra>
// kernel: cnn_forward.3
= control target key start
LH: loop header
LB: loop body
LE: loop exit
PB: predicated region body
PF: predicated region fallthrough
CT: control target
= control target key end

     0   :  { %v2900_v0 = vmov 0.0   ;;  %vm2901_vm0 = vmmov 0   ;;  %s4752_s1 = inlined_call_operand.vmem [shape: f32[128,128], index: 1, kind: input, shape index: {}]   ;;  %s4753_s0 = inlined_call_operand.vmem [shape: f32[4,392,128], index: 0, kind: input, shape index: {}]   ;;  %s4754_s2 = inlined_call_operand.vmem [shape: f32[1,128], index: 2, kind: input, shape index: {}]   ;;  %s4755_s3 = inlined_call_operand.vmem [shape: f32[392,128], index: 3, kind: output, shape index: {}]  }
   0x1   :  { %2182 = vmatprep.subr.mxu0 %v2900_v0  ;;  %v2926_v1 = vld [vmem:[%s4752_s1 + $0x78] sm:$0xff]  ;;  %2361 = vmatprep.subr.mxu1 %v2900_v0  ;;  %v2932_v2 = vld [vmem:[%s4752_s1 + $0x70] sm:$0xff]  ;;  %v2941_v3 = vld [vmem:[%s4752_s1 + $0x68] sm:$0xff] }
   0x2   :  { %2183 = vmatpush3.msra.mxu0 %v2926_v1  ;;  %2362 = vmatpush3.msra.mxu1 %v2926_v1  ;;  %v2950_v4 = vld [vmem:[%s4752_s1 + $0x60] sm:$0xff]  ;;  %v2959_v5 = vld [vmem:[%s4752_s1 + $0x58] sm:$0xff]  ;;  %v2968_v6 = vld [vmem:[%s4752_s1 + $0x50] sm:$0xff] }
   0x3   :  { %2184 = vmatprep.subr.mxu0 %v2900_v0  ;;  %2363 = vmatprep.subr.mxu1 %v2900_v0  ;;  %v2977_v7 = vld [vmem:[%s4752_s1 + $0x48] sm:$0xff]  ;;  %v2986_v8 = vld [vmem:[%s4752_s1 + $0x40] sm:$0xff]  ;;  %v2995_v9 = vld [vmem:[%s4752_s1 + $0x38] sm:$0xff] }
   0x4   :  { %2185 = vmatpush3.msra.mxu0 %v2932_v2  ;;  %2364 = vmatpush3.msra.mxu1 %v2932_v2  ;;  %v3004_v10 = vld [vmem:[%s4752_s1 + $0x30] sm:$0xff]  ;;  %v3013_v11 = vld [vmem:[%s4752_s1 + $0x28] sm:$0xff]  ;;  %v3022_v12 = vld [vmem:[%s4752_s1 + $0x20] sm:$0xff] }
   0x5   :  { %2186 = vmatprep.subr.mxu0 %v2900_v0  ;;  %2365 = vmatprep.subr.mxu1 %v2900_v0  ;;  %v3031_v13 = vld [vmem:[%s4752_s1 + $0x18] sm:$0xff]  ;;  %v3040_v14 = vld [vmem:[%s4752_s1 + $0x10] sm:$0xff]  ;;  %v3049_v15 = vld [vmem:[%s4752_s1 + $0x8] sm:$0xff] }
   0x6   :  { %2187 = vmatpush3.msra.mxu0 %v2941_v3  ;;  %2366 = vmatpush3.msra.mxu1 %v2941_v3  ;;  %v3058_v16 = vld [vmem:[%s4752_s1] sm:$0xff]  ;;  %v1774_v18 = vld [vmem:[%s4753_s0 + $0x188] sm:$0xff]  ;;  %v1775_v20 = vld [vmem:[%s4753_s0 + $0x190] sm:$0xff] }
   0x7   :  { %2188 = vmatprep.subr.mxu0 %v2900_v0  ;;  %2367 = vmatprep.subr.mxu1 %v2900_v0  ;;  %v30_v17 = vld [vmem:[%s4753_s0] sm:$0xff]  ;;  %v31_v19 = vld [vmem:[%s4753_s0 + $0x8] sm:$0xff]  ;;  %v32_v21 = vld [vmem:[%s4753_s0 + $0x10] sm:$0xff] }
   0x8   :  { %2189 = vmatpush3.msra.mxu0 %v2950_v4  ;;  %2368 = vmatpush3.msra.mxu1 %v2950_v4  ;;  %v1776_v22 = vld [vmem:[%s4753_s0 + $0x198] sm:$0xff]  ;;  %v1777_v24 = vld [vmem:[%s4753_s0 + $0x1a0] sm:$0xff]  ;;  %v1778_v26 = vld [vmem:[%s4753_s0 + $0x1a8] sm:$0xff] }
   0x9   :  { %2190 = vmatprep.subr.mxu0 %v2900_v0  ;;  %2369 = vmatprep.subr.mxu1 %v2900_v0  ;;  %v33_v23 = vld [vmem:[%s4753_s0 + $0x18] sm:$0xff]  ;;  %v34_v25 = vld [vmem:[%s4753_s0 + $0x20] sm:$0xff]  ;;  %v35_v27 = vld [vmem:[%s4753_s0 + $0x28] sm:$0xff] }
   0xa   :  { %2191 = vmatpush3.msra.mxu0 %v2959_v5  ;;  %2370 = vmatpush3.msra.mxu1 %v2959_v5  ;;  %v1779_v28 = vld [vmem:[%s4753_s0 + $0x1b0] sm:$0xff]  ;;  %v1780_v30 = vld [vmem:[%s4753_s0 + $0x1b8] sm:$0xff]  ;;  %v1781_v32 = vld [vmem:[%s4753_s0 + $0x1c0] sm:$0xff] }
   0xb   :  { %2192 = vmatprep.subr.mxu0 %v2900_v0  ;;  %2371 = vmatprep.subr.mxu1 %v2900_v0  ;;  %v36_v29 = vld [vmem:[%s4753_s0 + $0x30] sm:$0xff]  ;;  %v37_v31 = vld [vmem:[%s4753_s0 + $0x38] sm:$0xff]  ;;  %v38_v33 = vld [vmem:[%s4753_s0 + $0x40] sm:$0xff] }
   0xc   :  { %2193 = vmatpush3.msra.mxu0 %v2968_v6  ;;  %2372 = vmatpush3.msra.mxu1 %v2968_v6  ;;  %v1782_v34 = vld [vmem:[%s4753_s0 + $0x1c8] sm:$0xff]  ;;  %v1783_v36 = vld [vmem:[%s4753_s0 + $0x1d0] sm:$0xff]  ;;  %v1784_v38 = vld [vmem:[%s4753_s0 + $0x1d8] sm:$0xff] }
   0xd   :  { %2194 = vmatprep.subr.mxu0 %v2900_v0  ;;  %2373 = vmatprep.subr.mxu1 %v2900_v0  ;;  %v39_v35 = vld [vmem:[%s4753_s0 + $0x48] sm:$0xff]  ;;  %v40_v37 = vld [vmem:[%s4753_s0 + $0x50] sm:$0xff]  ;;  %v41_v39 = vld [vmem:[%s4753_s0 + $0x58] sm:$0xff] }
   0xe   :  { %2195 = vmatpush3.msra.mxu0 %v2977_v7  ;;  %2374 = vmatpush3.msra.mxu1 %v2977_v7  ;;  %v1785_v40 = vld [vmem:[%s4753_s0 + $0x1e0] sm:$0xff]  ;;  %v1786_v42 = vld [vmem:[%s4753_s0 + $0x1e8] sm:$0xff]  ;;  %v1787_v44 = vld [vmem:[%s4753_s0 + $0x1f0] sm:$0xff] }
   0xf   :  { %2196 = vmatprep.subr.mxu0 %v2900_v0  ;;  %2375 = vmatprep.subr.mxu1 %v2900_v0  ;;  %v42_v41 = vld [vmem:[%s4753_s0 + $0x60] sm:$0xff]  ;;  %v43_v43 = vld [vmem:[%s4753_s0 + $0x68] sm:$0xff]  ;;  %v44_v45 = vld [vmem:[%s4753_s0 + $0x70] sm:$0xff] }
  0x10   :  { %2197 = vmatpush3.msra.mxu0 %v2986_v8  ;;  %2376 = vmatpush3.msra.mxu1 %v2986_v8  ;;  %v1788_v46 = vld [vmem:[%s4753_s0 + $0x1f8] sm:$0xff]  ;;  %v1789_v48 = vld [vmem:[%s4753_s0 + $0x200] sm:$0xff]  ;;  %v1790_v50 = vld [vmem:[%s4753_s0 + $0x208] sm:$0xff] }
  0x11   :  { %2198 = vmatprep.subr.mxu0 %v2900_v0  ;;  %2377 = vmatprep.subr.mxu1 %v2900_v0  ;;  %v45_v47 = vld [vmem:[%s4753_s0 + $0x78] sm:$0xff]  ;;  %v46_v49 = vld [vmem:[%s4753_s0 + $0x80] sm:$0xff]  ;;  %v47_v51 = vld [vmem:[%s4753_s0 + $0x88] sm:$0xff] }
  0x12   :  { %2199 = vmatpush3.msra.mxu0 %v2995_v9  ;;  %2378 = vmatpush3.msra.mxu1 %v2995_v9  ;;  %v1791_v52 = vld [vmem:[%s4753_s0 + $0x210] sm:$0xff]  ;;  %v1792_v54 = vld [vmem:[%s4753_s0 + $0x218] sm:$0xff]  ;;  %v1793_v56 = vld [vmem:[%s4753_s0 + $0x220] sm:$0xff] }
  0x13   :  { %2200 = vmatprep.subr.mxu0 %v2900_v0  ;;  %2379 = vmatprep.subr.mxu1 %v2900_v0  ;;  %v48_v53 = vld [vmem:[%s4753_s0 + $0x90] sm:$0xff]  ;;  %v49_v55 = vld [vmem:[%s4753_s0 + $0x98] sm:$0xff]  ;;  %v50_v57 = vld [vmem:[%s4753_s0 + $0xa0] sm:$0xff] }
  0x14   :  { %2201 = vmatpush3.msra.mxu0 %v3004_v10  ;;  %2380 = vmatpush3.msra.mxu1 %v3004_v10  ;;  %v1794_v58 = vld [vmem:[%s4753_s0 + $0x228] sm:$0xff]  ;;  %v1795_v60 = vld [vmem:[%s4753_s0 + $0x230] sm:$0xff]  ;;  %v1796_v62 = vld [vmem:[%s4753_s0 + $0x238] sm:$0xff] }
  0x15   :  { %2202 = vmatprep.subr.mxu0 %v2900_v0  ;;  %2381 = vmatprep.subr.mxu1 %v2900_v0  ;;  %v51_v59 = vld [vmem:[%s4753_s0 + $0xa8] sm:$0xff]  ;;  %v52_v61 = vld [vmem:[%s4753_s0 + $0xb0] sm:$0xff]  ;;  %v53_v63 = vld [vmem:[%s4753_s0 + $0xb8] sm:$0xff] }
  0x16   :  { %2203 = vmatpush3.msra.mxu0 %v3013_v11  ;;  %2382 = vmatpush3.msra.mxu1 %v3013_v11 }
  0x17   :  { %2204 = vmatprep.subr.mxu0 %v2900_v0  ;;  %2383 = vmatprep.subr.mxu1 %v2900_v0 }
  0x18   :  { %2205 = vmatpush3.msra.mxu0 %v3022_v12  ;;  %2384 = vmatpush3.msra.mxu1 %v3022_v12 }
  0x19   :  { %2206 = vmatprep.subr.mxu0 %v2900_v0  ;;  %2385 = vmatprep.subr.mxu1 %v2900_v0 }
  0x1a   :  { %2207 = vmatpush3.msra.mxu0 %v3031_v13  ;;  %2386 = vmatpush3.msra.mxu1 %v3031_v13 }
  0x1b   :  { %2208 = vmatprep.subr.mxu0 %v2900_v0  ;;  %2387 = vmatprep.subr.mxu1 %v2900_v0 }
  0x1c   :  { %2209 = vmatpush3.msra.mxu0 %v3040_v14  ;;  %2388 = vmatpush3.msra.mxu1 %v3040_v14 }
  0x1d   :  { %2210 = vmatprep.subr.mxu0 %v2900_v0  ;;  %2389 = vmatprep.subr.mxu1 %v2900_v0 }
  0x1e   :  { %2211 = vmatpush3.msra.mxu0 %v3049_v15  ;;  %2390 = vmatpush3.msra.mxu1 %v3049_v15 }
  0x1f   :  { %2212 = vmatprep.subr.mxu0 %v2900_v0  ;;  %2214 = vmatprep.mubr.msk.f32.mxu0 %vm2901_vm0, %v2900_v0 }
  0x20   :  { %2213 = vmatpush3.msra.mxu0 %v3058_v16  ;;  %2391 = vmatprep.subr.mxu1 %v2900_v0 }
  0x21   :  { %2215 = vmatmul.mubr.f32.vlgmr.msra.gmra.mxu0 %v30_v17  ;;  %2392 = vmatpush3.msra.mxu1 %v3058_v16  ;;  %v1805_v17 = vld [vmem:[%s4753_s0 + $0x280] sm:$0xff] }
  0x22   :  { %2393 = vmatprep.mubr.msk.f32.mxu1 %vm2901_vm0, %v2900_v0  ;;  %2540 = vmatprep.subr.mxu0 %v2900_v0 }
  0x23   :  { %2394 = vmatmul.mubr.f32.vlgmr.msra.gmra.mxu1 %v1774_v18  ;;  %2541 = vmatpush3.msra.mxu0 %v2926_v1  ;;  %v62_v18 = vld [vmem:[%s4753_s0 + $0x100] sm:$0xff] }
  0x24   :  { %2719 = vmatprep.subr.mxu1 %v2900_v0  ;;  %2217 = vmatprep.mubr.msk.f32.mxu0 %vm2901_vm0, %v2900_v0 }
  0x25   :  { %2720 = vmatpush3.msra.mxu1 %v2926_v1  ;;  %2218 = vmatmul.mubr.f32.gmra.mxu0 %v31_v19  ;;  %v1797_v1 = vld [vmem:[%s4753_s0 + $0x240] sm:$0xff]  ;;  %v1806_v19 = vld [vmem:[%s4753_s0 + $0x288] sm:$0xff] }
  0x26   :  { %2396 = vmatprep.mubr.msk.f32.mxu1 %vm2901_vm0, %v2900_v0  ;;  %2220 = vmatprep.mubr.msk.f32.mxu0 %vm2901_vm0, %v2900_v0 }
  0x27   :  { %2397 = vmatmul.mubr.f32.gmra.mxu1 %v1775_v20  ;;  %2542 = vmatprep.subr.mxu0 %v2900_v0  ;;  %v63_v20 = vld [vmem:[%s4753_s0 + $0x108] sm:$0xff] }
  0x28   :  { %2399 = vmatprep.mubr.msk.f32.mxu1 %vm2901_vm0, %v2900_v0  ;;  %2543 = vmatpush3.msra.mxu0 %v2932_v2 }
  0x29   :  { %2221 = vmatmul.mubr.f32.gmra.mxu0 %v32_v21  ;;  %2721 = vmatprep.subr.mxu1 %v2900_v0  ;;  %v1807_v21 = vld [vmem:[%s4753_s0 + $0x290] sm:$0xff] }
  0x2a   :  { %2223 = vmatprep.mubr.msk.f32.mxu0 %vm2901_vm0, %v2900_v0  ;;  %2722 = vmatpush3.msra.mxu1 %v2932_v2  ;;  %v54_v2 = vld [vmem:[%s4753_s0 + $0xc0] sm:$0xff] }
  0x2b   :  { %2400 = vmatmul.mubr.f32.gmra.mxu1 %v1776_v22  ;;  %2544 = vmatprep.subr.mxu0 %v2900_v0  ;;  %v64_v22 = vld [vmem:[%s4753_s0 + $0x110] sm:$0xff] }
  0x2c   :  { %2402 = vmatprep.mubr.msk.f32.mxu1 %vm2901_vm0, %v2900_v0  ;;  %2545 = vmatpush3.msra.mxu0 %v2941_v3 }
  0x2d   :  { %2224 = vmatmul.mubr.f32.gmra.mxu0 %v33_v23  ;;  %2723 = vmatprep.subr.mxu1 %v2900_v0  ;;  %v1808_v23 = vld [vmem:[%s4753_s0 + $0x298] sm:$0xff] }
  0x2e   :  { %2226 = vmatprep.mubr.msk.f32.mxu0 %vm2901_vm0, %v2900_v0  ;;  %2724 = vmatpush3.msra.mxu1 %v2941_v3  ;;  %v1798_v3 = vld [vmem:[%s4753_s0 + $0x248] sm:$0xff] }
  0x2f   :  { %2403 = vmatmul.mubr.f32.gmra.mxu1 %v1777_v24  ;;  %2546 = vmatprep.subr.mxu0 %v2900_v0  ;;  %v65_v24 = vld [vmem:[%s4753_s0 + $0x118] sm:$0xff] }
  0x30   :  { %2405 = vmatprep.mubr.msk.f32.mxu1 %vm2901_vm0, %v2900_v0  ;;  %2547 = vmatpush3.msra.mxu0 %v2950_v4 }
  0x31   :  { %2227 = vmatmul.mubr.f32.gmra.mxu0 %v34_v25  ;;  %2725 = vmatprep.subr.mxu1 %v2900_v0  ;;  %v1809_v25 = vld [vmem:[%s4753_s0 + $0x2a0] sm:$0xff] }
  0x32   :  { %2229 = vmatprep.mubr.msk.f32.mxu0 %vm2901_vm0, %v2900_v0  ;;  %2726 = vmatpush3.msra.mxu1 %v2950_v4  ;;  %v55_v4 = vld [vmem:[%s4753_s0 + $0xc8] sm:$0xff] }
  0x33   :  { %2406 = vmatmul.mubr.f32.gmra.mxu1 %v1778_v26  ;;  %2548 = vmatprep.subr.mxu0 %v2900_v0  ;;  %v66_v26 = vld [vmem:[%s4753_s0 + $0x120] sm:$0xff] }
  0x34   :  { %2408 = vmatprep.mubr.msk.f32.mxu1 %vm2901_vm0, %v2900_v0  ;;  %2549 = vmatpush3.msra.mxu0 %v2959_v5 }
  0x35   :  { %2230 = vmatmul.mubr.f32.gmra.mxu0 %v35_v27  ;;  %2727 = vmatprep.subr.mxu1 %v2900_v0  ;;  %v1810_v27 = vld [vmem:[%s4753_s0 + $0x2a8] sm:$0xff] }
  0x36   :  { %2232 = vmatprep.mubr.msk.f32.mxu0 %vm2901_vm0, %v2900_v0  ;;  %2728 = vmatpush3.msra.mxu1 %v2959_v5  ;;  %v1799_v5 = vld [vmem:[%s4753_s0 + $0x250] sm:$0xff] }
  0x37   :  { %2409 = vmatmul.mubr.f32.gmra.mxu1 %v1779_v28  ;;  %2550 = vmatprep.subr.mxu0 %v2900_v0  ;;  %v67_v28 = vld [vmem:[%s4753_s0 + $0x128] sm:$0xff] }
  0x38   :  { %2411 = vmatprep.mubr.msk.f32.mxu1 %vm2901_vm0, %v2900_v0  ;;  %2551 = vmatpush3.msra.mxu0 %v2968_v6 }
  0x39   :  { %2233 = vmatmul.mubr.f32.gmra.mxu0 %v36_v29  ;;  %2729 = vmatprep.subr.mxu1 %v2900_v0  ;;  %v1811_v29 = vld [vmem:[%s4753_s0 + $0x2b0] sm:$0xff] }
  0x3a   :  { %2235 = vmatprep.mubr.msk.f32.mxu0 %vm2901_vm0, %v2900_v0  ;;  %2730 = vmatpush3.msra.mxu1 %v2968_v6  ;;  %v56_v6 = vld [vmem:[%s4753_s0 + $0xd0] sm:$0xff] }
  0x3b   :  { %2412 = vmatmul.mubr.f32.gmra.mxu1 %v1780_v30  ;;  %2552 = vmatprep.subr.mxu0 %v2900_v0  ;;  %v68_v30 = vld [vmem:[%s4753_s0 + $0x130] sm:$0xff] }
  0x3c   :  { %2414 = vmatprep.mubr.msk.f32.mxu1 %vm2901_vm0, %v2900_v0  ;;  %2553 = vmatpush3.msra.mxu0 %v2977_v7 }
  0x3d   :  { %2236 = vmatmul.mubr.f32.gmra.mxu0 %v37_v31  ;;  %2731 = vmatprep.subr.mxu1 %v2900_v0  ;;  %v1812_v31 = vld [vmem:[%s4753_s0 + $0x2b8] sm:$0xff] }
  0x3e   :  { %2238 = vmatprep.mubr.msk.f32.mxu0 %vm2901_vm0, %v2900_v0  ;;  %2732 = vmatpush3.msra.mxu1 %v2977_v7  ;;  %v1800_v7 = vld [vmem:[%s4753_s0 + $0x258] sm:$0xff] }
  0x3f   :  { %2415 = vmatmul.mubr.f32.gmra.mxu1 %v1781_v32  ;;  %2554 = vmatprep.subr.mxu0 %v2900_v0  ;;  %v69_v32 = vld [vmem:[%s4753_s0 + $0x138] sm:$0xff] }
  0x40   :  { %2417 = vmatprep.mubr.msk.f32.mxu1 %vm2901_vm0, %v2900_v0  ;;  %2555 = vmatpush3.msra.mxu0 %v2986_v8 }
  0x41   :  { %2239 = vmatmul.mubr.f32.gmra.mxu0 %v38_v33  ;;  %2733 = vmatprep.subr.mxu1 %v2900_v0  ;;  %v1813_v33 = vld [vmem:[%s4753_s0 + $0x2c0] sm:$0xff] }
  0x42   :  { %2241 = vmatprep.mubr.msk.f32.mxu0 %vm2901_vm0, %v2900_v0  ;;  %2734 = vmatpush3.msra.mxu1 %v2986_v8  ;;  %v57_v8 = vld [vmem:[%s4753_s0 + $0xd8] sm:$0xff] }
  0x43   :  { %2418 = vmatmul.mubr.f32.gmra.mxu1 %v1782_v34  ;;  %2556 = vmatprep.subr.mxu0 %v2900_v0  ;;  %v70_v34 = vld [vmem:[%s4753_s0 + $0x140] sm:$0xff] }
  0x44   :  { %2420 = vmatprep.mubr.msk.f32.mxu1 %vm2901_vm0, %v2900_v0  ;;  %2557 = vmatpush3.msra.mxu0 %v2995_v9 }
  0x45   :  { %2242 = vmatmul.mubr.f32.gmra.mxu0 %v39_v35  ;;  %2735 = vmatprep.subr.mxu1 %v2900_v0  ;;  %v1814_v35 = vld [vmem:[%s4753_s0 + $0x2c8] sm:$0xff] }
  0x46   :  { %2244 = vmatprep.mubr.msk.f32.mxu0 %vm2901_vm0, %v2900_v0  ;;  %2736 = vmatpush3.msra.mxu1 %v2995_v9  ;;  %v1801_v9 = vld [vmem:[%s4753_s0 + $0x260] sm:$0xff] }
  0x47   :  { %2421 = vmatmul.mubr.f32.gmra.mxu1 %v1783_v36  ;;  %2558 = vmatprep.subr.mxu0 %v2900_v0  ;;  %v71_v36 = vld [vmem:[%s4753_s0 + $0x148] sm:$0xff] }
  0x48   :  { %2423 = vmatprep.mubr.msk.f32.mxu1 %vm2901_vm0, %v2900_v0  ;;  %2559 = vmatpush3.msra.mxu0 %v3004_v10 }
  0x49   :  { %2245 = vmatmul.mubr.f32.gmra.mxu0 %v40_v37  ;;  %2737 = vmatprep.subr.mxu1 %v2900_v0  ;;  %v1815_v37 = vld [vmem:[%s4753_s0 + $0x2d0] sm:$0xff] }
  0x4a   :  { %2247 = vmatprep.mubr.msk.f32.mxu0 %vm2901_vm0, %v2900_v0  ;;  %2738 = vmatpush3.msra.mxu1 %v3004_v10  ;;  %v58_v10 = vld [vmem:[%s4753_s0 + $0xe0] sm:$0xff] }
  0x4b   :  { %2424 = vmatmul.mubr.f32.gmra.mxu1 %v1784_v38  ;;  %2560 = vmatprep.subr.mxu0 %v2900_v0  ;;  %v72_v38 = vld [vmem:[%s4753_s0 + $0x150] sm:$0xff] }
  0x4c   :  { %2426 = vmatprep.mubr.msk.f32.mxu1 %vm2901_vm0, %v2900_v0  ;;  %2561 = vmatpush3.msra.mxu0 %v3013_v11 }
  0x4d   :  { %2248 = vmatmul.mubr.f32.gmra.mxu0 %v41_v39  ;;  %2739 = vmatprep.subr.mxu1 %v2900_v0  ;;  %v1816_v39 = vld [vmem:[%s4753_s0 + $0x2d8] sm:$0xff] }
  0x4e   :  { %2250 = vmatprep.mubr.msk.f32.mxu0 %vm2901_vm0, %v2900_v0  ;;  %2740 = vmatpush3.msra.mxu1 %v3013_v11  ;;  %v1802_v11 = vld [vmem:[%s4753_s0 + $0x268] sm:$0xff] }
  0x4f   :  { %2427 = vmatmul.mubr.f32.gmra.mxu1 %v1785_v40  ;;  %2562 = vmatprep.subr.mxu0 %v2900_v0  ;;  %v73_v40 = vld [vmem:[%s4753_s0 + $0x158] sm:$0xff] }
  0x50   :  { %2429 = vmatprep.mubr.msk.f32.mxu1 %vm2901_vm0, %v2900_v0  ;;  %2563 = vmatpush3.msra.mxu0 %v3022_v12 }
  0x51   :  { %2251 = vmatmul.mubr.f32.gmra.mxu0 %v42_v41  ;;  %2741 = vmatprep.subr.mxu1 %v2900_v0  ;;  %v1817_v41 = vld [vmem:[%s4753_s0 + $0x2e0] sm:$0xff] }
  0x52   :  { %2253 = vmatprep.mubr.msk.f32.mxu0 %vm2901_vm0, %v2900_v0  ;;  %2742 = vmatpush3.msra.mxu1 %v3022_v12  ;;  %v59_v12 = vld [vmem:[%s4753_s0 + $0xe8] sm:$0xff] }
  0x53   :  { %2430 = vmatmul.mubr.f32.gmra.mxu1 %v1786_v42  ;;  %2564 = vmatprep.subr.mxu0 %v2900_v0  ;;  %v74_v42 = vld [vmem:[%s4753_s0 + $0x160] sm:$0xff] }
  0x54   :  { %2432 = vmatprep.mubr.msk.f32.mxu1 %vm2901_vm0, %v2900_v0  ;;  %2565 = vmatpush3.msra.mxu0 %v3031_v13 }
  0x55   :  { %2254 = vmatmul.mubr.f32.gmra.mxu0 %v43_v43  ;;  %2743 = vmatprep.subr.mxu1 %v2900_v0  ;;  %v1818_v43 = vld [vmem:[%s4753_s0 + $0x2e8] sm:$0xff] }
  0x56   :  { %2256 = vmatprep.mubr.msk.f32.mxu0 %vm2901_vm0, %v2900_v0  ;;  %2744 = vmatpush3.msra.mxu1 %v3031_v13  ;;  %v1803_v13 = vld [vmem:[%s4753_s0 + $0x270] sm:$0xff] }
  0x57   :  { %2433 = vmatmul.mubr.f32.gmra.mxu1 %v1787_v44  ;;  %2566 = vmatprep.subr.mxu0 %v2900_v0  ;;  %v75_v44 = vld [vmem:[%s4753_s0 + $0x168] sm:$0xff] }
  0x58   :  { %2435 = vmatprep.mubr.msk.f32.mxu1 %vm2901_vm0, %v2900_v0  ;;  %2567 = vmatpush3.msra.mxu0 %v3040_v14 }
  0x59   :  { %2257 = vmatmul.mubr.f32.gmra.mxu0 %v44_v45  ;;  %2745 = vmatprep.subr.mxu1 %v2900_v0  ;;  %v1819_v45 = vld [vmem:[%s4753_s0 + $0x2f0] sm:$0xff] }
  0x5a   :  { %2259 = vmatprep.mubr.msk.f32.mxu0 %vm2901_vm0, %v2900_v0  ;;  %2746 = vmatpush3.msra.mxu1 %v3040_v14  ;;  %v60_v14 = vld [vmem:[%s4753_s0 + $0xf0] sm:$0xff] }
  0x5b   :  { %2436 = vmatmul.mubr.f32.gmra.mxu1 %v1788_v46  ;;  %2568 = vmatprep.subr.mxu0 %v2900_v0  ;;  %v76_v46 = vld [vmem:[%s4753_s0 + $0x170] sm:$0xff] }
  0x5c   :  { %2438 = vmatprep.mubr.msk.f32.mxu1 %vm2901_vm0, %v2900_v0  ;;  %2569 = vmatpush3.msra.mxu0 %v3049_v15 }
  0x5d   :  { %2260 = vmatmul.mubr.f32.gmra.mxu0 %v45_v47  ;;  %2747 = vmatprep.subr.mxu1 %v2900_v0  ;;  %v1820_v47 = vld [vmem:[%s4753_s0 + $0x2f8] sm:$0xff] }
  0x5e   :  { %2262 = vmatprep.mubr.msk.f32.mxu0 %vm2901_vm0, %v2900_v0  ;;  %2748 = vmatpush3.msra.mxu1 %v3049_v15  ;;  %v1804_v15 = vld [vmem:[%s4753_s0 + $0x278] sm:$0xff] }
  0x5f   :  { %2439 = vmatmul.mubr.f32.gmra.mxu1 %v1789_v48  ;;  %2570 = vmatprep.subr.mxu0 %v2900_v0  ;;  %v77_v48 = vld [vmem:[%s4753_s0 + $0x178] sm:$0xff] }
  0x60   :  { %2441 = vmatprep.mubr.msk.f32.mxu1 %vm2901_vm0, %v2900_v0  ;;  %2571 = vmatpush3.msra.mxu0 %v3058_v16 }
  0x61   :  { %2263 = vmatmul.mubr.f32.gmra.mxu0 %v46_v49  ;;  %2749 = vmatprep.subr.mxu1 %v2900_v0  ;;  %v1821_v49 = vld [vmem:[%s4753_s0 + $0x300] sm:$0xff] }
  0x62   :  { %2265 = vmatprep.mubr.msk.f32.mxu0 %vm2901_vm0, %v2900_v0  ;;  %2750 = vmatpush3.msra.mxu1 %v3058_v16  ;;  %v61_v16 = vld [vmem:[%s4753_s0 + $0xf8] sm:$0xff] }
  0x63   :  { %2442 = vmatmul.mubr.f32.gmra.mxu1 %v1790_v50  ;;  %v78_v50 = vld [vmem:[%s4753_s0 + $0x180] sm:$0xff] }
  0x64   :  { %2444 = vmatprep.mubr.msk.f32.mxu1 %vm2901_vm0, %v2900_v0 }
  0x65   :  { %2266 = vmatmul.mubr.f32.gmra.mxu0 %v47_v51  ;;  %v1822_v51 = vld [vmem:[%s4753_s0 + $0x308] sm:$0xff] }
  0x66   :  { %2268 = vmatprep.mubr.msk.f32.mxu0 %vm2901_vm0, %v2900_v0 }
  0x67   :  { %2445 = vmatmul.mubr.f32.gmra.mxu1 %v1791_v52 }
  0x68   :  { %2447 = vmatprep.mubr.msk.f32.mxu1 %vm2901_vm0, %v2900_v0 }
  0x69   :  { %2269 = vmatmul.mubr.f32.gmra.mxu0 %v48_v53  ;;  %v1823_v53 = vld [vmem:[%s4753_s0 + $0x310] sm:$0xff] }
  0x6a   :  { %2271 = vmatprep.mubr.msk.f32.mxu0 %vm2901_vm0, %v2900_v0 }
  0x6b   :  { %2448 = vmatmul.mubr.f32.gmra.mxu1 %v1792_v54 }
  0x6c   :  { %2450 = vmatprep.mubr.msk.f32.mxu1 %vm2901_vm0, %v2900_v0 }
  0x6d   :  { %2272 = vmatmul.mubr.f32.gmra.mxu0 %v49_v55 }
  0x6e   :  { %2274 = vmatprep.mubr.msk.f32.mxu0 %vm2901_vm0, %v2900_v0 }
  0x6f   :  { %2451 = vmatmul.mubr.f32.gmra.mxu1 %v1793_v56 }
  0x70   :  { %2453 = vmatprep.mubr.msk.f32.mxu1 %vm2901_vm0, %v2900_v0 }
  0x71   :  { %2275 = vmatmul.mubr.f32.gmra.mxu0 %v50_v57  ;;  %v1872_v57 = vld [vmem:[%s4753_s0 + $0x498] sm:$0xff] }
  0x72   :  { %2277 = vmatprep.mubr.msk.f32.mxu0 %vm2901_vm0, %v2900_v0 }
  0x73   :  { %2454 = vmatmul.mubr.f32.gmra.mxu1 %v1794_v58 }
  0x74   :  { %2456 = vmatprep.mubr.msk.f32.mxu1 %vm2901_vm0, %v2900_v0 }
  0x75   :  { %2278 = vmatmul.mubr.f32.gmra.mxu0 %v51_v59 }
  0x76   :  { %2280 = vmatprep.mubr.msk.f32.mxu0 %vm2901_vm0, %v2900_v0 }
  0x77   :  { %2457 = vmatmul.mubr.f32.gmra.mxu1 %v1795_v60  ;;  %v1824_v60 = vld [vmem:[%s4753_s0 + $0x318] sm:$0xff] }
  0x78   :  { %2459 = vmatprep.mubr.msk.f32.mxu1 %vm2901_vm0, %v2900_v0 }
  0x79   :  { %2281 = vmatmul.mubr.f32.gmra.mxu0 %v52_v61 }
  0x7a   :  { %2283 = vmatprep.mubr.msk.f32.mxu0 %vm2901_vm0, %v2900_v0 }
  0x7b   :  { %2460 = vmatmul.mubr.f32.gmra.mxu1 %v1796_v62 }
  0x7c   :  { %2462 = vmatprep.mubr.msk.f32.mxu1 %vm2901_vm0, %v2900_v0 }
  0x7d   :  { %2284 = vmatmul.mubr.f32.gmra.mxu0 %v53_v63 }
  0x7e   :  { %2286 = vmatprep.mubr.msk.f32.mxu0 %vm2901_vm0, %v2900_v0 }
  0x7f   :  { %2463 = vmatmul.mubr.f32.gmra.mxu1 %v1797_v1  ;;  %v1873_v1 = vld [vmem:[%s4753_s0 + $0x4a0] sm:$0xff] }
  0x80   :  { %2465 = vmatprep.mubr.msk.f32.mxu1 %vm2901_vm0, %v2900_v0 }
  0x81   :  { %2287 = vmatmul.mubr.f32.gmra.mxu0 %v54_v2 }
  0x82   :  { %2289 = vmatprep.mubr.msk.f32.mxu0 %vm2901_vm0, %v2900_v0 }
  0x83   :  { %2466 = vmatmul.mubr.f32.gmra.mxu1 %v1798_v3 }
  0x84   :  { %2468 = vmatprep.mubr.msk.f32.mxu1 %vm2901_vm0, %v2900_v0 }
  0x85   :  { %2290 = vmatmul.mubr.f32.gmra.mxu0 %v55_v4  ;;  %v1825_v4 = vld [vmem:[%s4753_s0 + $0x320] sm:$0xff] }
  0x86   :  { %2292 = vmatprep.mubr.msk.f32.mxu0 %vm2901_vm0, %v2900_v0 }
  0x87   :  { %2469 = vmatmul.mubr.f32.gmra.mxu1 %v1799_v5 }
  0x88   :  { %2471 = vmatprep.mubr.msk.f32.mxu1 %vm2901_vm0, %v2900_v0 }
  0x89   :  { %2293 = vmatmul.mubr.f32.gmra.mxu0 %v56_v6 }
  0x8a   :  { %2295 = vmatprep.mubr.msk.f32.mxu0 %vm2901_vm0, %v2900_v0 }
  0x8b   :  { %2472 = vmatmul.mubr.f32.gmra.mxu1 %v1800_v7 }
  0x8c   :  { %2474 = vmatprep.mubr.msk.f32.mxu1 %vm2901_vm0, %v2900_v0 }
  0x8d   :  { %2296 = vmatmul.mubr.f32.gmra.mxu0 %v57_v8  ;;  %v1874_v8 = vld [vmem:[%s4753_s0 + $0x4a8] sm:$0xff] }
  0x8e   :  { %2298 = vmatprep.mubr.msk.f32.mxu0 %vm2901_vm0, %v2900_v0 }
  0x8f   :  { %2475 = vmatmul.mubr.f32.gmra.mxu1 %v1801_v9 }
  0x90   :  { %2477 = vmatprep.mubr.msk.f32.mxu1 %vm2901_vm0, %v2900_v0 }
  0x91   :  { %2299 = vmatmul.mubr.f32.gmra.mxu0 %v58_v10 }
  0x92   :  { %2301 = vmatprep.mubr.msk.f32.mxu0 %vm2901_vm0, %v2900_v0 }
  0x93   :  { %2478 = vmatmul.mubr.f32.gmra.mxu1 %v1802_v11  ;;  %v1826_v11 = vld [vmem:[%s4753_s0 + $0x328] sm:$0xff] }
  0x94   :  { %2480 = vmatprep.mubr.msk.f32.mxu1 %vm2901_vm0, %v2900_v0 }
  0x95   :  { %2302 = vmatmul.mubr.f32.gmra.mxu0 %v59_v12 }
  0x96   :  { %2304 = vmatprep.mubr.msk.f32.mxu0 %vm2901_vm0, %v2900_v0 }
  0x97   :  { %2481 = vmatmul.mubr.f32.gmra.mxu1 %v1803_v13 }
  0x98   :  { %2483 = vmatprep.mubr.msk.f32.mxu1 %vm2901_vm0, %v2900_v0 }
  0x99   :  { %2305 = vmatmul.mubr.f32.gmra.mxu0 %v60_v14 }
  0x9a   :  { %2307 = vmatprep.mubr.msk.f32.mxu0 %vm2901_vm0, %v2900_v0 }
  0x9b   :  { %2484 = vmatmul.mubr.f32.gmra.mxu1 %v1804_v15  ;;  %v1875_v15 = vld [vmem:[%s4753_s0 + $0x4b0] sm:$0xff] }
  0x9c   :  { %2486 = vmatprep.mubr.msk.f32.mxu1 %vm2901_vm0, %v2900_v0 }
  0x9d   :  { %2308 = vmatmul.mubr.f32.gmra.mxu0 %v61_v16 }
  0x9e   :  { %2310 = vmatprep.mubr.msk.f32.mxu0 %vm2901_vm0, %v2900_v0 }
  0x9f   :  { %2487 = vmatmul.mubr.f32.gmra.mxu1 %v1805_v17 }
  0xa0   :  { %2489 = vmatprep.mubr.msk.f32.mxu1 %vm2901_vm0, %v2900_v0 }
  0xa1   :  { %2311 = vmatmul.mubr.f32.gmra.mxu0 %v62_v18  ;;  %v1827_v18 = vld [vmem:[%s4753_s0 + $0x330] sm:$0xff] }
  0xa2   :  { %2313 = vmatprep.mubr.msk.f32.mxu0 %vm2901_vm0, %v2900_v0 }
  0xa3   :  { %2490 = vmatmul.mubr.f32.gmra.mxu1 %v1806_v19 }
  0xa4   :  { %2492 = vmatprep.mubr.msk.f32.mxu1 %vm2901_vm0, %v2900_v0 }
  0xa5   :  { %2314 = vmatmul.mubr.f32.gmra.mxu0 %v63_v20 }
  0xa6   :  { %2316 = vmatprep.mubr.msk.f32.mxu0 %vm2901_vm0, %v2900_v0 }
  0xa7   :  { %2493 = vmatmul.mubr.f32.gmra.mxu1 %v1807_v21 }
  0xa8   :  { %2495 = vmatprep.mubr.msk.f32.mxu1 %vm2901_vm0, %v2900_v0 }
  0xa9   :  { %2317 = vmatmul.mubr.f32.gmra.mxu0 %v64_v22  ;;  %v1876_v22 = vld [vmem:[%s4753_s0 + $0x4b8] sm:$0xff] }
  0xaa   :  { %2319 = vmatprep.mubr.msk.f32.mxu0 %vm2901_vm0, %v2900_v0 }
  0xab   :  { %2496 = vmatmul.mubr.f32.gmra.mxu1 %v1808_v23 }
  0xac   :  { %2498 = vmatprep.mubr.msk.f32.mxu1 %vm2901_vm0, %v2900_v0 }
  0xad   :  { %2320 = vmatmul.mubr.f32.gmra.mxu0 %v65_v24 }
  0xae   :  { %2322 = vmatprep.mubr.msk.f32.mxu0 %vm2901_vm0, %v2900_v0 }
  0xaf   :  { %2499 = vmatmul.mubr.f32.gmra.mxu1 %v1809_v25  ;;  %v1828_v25 = vld [vmem:[%s4753_s0 + $0x338] sm:$0xff] }
  0xb0   :  { %2501 = vmatprep.mubr.msk.f32.mxu1 %vm2901_vm0, %v2900_v0 }
  0xb1   :  { %2323 = vmatmul.mubr.f32.gmra.mxu0 %v66_v26 }
  0xb2   :  { %2325 = vmatprep.mubr.msk.f32.mxu0 %vm2901_vm0, %v2900_v0 }
  0xb3   :  { %2502 = vmatmul.mubr.f32.gmra.mxu1 %v1810_v27 }
  0xb4   :  { %2504 = vmatprep.mubr.msk.f32.mxu1 %vm2901_vm0, %v2900_v0 }
  0xb5   :  { %2326 = vmatmul.mubr.f32.gmra.mxu0 %v67_v28 }
  0xb6   :  { %2328 = vmatprep.mubr.msk.f32.mxu0 %vm2901_vm0, %v2900_v0 }
  0xb7   :  { %2505 = vmatmul.mubr.f32.gmra.mxu1 %v1811_v29  ;;  %v1877_v29 = vld [vmem:[%s4753_s0 + $0x4c0] sm:$0xff] }
  0xb8   :  { %2507 = vmatprep.mubr.msk.f32.mxu1 %vm2901_vm0, %v2900_v0 }
  0xb9   :  { %2329 = vmatmul.mubr.f32.gmra.mxu0 %v68_v30 }
  0xba   :  { %2331 = vmatprep.mubr.msk.f32.mxu0 %vm2901_vm0, %v2900_v0 }
  0xbb   :  { %2508 = vmatmul.mubr.f32.gmra.mxu1 %v1812_v31 }
  0xbc   :  { %2510 = vmatprep.mubr.msk.f32.mxu1 %vm2901_vm0, %v2900_v0 }
  0xbd   :  { %2332 = vmatmul.mubr.f32.gmra.mxu0 %v69_v32  ;;  %v1829_v32 = vld [vmem:[%s4753_s0 + $0x340] sm:$0xff] }
  0xbe   :  { %2334 = vmatprep.mubr.msk.f32.mxu0 %vm2901_vm0, %v2900_v0 }
  0xbf   :  { %2511 = vmatmul.mubr.f32.gmra.mxu1 %v1813_v33 }
  0xc0   :  { %2513 = vmatprep.mubr.msk.f32.mxu1 %vm2901_vm0, %v2900_v0 }
  0xc1   :  { %2335 = vmatmul.mubr.f32.gmra.mxu0 %v70_v34 }
  0xc2   :  { %2337 = vmatprep.mubr.msk.f32.mxu0 %vm2901_vm0, %v2900_v0 }
  0xc3   :  { %2514 = vmatmul.mubr.f32.gmra.mxu1 %v1814_v35 }
  0xc4   :  { %2516 = vmatprep.mubr.msk.f32.mxu1 %vm2901_vm0, %v2900_v0 }
  0xc5   :  { %2338 = vmatmul.mubr.f32.gmra.mxu0 %v71_v36  ;;  %v1878_v36 = vld [vmem:[%s4753_s0 + $0x4c8] sm:$0xff] }
  0xc6   :  { %2340 = vmatprep.mubr.msk.f32.mxu0 %vm2901_vm0, %v2900_v0 }
  0xc7   :  { %2517 = vmatmul.mubr.f32.gmra.mxu1 %v1815_v37 }
  0xc8   :  { %2519 = vmatprep.mubr.msk.f32.mxu1 %vm2901_vm0, %v2900_v0 }
  0xc9   :  { %2341 = vmatmul.mubr.f32.gmra.mxu0 %v72_v38 }
  0xca   :  { %2343 = vmatprep.mubr.msk.f32.mxu0 %vm2901_vm0, %v2900_v0 }
  0xcb   :  { %2520 = vmatmul.mubr.f32.gmra.mxu1 %v1816_v39  ;;  %v1830_v39 = vld [vmem:[%s4753_s0 + $0x348] sm:$0xff] }
  0xcc   :  { %2522 = vmatprep.mubr.msk.f32.mxu1 %vm2901_vm0, %v2900_v0 }
  0xcd   :  { %2344 = vmatmul.mubr.f32.gmra.mxu0 %v73_v40 }
  0xce   :  { %2346 = vmatprep.mubr.msk.f32.mxu0 %vm2901_vm0, %v2900_v0 }
  0xcf   :  { %2523 = vmatmul.mubr.f32.gmra.mxu1 %v1817_v41 }
  0xd0   :  { %2525 = vmatprep.mubr.msk.f32.mxu1 %vm2901_vm0, %v2900_v0 }
  0xd1   :  { %2347 = vmatmul.mubr.f32.gmra.mxu0 %v74_v42 }
  0xd2   :  { %2349 = vmatprep.mubr.msk.f32.mxu0 %vm2901_vm0, %v2900_v0 }
  0xd3   :  { %2526 = vmatmul.mubr.f32.gmra.mxu1 %v1818_v43  ;;  %v1879_v43 = vld [vmem:[%s4753_s0 + $0x4d0] sm:$0xff] }
  0xd4   :  { %2528 = vmatprep.mubr.msk.f32.mxu1 %vm2901_vm0, %v2900_v0 }
  0xd5   :  { %2350 = vmatmul.mubr.f32.gmra.mxu0 %v75_v44 }
  0xd6   :  { %2352 = vmatprep.mubr.msk.f32.mxu0 %vm2901_vm0, %v2900_v0 }
  0xd7   :  { %2529 = vmatmul.mubr.f32.gmra.mxu1 %v1819_v45 }
  0xd8   :  { %2531 = vmatprep.mubr.msk.f32.mxu1 %vm2901_vm0, %v2900_v0 }
  0xd9   :  { %2353 = vmatmul.mubr.f32.gmra.mxu0 %v76_v46  ;;  %v1831_v46 = vld [vmem:[%s4753_s0 + $0x350] sm:$0xff] }
  0xda   :  { %2355 = vmatprep.mubr.msk.f32.mxu0 %vm2901_vm0, %v2900_v0 }
  0xdb   :  { %2532 = vmatmul.mubr.f32.gmra.mxu1 %v1820_v47 }
  0xdc   :  { %2534 = vmatprep.mubr.msk.f32.mxu1 %vm2901_vm0, %v2900_v0 }
  0xdd   :  { %2356 = vmatmul.mubr.f32.gmra.mxu0 %v77_v48 }
  0xde   :  { %2358 = vmatprep.mubr.msk.f32.mxu0 %vm2901_vm0, %v2900_v0 }
  0xdf   :  { %2535 = vmatmul.mubr.f32.gmra.mxu1 %v1821_v49 }
  0xe0   :  { %2537 = vmatprep.mubr.msk.f32.mxu1 %vm2901_vm0, %v2900_v0 }
  0xe1   :  { %v3620_v52 = vpop.f32.mrf.mxu0  ;;  %2359 = vmatmul.mubr.f32.gmra.mxu0 %v78_v50  ;;  %v1880_v50 = vld [vmem:[%s4753_s0 + $0x4d8] sm:$0xff] }
  0xe2   :  { %2572 = vmatprep.mubr.msk.f32.mxu0 %vm2901_vm0, %v2900_v0 }
  0xe3   :  { %v3627_v54 = vpop.f32.mrf.mxu1  ;;  %2538 = vmatmul.mubr.f32.gmra.mxu1 %v1822_v51  ;;  %v2216_v55 = vpop.f32.mrf.mxu0 }
  0xe4   :  { %2751 = vmatprep.mubr.msk.f32.mxu1 %vm2901_vm0, %v2900_v0  ;;  %v1832_v55 = vld [vmem:[%s4753_s0 + $0x358] sm:$0xff] }
  0xe5   :  { %v2395_v58 = vpop.f32.mrf.mxu1  ;;  %v3636_v59 = vpop.f32.mrf.mxu0  ;;  %2573 = vmatmul.mubr.f32.vlgmr.msra.gmra.mxu0 %v1823_v53 }
  0xe6   :  { %2575 = vmatprep.mubr.msk.f32.mxu0 %vm2901_vm0, %v2900_v0 }
  0xe7   :  { %v3643_v61 = vpop.f32.mrf.mxu1  ;;  %2752 = vmatmul.mubr.f32.vlgmr.msra.gmra.mxu1 %v1872_v57  ;;  %v2219_v62 = vpop.f32.mrf.mxu0 }
  0xe8   :  { %2754 = vmatprep.mubr.msk.f32.mxu1 %vm2901_vm0, %v2900_v0  ;;  %v1881_v62 = vld [vmem:[%s4753_s0 + $0x4e0] sm:$0xff] }
  0xe9   :  { %v2398_v2 = vpop.f32.mrf.mxu1  ;;  %v3652_v3 = vpop.f32.mrf.mxu0  ;;  %2576 = vmatmul.mubr.f32.gmra.mxu0 %v1824_v60 }
  0xea   :  { %2578 = vmatprep.mubr.msk.f32.mxu0 %vm2901_vm0, %v2900_v0 }
  0xeb   :  { %v3659_v5 = vpop.f32.mrf.mxu1  ;;  %2755 = vmatmul.mubr.f32.gmra.mxu1 %v1873_v1  ;;  %v2222_v6 = vpop.f32.mrf.mxu0 }
  0xec   :  { %2757 = vmatprep.mubr.msk.f32.mxu1 %vm2901_vm0, %v2900_v0 }
  0xed   :  { %v2401_v9 = vpop.f32.mrf.mxu1  ;;  %v3668_v10 = vpop.f32.mrf.mxu0  ;;  %2579 = vmatmul.mubr.f32.gmra.mxu0 %v1825_v4  ;;  %v1833_v4 = vld [vmem:[%s4753_s0 + $0x360] sm:$0xff] }
  0xee   :  { %2581 = vmatprep.mubr.msk.f32.mxu0 %vm2901_vm0, %v2900_v0 }
  0xef   :  { %v3675_v12 = vpop.f32.mrf.mxu1  ;;  %2758 = vmatmul.mubr.f32.gmra.mxu1 %v1874_v8  ;;  %v2225_v13 = vpop.f32.mrf.mxu0 }
  0xf0   :  { %2760 = vmatprep.mubr.msk.f32.mxu1 %vm2901_vm0, %v2900_v0 }
  0xf1   :  { %v2404_v16 = vpop.f32.mrf.mxu1  ;;  %v3684_v17 = vpop.f32.mrf.mxu0  ;;  %2582 = vmatmul.mubr.f32.gmra.mxu0 %v1826_v11  ;;  %v1882_v11 = vld [vmem:[%s4753_s0 + $0x4e8] sm:$0xff] }
  0xf2   :  { %2584 = vmatprep.mubr.msk.f32.mxu0 %vm2901_vm0, %v2900_v0  ;;  %v1834_v16 = vld [vmem:[%s4753_s0 + $0x368] sm:$0xff] }
  0xf3   :  { %v3691_v19 = vpop.f32.mrf.mxu1  ;;  %2761 = vmatmul.mubr.f32.gmra.mxu1 %v1875_v15  ;;  %v2228_v20 = vpop.f32.mrf.mxu0 }
  0xf4   :  { %2763 = vmatprep.mubr.msk.f32.mxu1 %vm2901_vm0, %v2900_v0 }
  0xf5   :  { %v2407_v23 = vpop.f32.mrf.mxu1  ;;  %v3700_v24 = vpop.f32.mrf.mxu0  ;;  %2585 = vmatmul.mubr.f32.gmra.mxu0 %v1827_v18 }
  0xf6   :  { %2587 = vmatprep.mubr.msk.f32.mxu0 %vm2901_vm0, %v2900_v0  ;;  %v1883_v23 = vld [vmem:[%s4753_s0 + $0x4f0] sm:$0xff] }
  0xf7   :  { %v3707_v26 = vpop.f32.mrf.mxu1  ;;  %2764 = vmatmul.mubr.f32.gmra.mxu1 %v1876_v22  ;;  %v2231_v27 = vpop.f32.mrf.mxu0 }
  0xf8   :  { %2766 = vmatprep.mubr.msk.f32.mxu1 %vm2901_vm0, %v2900_v0 }
  0xf9   :  { %v2410_v30 = vpop.f32.mrf.mxu1  ;;  %v3716_v31 = vpop.f32.mrf.mxu0  ;;  %2588 = vmatmul.mubr.f32.gmra.mxu0 %v1828_v25 }
  0xfa   :  { %2590 = vmatprep.mubr.msk.f32.mxu0 %vm2901_vm0, %v2900_v0 }
  0xfb   :  { %v3723_v33 = vpop.f32.mrf.mxu1  ;;  %2767 = vmatmul.mubr.f32.gmra.mxu1 %v1877_v29  ;;  %v2234_v34 = vpop.f32.mrf.mxu0  ;;  %v1835_v29 = vld [vmem:[%s4753_s0 + $0x370] sm:$0xff] }
  0xfc   :  { %2769 = vmatprep.mubr.msk.f32.mxu1 %vm2901_vm0, %v2900_v0 }
  0xfd   :  { %v2413_v37 = vpop.f32.mrf.mxu1  ;;  %v3732_v38 = vpop.f32.mrf.mxu0  ;;  %2591 = vmatmul.mubr.f32.gmra.mxu0 %v1829_v32 }
  0xfe   :  { %2593 = vmatprep.mubr.msk.f32.mxu0 %vm2901_vm0, %v2900_v0 }
  0xff   :  { %v3739_v40 = vpop.f32.mrf.mxu1  ;;  %2770 = vmatmul.mubr.f32.gmra.mxu1 %v1878_v36  ;;  %v2237_v41 = vpop.f32.mrf.mxu0  ;;  %v1884_v36 = vld [vmem:[%s4753_s0 + $0x4f8] sm:$0xff] }
 0x100   :  { %2772 = vmatprep.mubr.msk.f32.mxu1 %vm2901_vm0, %v2900_v0  ;;  %v1836_v41 = vld [vmem:[%s4753_s0 + $0x378] sm:$0xff] }
 0x101   :  { %v2416_v44 = vpop.f32.mrf.mxu1  ;;  %v3748_v45 = vpop.f32.mrf.mxu0  ;;  %2594 = vmatmul.mubr.f32.gmra.mxu0 %v1830_v39 }
 0x102   :  { %2596 = vmatprep.mubr.msk.f32.mxu0 %vm2901_vm0, %v2900_v0 }
 0x103   :  { %v3755_v47 = vpop.f32.mrf.mxu1  ;;  %2773 = vmatmul.mubr.f32.gmra.mxu1 %v1879_v43  ;;  %v2240_v48 = vpop.f32.mrf.mxu0 }
 0x104   :  { %2775 = vmatprep.mubr.msk.f32.mxu1 %vm2901_vm0, %v2900_v0  ;;  %v1885_v48 = vld [vmem:[%s4753_s0 + $0x500] sm:$0xff] }
 0x105   :  { %v2419_v51 = vpop.f32.mrf.mxu1  ;;  %v3764_v53 = vpop.f32.mrf.mxu0  ;;  %2597 = vmatmul.mubr.f32.gmra.mxu0 %v1831_v46 }
 0x106   :  { %2599 = vmatprep.mubr.msk.f32.mxu0 %vm2901_vm0, %v2900_v0 }
 0x107   :  { %v3771_v57 = vpop.f32.mrf.mxu1  ;;  %2776 = vmatmul.mubr.f32.gmra.mxu1 %v1880_v50  ;;  %v2243_v58 = vpop.f32.mrf.mxu0 }
 0x108   :  { %2778 = vmatprep.mubr.msk.f32.mxu1 %vm2901_vm0, %v2900_v0 }
 0x109   :  { %v2422_v1 = vpop.f32.mrf.mxu1  ;;  %v3780_v2 = vpop.f32.mrf.mxu0  ;;  %2600 = vmatmul.mubr.f32.gmra.mxu0 %v1832_v55  ;;  %v1837_v55 = vld [vmem:[%s4753_s0 + $0x380] sm:$0xff] }
 0x10a   :  { %2602 = vmatprep.mubr.msk.f32.mxu0 %vm2901_vm0, %v2900_v0 }
 0x10b   :  { %v3787_v6 = vpop.f32.mrf.mxu1  ;;  %2779 = vmatmul.mubr.f32.gmra.mxu1 %v1881_v62  ;;  %v2246_v8 = vpop.f32.mrf.mxu0 }
 0x10c   :  { %2781 = vmatprep.mubr.msk.f32.mxu1 %vm2901_vm0, %v2900_v0 }
 0x10d   :  { %v2425_v13 = vpop.f32.mrf.mxu1  ;;  %v3796_v15 = vpop.f32.mrf.mxu0  ;;  %2603 = vmatmul.mubr.f32.gmra.mxu0 %v1833_v4  ;;  %v1886_v4 = vld [vmem:[%s4753_s0 + $0x508] sm:$0xff] }
 0x10e   :  { %2605 = vmatprep.mubr.msk.f32.mxu0 %vm2901_vm0, %v2900_v0  ;;  %v1838_v13 = vld [vmem:[%s4753_s0 + $0x388] sm:$0xff] }
 0x10f   :  { %v3803_v18 = vpop.f32.mrf.mxu1  ;;  %2782 = vmatmul.mubr.f32.gmra.mxu1 %v1882_v11  ;;  %v2249_v20 = vpop.f32.mrf.mxu0 }
 0x110   :  { %2784 = vmatprep.mubr.msk.f32.mxu1 %vm2901_vm0, %v2900_v0 }
 0x111   :  { %v2428_v25 = vpop.f32.mrf.mxu1  ;;  %v3812_v27 = vpop.f32.mrf.mxu0  ;;  %2606 = vmatmul.mubr.f32.gmra.mxu0 %v1834_v16 }
 0x112   :  { %2608 = vmatprep.mubr.msk.f32.mxu0 %vm2901_vm0, %v2900_v0  ;;  %v1887_v25 = vld [vmem:[%s4753_s0 + $0x510] sm:$0xff] }
 0x113   :  { %v3819_v30 = vpop.f32.mrf.mxu1  ;;  %2785 = vmatmul.mubr.f32.gmra.mxu1 %v1883_v23  ;;  %v2252_v32 = vpop.f32.mrf.mxu0 }
 0x114   :  { %2787 = vmatprep.mubr.msk.f32.mxu1 %vm2901_vm0, %v2900_v0 }
 0x115   :  { %v2431_v37 = vpop.f32.mrf.mxu1  ;;  %v3828_v39 = vpop.f32.mrf.mxu0  ;;  %2609 = vmatmul.mubr.f32.gmra.mxu0 %v1835_v29 }
 0x116   :  { %2611 = vmatprep.mubr.msk.f32.mxu0 %vm2901_vm0, %v2900_v0 }
 0x117   :  { %v3835_v43 = vpop.f32.mrf.mxu1  ;;  %2788 = vmatmul.mubr.f32.gmra.mxu1 %v1884_v36  ;;  %v2255_v44 = vpop.f32.mrf.mxu0  ;;  %v1839_v36 = vld [vmem:[%s4753_s0 + $0x390] sm:$0xff] }
 0x118   :  { %2790 = vmatprep.mubr.msk.f32.mxu1 %vm2901_vm0, %v2900_v0 }
 0x119   :  { %v2434_v50 = vpop.f32.mrf.mxu1  ;;  %v3844_v51 = vpop.f32.mrf.mxu0  ;;  %2612 = vmatmul.mubr.f32.gmra.mxu0 %v1836_v41 }
 0x11a   :  { %2614 = vmatprep.mubr.msk.f32.mxu0 %vm2901_vm0, %v2900_v0 }
 0x11b   :  { %v3851_v58 = vpop.f32.mrf.mxu1  ;;  %2791 = vmatmul.mubr.f32.gmra.mxu1 %v1885_v48  ;;  %v2258_v62 = vpop.f32.mrf.mxu0  ;;  %v1888_v48 = vld [vmem:[%s4753_s0 + $0x518] sm:$0xff] }
 0x11c   :  { %2793 = vmatprep.mubr.msk.f32.mxu1 %vm2901_vm0, %v2900_v0  ;;  %v1840_v62 = vld [vmem:[%s4753_s0 + $0x398] sm:$0xff] }
 0x11d   :  { %v2437_v8 = vpop.f32.mrf.mxu1  ;;  %v3860_v11 = vpop.f32.mrf.mxu0  ;;  %2615 = vmatmul.mubr.f32.gmra.mxu0 %v1837_v55 }
 0x11e   :  { %2617 = vmatprep.mubr.msk.f32.mxu0 %vm2901_vm0, %v2900_v0 }
 0x11f   :  { %v3867_v16 = vpop.f32.mrf.mxu1  ;;  %2794 = vmatmul.mubr.f32.gmra.mxu1 %v1886_v4  ;;  %v2261_v20 = vpop.f32.mrf.mxu0 }
 0x120   :  { %2796 = vmatprep.mubr.msk.f32.mxu1 %vm2901_vm0, %v2900_v0  ;;  %v1889_v20 = vld [vmem:[%s4753_s0 + $0x520] sm:$0xff] }
 0x121   :  { %v2440_v29 = vpop.f32.mrf.mxu1  ;;  %v3876_v32 = vpop.f32.mrf.mxu0  ;;  %2618 = vmatmul.mubr.f32.gmra.mxu0 %v1838_v13 }
 0x122   :  { %2620 = vmatprep.mubr.msk.f32.mxu0 %vm2901_vm0, %v2900_v0 }
 0x123   :  { %v3883_v37 = vpop.f32.mrf.mxu1  ;;  %2797 = vmatmul.mubr.f32.gmra.mxu1 %v1887_v25  ;;  %v2264_v41 = vpop.f32.mrf.mxu0 }
 0x124   :  { %2799 = vmatprep.mubr.msk.f32.mxu1 %vm2901_vm0, %v2900_v0 }
 0x125   :  { %v2443_v50 = vpop.f32.mrf.mxu1  ;;  %v3892_v55 = vpop.f32.mrf.mxu0  ;;  %2621 = vmatmul.mubr.f32.gmra.mxu0 %v1839_v36  ;;  %v1841_v36 = vld [vmem:[%s4753_s0 + $0x3a0] sm:$0xff] }
 0x126   :  { %2623 = vmatprep.mubr.msk.f32.mxu0 %vm2901_vm0, %v2900_v0 }
 0x127   :  { %v3899_v4 = vpop.f32.mrf.mxu1  ;;  %2800 = vmatmul.mubr.f32.gmra.mxu1 %v1888_v48  ;;  %v2267_v8 = vpop.f32.mrf.mxu0 }
 0x128   :  { %2802 = vmatprep.mubr.msk.f32.mxu1 %vm2901_vm0, %v2900_v0 }
 0x129   :  { %v2446_v25 = vpop.f32.mrf.mxu1  ;;  %v3908_v29 = vpop.f32.mrf.mxu0  ;;  %2624 = vmatmul.mubr.f32.gmra.mxu0 %v1840_v62  ;;  %v1890_v62 = vld [vmem:[%s4753_s0 + $0x528] sm:$0xff] }
 0x12a   :  { %2626 = vmatprep.mubr.msk.f32.mxu0 %vm2901_vm0, %v2900_v0 }
 0x12b   :  { %v3915_v41 = vpop.f32.mrf.mxu1  ;;  %2803 = vmatmul.mubr.f32.gmra.mxu1 %v1889_v20  ;;  %v2270_v48 = vpop.f32.mrf.mxu0  ;;  %v1842_v20 = vld [vmem:[%s4753_s0 + $0x3a8] sm:$0xff] }
 0x12c   :  { %2805 = vmatprep.mubr.msk.f32.mxu1 %vm2901_vm0, %v2900_v0 }
 0x12d   :  { %v2449_v8 = vpop.f32.mrf.mxu1  ;;  %v3924_v25 = vpop.f32.mrf.mxu0  ;;  %2627 = vmatmul.mubr.f32.gmra.mxu0 %v1841_v36  ;;  %v1891_v36 = vld [vmem:[%s4753_s0 + $0x530] sm:$0xff] }
 0x12e   :  { %2629 = vmatprep.mubr.msk.f32.mxu0 %vm2901_vm0, %v2900_v0 }
 0x12f   :  { %v3931_v48 = vpop.f32.mrf.mxu1  ;;  %2806 = vmatmul.mubr.f32.gmra.mxu1 %v1890_v62  ;;  %v2273_v50 = vpop.f32.mrf.mxu0 }
 0x130   :  { %2808 = vmatprep.mubr.msk.f32.mxu1 %vm2901_vm0, %v2900_v0  ;;  %v1843_v50 = vld [vmem:[%s4753_s0 + $0x3b0] sm:$0xff] }
 0x131   :  { %v2452_v8 = vpop.f32.mrf.mxu1  ;;  %v3940_v44 = vpop.f32.mrf.mxu0  ;;  %2630 = vmatmul.mubr.f32.gmra.mxu0 %v1842_v20  ;;  %v1892_v20 = vld [vmem:[%s4753_s0 + $0x538] sm:$0xff] }
 0x132   :  { %2632 = vmatprep.mubr.msk.f32.mxu0 %vm2901_vm0, %v2900_v0 }
 0x133   :  { %v3947_v62 = vpop.f32.mrf.mxu1  ;;  %2809 = vmatmul.mubr.f32.gmra.mxu1 %v1891_v36  ;;  %v2276_v13 = vpop.f32.mrf.mxu0 }
 0x134   :  { %2811 = vmatprep.mubr.msk.f32.mxu1 %vm2901_vm0, %v2900_v0  ;;  %v1844_v13 = vld [vmem:[%s4753_s0 + $0x3b8] sm:$0xff] }
 0x135   :  { %v2455_v8 = vpop.f32.mrf.mxu1  ;;  %v3956_v1 = vpop.f32.mrf.mxu0  ;;  %2633 = vmatmul.mubr.f32.gmra.mxu0 %v1843_v50  ;;  %v1893_v50 = vld [vmem:[%s4753_s0 + $0x540] sm:$0xff] }
 0x136   :  { %2635 = vmatprep.mubr.msk.f32.mxu0 %vm2901_vm0, %v2900_v0 }
 0x137   :  { %v3963_v36 = vpop.f32.mrf.mxu1  ;;  %2812 = vmatmul.mubr.f32.gmra.mxu1 %v1892_v20  ;;  %v2279_v23 = vpop.f32.mrf.mxu0 }
 0x138   :  { %2814 = vmatprep.mubr.msk.f32.mxu1 %vm2901_vm0, %v2900_v0  ;;  %v1845_v23 = vld [vmem:[%s4753_s0 + $0x3c0] sm:$0xff] }
 0x139   :  { %v2458_v8 = vpop.f32.mrf.mxu1  ;;  %v3972_v34 = vpop.f32.mrf.mxu0  ;;  %2636 = vmatmul.mubr.f32.gmra.mxu0 %v1844_v13  ;;  %v1894_v13 = vld [vmem:[%s4753_s0 + $0x548] sm:$0xff] }
 0x13a   :  { %2638 = vmatprep.mubr.msk.f32.mxu0 %vm2901_vm0, %v2900_v0 }
 0x13b   :  { %v3979_v20 = vpop.f32.mrf.mxu1  ;;  %2815 = vmatmul.mubr.f32.gmra.mxu1 %v1893_v50  ;;  %v2282_v46 = vpop.f32.mrf.mxu0 }
 0x13c   :  { %2817 = vmatprep.mubr.msk.f32.mxu1 %vm2901_vm0, %v2900_v0  ;;  %v1846_v46 = vld [vmem:[%s4753_s0 + $0x3c8] sm:$0xff] }
 0x13d   :  { %v2461_v8 = vpop.f32.mrf.mxu1  ;;  %v3988_v9 = vpop.f32.mrf.mxu0  ;;  %2639 = vmatmul.mubr.f32.gmra.mxu0 %v1845_v23  ;;  %v1895_v23 = vld [vmem:[%s4753_s0 + $0x550] sm:$0xff] }
 0x13e   :  { %2641 = vmatprep.mubr.msk.f32.mxu0 %vm2901_vm0, %v2900_v0 }
 0x13f   :  { %v3995_v50 = vpop.f32.mrf.mxu1  ;;  %2818 = vmatmul.mubr.f32.gmra.mxu1 %v1894_v13  ;;  %v2285_v22 = vpop.f32.mrf.mxu0 }
 0x140   :  { %2820 = vmatprep.mubr.msk.f32.mxu1 %vm2901_vm0, %v2900_v0  ;;  %v1847_v22 = vld [vmem:[%s4753_s0 + $0x3d0] sm:$0xff] }
 0x141   :  { %v2464_v8 = vpop.f32.mrf.mxu1  ;;  %v4004_v49 = vpop.f32.mrf.mxu0  ;;  %2642 = vmatmul.mubr.f32.gmra.mxu0 %v1846_v46  ;;  %v1896_v46 = vld [vmem:[%s4753_s0 + $0x558] sm:$0xff] }
 0x142   :  { %2644 = vmatprep.mubr.msk.f32.mxu0 %vm2901_vm0, %v2900_v0 }
 0x143   :  { %v4011_v13 = vpop.f32.mrf.mxu1  ;;  %2821 = vmatmul.mubr.f32.gmra.mxu1 %v1895_v23  ;;  %v2288_v60 = vpop.f32.mrf.mxu0 }
 0x144   :  { %4805 = vst [vmem:[#allocation2_spill] sm:$0xff] %v4011_v13  ;;  %2823 = vmatprep.mubr.msk.f32.mxu1 %vm2901_vm0, %v2900_v0  ;;  %v1848_v60 = vld [vmem:[%s4753_s0 + $0x3d8] sm:$0xff] }
 0x145   :  { %v2467_v8 = vpop.f32.mrf.mxu1  ;;  %v4020_v35 = vpop.f32.mrf.mxu0  ;;  %2645 = vmatmul.mubr.f32.gmra.mxu0 %v1847_v22  ;;  %v1897_v22 = vld [vmem:[%s4753_s0 + $0x560] sm:$0xff] }
 0x146   :  { %4806 = vst [vmem:[#allocation3_spill] sm:$0xff] %v4020_v35  ;;  %2647 = vmatprep.mubr.msk.f32.mxu0 %vm2901_vm0, %v2900_v0 }
 0x147   :  { %v4027_v23 = vpop.f32.mrf.mxu1  ;;  %2824 = vmatmul.mubr.f32.gmra.mxu1 %v1896_v46  ;;  %v2291_v42 = vpop.f32.mrf.mxu0 }
 0x148   :  { %4807 = vst [vmem:[#allocation4_spill] sm:$0xff] %v4027_v23  ;;  %2826 = vmatprep.mubr.msk.f32.mxu1 %vm2901_vm0, %v2900_v0  ;;  %v1849_v42 = vld [vmem:[%s4753_s0 + $0x3e0] sm:$0xff] }
 0x149   :  { %v2470_v8 = vpop.f32.mrf.mxu1  ;;  %v4036_v21 = vpop.f32.mrf.mxu0  ;;  %2648 = vmatmul.mubr.f32.gmra.mxu0 %v1848_v60  ;;  %v1898_v60 = vld [vmem:[%s4753_s0 + $0x568] sm:$0xff] }
 0x14a   :  { %4808 = vst [vmem:[#allocation5_spill] sm:$0xff] %v4036_v21  ;;  %2650 = vmatprep.mubr.msk.f32.mxu0 %vm2901_vm0, %v2900_v0 }
 0x14b   :  { %v4043_v46 = vpop.f32.mrf.mxu1  ;;  %2827 = vmatmul.mubr.f32.gmra.mxu1 %v1897_v22  ;;  %v2294_v28 = vpop.f32.mrf.mxu0 }
 0x14c   :  { %4809 = vst [vmem:[#allocation6_spill] sm:$0xff] %v4043_v46  ;;  %2829 = vmatprep.mubr.msk.f32.mxu1 %vm2901_vm0, %v2900_v0  ;;  %v1850_v28 = vld [vmem:[%s4753_s0 + $0x3e8] sm:$0xff]  ;;  %v4854_v46 = vmax.f32 %v3620_v52, %v3627_v54 }
 0x14d   :  { %v2473_v8 = vpop.f32.mrf.mxu1  ;;  %v4052_v7 = vpop.f32.mrf.mxu0  ;;  %2651 = vmatmul.mubr.f32.gmra.mxu0 %v1849_v42  ;;  %v1899_v42 = vld [vmem:[%s4753_s0 + $0x570] sm:$0xff] }
 0x14e   :  { %4810 = vst [vmem:[#allocation7_spill] sm:$0xff] %v4052_v7  ;;  %2653 = vmatprep.mubr.msk.f32.mxu0 %vm2901_vm0, %v2900_v0 }
 0x14f   :  { %v4059_v22 = vpop.f32.mrf.mxu1  ;;  %2830 = vmatmul.mubr.f32.gmra.mxu1 %v1898_v60  ;;  %v2297_v14 = vpop.f32.mrf.mxu0 }
 0x150   :  { %4811 = vst [vmem:[#allocation8_spill] sm:$0xff] %v4059_v22  ;;  %2832 = vmatprep.mubr.msk.f32.mxu1 %vm2901_vm0, %v2900_v0  ;;  %v1851_v14 = vld [vmem:[%s4753_s0 + $0x3f0] sm:$0xff] }
 0x151   :  { %v2476_v8 = vpop.f32.mrf.mxu1  ;;  %v4068_v56 = vpop.f32.mrf.mxu0  ;;  %2654 = vmatmul.mubr.f32.gmra.mxu0 %v1850_v28  ;;  %v1900_v28 = vld [vmem:[%s4753_s0 + $0x578] sm:$0xff] }
 0x152   :  { %4812 = vst [vmem:[#allocation9_spill] sm:$0xff] %v4068_v56  ;;  %2656 = vmatprep.mubr.msk.f32.mxu0 %vm2901_vm0, %v2900_v0 }
 0x153   :  { %v4075_v60 = vpop.f32.mrf.mxu1  ;;  %2833 = vmatmul.mubr.f32.gmra.mxu1 %v1899_v42  ;;  %v2300_v63 = vpop.f32.mrf.mxu0 }
 0x154   :  { %4813 = vst [vmem:[#allocation10_spill] sm:$0xff] %v4075_v60  ;;  %2835 = vmatprep.mubr.msk.f32.mxu1 %vm2901_vm0, %v2900_v0  ;;  %v1852_v63 = vld [vmem:[%s4753_s0 + $0x3f8] sm:$0xff] }
 0x155   :  { %v2479_v8 = vpop.f32.mrf.mxu1  ;;  %v4084_v7 = vpop.f32.mrf.mxu0  ;;  %2657 = vmatmul.mubr.f32.gmra.mxu0 %v1851_v14  ;;  %v1901_v14 = vld [vmem:[%s4753_s0 + $0x580] sm:$0xff] }
 0x156   :  { %4814 = vst [vmem:[#allocation11_spill] sm:$0xff] %v4084_v7  ;;  %2659 = vmatprep.mubr.msk.f32.mxu0 %vm2901_vm0, %v2900_v0 }
 0x157   :  { %v4091_v42 = vpop.f32.mrf.mxu1  ;;  %2836 = vmatmul.mubr.f32.gmra.mxu1 %v1900_v28  ;;  %v2303_v22 = vpop.f32.mrf.mxu0 }
 0x158   :  { %4815 = vst [vmem:[#allocation12_spill] sm:$0xff] %v4091_v42  ;;  %2838 = vmatprep.mubr.msk.f32.mxu1 %vm2901_vm0, %v2900_v0  ;;  %v1853_v22 = vld [vmem:[%s4753_s0 + $0x400] sm:$0xff] }
 0x159   :  { %v2482_v8 = vpop.f32.mrf.mxu1  ;;  %v4100_v56 = vpop.f32.mrf.mxu0  ;;  %2660 = vmatmul.mubr.f32.gmra.mxu0 %v1852_v63  ;;  %v1902_v63 = vld [vmem:[%s4753_s0 + $0x588] sm:$0xff] }
 0x15a   :  { %4816 = vst [vmem:[#allocation13_spill] sm:$0xff] %v4100_v56  ;;  %2662 = vmatprep.mubr.msk.f32.mxu0 %vm2901_vm0, %v2900_v0 }
 0x15b   :  { %v4107_v28 = vpop.f32.mrf.mxu1  ;;  %2839 = vmatmul.mubr.f32.gmra.mxu1 %v1901_v14  ;;  %v2306_v60 = vpop.f32.mrf.mxu0 }
 0x15c   :  { %4817 = vst [vmem:[#allocation14_spill] sm:$0xff] %v4107_v28  ;;  %2841 = vmatprep.mubr.msk.f32.mxu1 %vm2901_vm0, %v2900_v0  ;;  %v1854_v60 = vld [vmem:[%s4753_s0 + $0x408] sm:$0xff] }
 0x15d   :  { %v2485_v8 = vpop.f32.mrf.mxu1  ;;  %v4116_v7 = vpop.f32.mrf.mxu0  ;;  %2663 = vmatmul.mubr.f32.gmra.mxu0 %v1853_v22  ;;  %v1903_v22 = vld [vmem:[%s4753_s0 + $0x590] sm:$0xff] }
 0x15e   :  { %4818 = vst [vmem:[#allocation15_spill] sm:$0xff] %v4116_v7  ;;  %2665 = vmatprep.mubr.msk.f32.mxu0 %vm2901_vm0, %v2900_v0 }
 0x15f   :  { %v4123_v14 = vpop.f32.mrf.mxu1  ;;  %2842 = vmatmul.mubr.f32.gmra.mxu1 %v1902_v63  ;;  %v2309_v42 = vpop.f32.mrf.mxu0 }
 0x160   :  { %4819 = vst [vmem:[#allocation16_spill] sm:$0xff] %v4123_v14  ;;  %2844 = vmatprep.mubr.msk.f32.mxu1 %vm2901_vm0, %v2900_v0  ;;  %v1855_v42 = vld [vmem:[%s4753_s0 + $0x410] sm:$0xff] }
 0x161   :  { %v2488_v8 = vpop.f32.mrf.mxu1  ;;  %v4132_v56 = vpop.f32.mrf.mxu0  ;;  %2666 = vmatmul.mubr.f32.gmra.mxu0 %v1854_v60  ;;  %v1904_v60 = vld [vmem:[%s4753_s0 + $0x598] sm:$0xff] }
 0x162   :  { %4820 = vst [vmem:[#allocation17_spill] sm:$0xff] %v4132_v56  ;;  %2668 = vmatprep.mubr.msk.f32.mxu0 %vm2901_vm0, %v2900_v0 }
 0x163   :  { %v4139_v63 = vpop.f32.mrf.mxu1  ;;  %2845 = vmatmul.mubr.f32.gmra.mxu1 %v1903_v22  ;;  %v2312_v28 = vpop.f32.mrf.mxu0 }
 0x164   :  { %4821 = vst [vmem:[#allocation18_spill] sm:$0xff] %v4139_v63  ;;  %2847 = vmatprep.mubr.msk.f32.mxu1 %vm2901_vm0, %v2900_v0  ;;  %v1856_v28 = vld [vmem:[%s4753_s0 + $0x418] sm:$0xff] }
 0x165   :  { %v2491_v8 = vpop.f32.mrf.mxu1  ;;  %v4148_v7 = vpop.f32.mrf.mxu0  ;;  %2669 = vmatmul.mubr.f32.gmra.mxu0 %v1855_v42  ;;  %v1905_v42 = vld [vmem:[%s4753_s0 + $0x5a0] sm:$0xff] }
 0x166   :  { %4822 = vst [vmem:[#allocation19_spill] sm:$0xff] %v4148_v7  ;;  %2671 = vmatprep.mubr.msk.f32.mxu0 %vm2901_vm0, %v2900_v0 }
 0x167   :  { %v4155_v22 = vpop.f32.mrf.mxu1  ;;  %2848 = vmatmul.mubr.f32.gmra.mxu1 %v1904_v60  ;;  %v2315_v14 = vpop.f32.mrf.mxu0 }
 0x168   :  { %4823 = vst [vmem:[#allocation20_spill] sm:$0xff] %v4155_v22  ;;  %2850 = vmatprep.mubr.msk.f32.mxu1 %vm2901_vm0, %v2900_v0  ;;  %v1857_v14 = vld [vmem:[%s4753_s0 + $0x420] sm:$0xff] }
 0x169   :  { %v2494_v8 = vpop.f32.mrf.mxu1  ;;  %v4164_v56 = vpop.f32.mrf.mxu0  ;;  %2672 = vmatmul.mubr.f32.gmra.mxu0 %v1856_v28  ;;  %v1906_v28 = vld [vmem:[%s4753_s0 + $0x5a8] sm:$0xff] }
 0x16a   :  { %4824 = vst [vmem:[#allocation21_spill] sm:$0xff] %v4164_v56  ;;  %2674 = vmatprep.mubr.msk.f32.mxu0 %vm2901_vm0, %v2900_v0 }
 0x16b   :  { %v4171_v60 = vpop.f32.mrf.mxu1  ;;  %2851 = vmatmul.mubr.f32.gmra.mxu1 %v1905_v42  ;;  %v2318_v63 = vpop.f32.mrf.mxu0 }
 0x16c   :  { %4825 = vst [vmem:[#allocation22_spill] sm:$0xff] %v4171_v60  ;;  %2853 = vmatprep.mubr.msk.f32.mxu1 %vm2901_vm0, %v2900_v0  ;;  %v1858_v63 = vld [vmem:[%s4753_s0 + $0x428] sm:$0xff] }
 0x16d   :  { %v2497_v8 = vpop.f32.mrf.mxu1  ;;  %v4180_v7 = vpop.f32.mrf.mxu0  ;;  %2675 = vmatmul.mubr.f32.gmra.mxu0 %v1857_v14  ;;  %v1907_v14 = vld [vmem:[%s4753_s0 + $0x5b0] sm:$0xff] }
 0x16e   :  { %4826 = vst [vmem:[#allocation23_spill] sm:$0xff] %v4180_v7  ;;  %2677 = vmatprep.mubr.msk.f32.mxu0 %vm2901_vm0, %v2900_v0 }
 0x16f   :  { %v4187_v42 = vpop.f32.mrf.mxu1  ;;  %2854 = vmatmul.mubr.f32.gmra.mxu1 %v1906_v28  ;;  %v2321_v22 = vpop.f32.mrf.mxu0 }
 0x170   :  { %4827 = vst [vmem:[#allocation24_spill] sm:$0xff] %v4187_v42  ;;  %2856 = vmatprep.mubr.msk.f32.mxu1 %vm2901_vm0, %v2900_v0  ;;  %v1859_v22 = vld [vmem:[%s4753_s0 + $0x430] sm:$0xff] }
 0x171   :  { %v2500_v8 = vpop.f32.mrf.mxu1  ;;  %v4196_v56 = vpop.f32.mrf.mxu0  ;;  %2678 = vmatmul.mubr.f32.gmra.mxu0 %v1858_v63  ;;  %v1908_v63 = vld [vmem:[%s4753_s0 + $0x5b8] sm:$0xff] }
 0x172   :  { %4828 = vst [vmem:[#allocation25_spill] sm:$0xff] %v4196_v56  ;;  %2680 = vmatprep.mubr.msk.f32.mxu0 %vm2901_vm0, %v2900_v0 }
 0x173   :  { %v4203_v28 = vpop.f32.mrf.mxu1  ;;  %2857 = vmatmul.mubr.f32.gmra.mxu1 %v1907_v14  ;;  %v2324_v60 = vpop.f32.mrf.mxu0 }
 0x174   :  { %4829 = vst [vmem:[#allocation26_spill] sm:$0xff] %v4203_v28  ;;  %2859 = vmatprep.mubr.msk.f32.mxu1 %vm2901_vm0, %v2900_v0  ;;  %v1860_v60 = vld [vmem:[%s4753_s0 + $0x438] sm:$0xff] }
 0x175   :  { %v2503_v8 = vpop.f32.mrf.mxu1  ;;  %v4212_v7 = vpop.f32.mrf.mxu0  ;;  %2681 = vmatmul.mubr.f32.gmra.mxu0 %v1859_v22  ;;  %v1909_v22 = vld [vmem:[%s4753_s0 + $0x5c0] sm:$0xff] }
 0x176   :  { %4830 = vst [vmem:[#allocation27_spill] sm:$0xff] %v4212_v7  ;;  %2683 = vmatprep.mubr.msk.f32.mxu0 %vm2901_vm0, %v2900_v0 }
 0x177   :  { %v4219_v14 = vpop.f32.mrf.mxu1  ;;  %2860 = vmatmul.mubr.f32.gmra.mxu1 %v1908_v63  ;;  %v2327_v42 = vpop.f32.mrf.mxu0 }
 0x178   :  { %4831 = vst [vmem:[#allocation28_spill] sm:$0xff] %v4219_v14  ;;  %2862 = vmatprep.mubr.msk.f32.mxu1 %vm2901_vm0, %v2900_v0  ;;  %v1861_v42 = vld [vmem:[%s4753_s0 + $0x440] sm:$0xff] }
 0x179   :  { %v2506_v8 = vpop.f32.mrf.mxu1  ;;  %v4228_v56 = vpop.f32.mrf.mxu0  ;;  %2684 = vmatmul.mubr.f32.gmra.mxu0 %v1860_v60  ;;  %v1910_v60 = vld [vmem:[%s4753_s0 + $0x5c8] sm:$0xff] }
 0x17a   :  { %4832 = vst [vmem:[#allocation29_spill] sm:$0xff] %v4228_v56  ;;  %2686 = vmatprep.mubr.msk.f32.mxu0 %vm2901_vm0, %v2900_v0 }
 0x17b   :  { %v4235_v63 = vpop.f32.mrf.mxu1  ;;  %2863 = vmatmul.mubr.f32.gmra.mxu1 %v1909_v22  ;;  %v2330_v28 = vpop.f32.mrf.mxu0 }
 0x17c   :  { %4833 = vst [vmem:[#allocation30_spill] sm:$0xff] %v4235_v63  ;;  %2865 = vmatprep.mubr.msk.f32.mxu1 %vm2901_vm0, %v2900_v0  ;;  %v1862_v28 = vld [vmem:[%s4753_s0 + $0x448] sm:$0xff] }
 0x17d   :  { %v2509_v8 = vpop.f32.mrf.mxu1  ;;  %v4244_v7 = vpop.f32.mrf.mxu0  ;;  %2687 = vmatmul.mubr.f32.gmra.mxu0 %v1861_v42  ;;  %v1911_v42 = vld [vmem:[%s4753_s0 + $0x5d0] sm:$0xff] }
 0x17e   :  { %4834 = vst [vmem:[#allocation31_spill] sm:$0xff] %v4244_v7  ;;  %2689 = vmatprep.mubr.msk.f32.mxu0 %vm2901_vm0, %v2900_v0 }
 0x17f   :  { %v4251_v22 = vpop.f32.mrf.mxu1  ;;  %2866 = vmatmul.mubr.f32.gmra.mxu1 %v1910_v60  ;;  %v2333_v14 = vpop.f32.mrf.mxu0 }
 0x180   :  { %4835 = vst [vmem:[#allocation32_spill] sm:$0xff] %v4251_v22  ;;  %2868 = vmatprep.mubr.msk.f32.mxu1 %vm2901_vm0, %v2900_v0  ;;  %v1863_v14 = vld [vmem:[%s4753_s0 + $0x450] sm:$0xff] }
 0x181   :  { %v2512_v8 = vpop.f32.mrf.mxu1  ;;  %v4260_v56 = vpop.f32.mrf.mxu0  ;;  %2690 = vmatmul.mubr.f32.gmra.mxu0 %v1862_v28  ;;  %v1912_v28 = vld [vmem:[%s4753_s0 + $0x5d8] sm:$0xff] }
 0x182   :  { %4836 = vst [vmem:[#allocation33_spill] sm:$0xff] %v4260_v56  ;;  %2692 = vmatprep.mubr.msk.f32.mxu0 %vm2901_vm0, %v2900_v0 }
 0x183   :  { %v4267_v60 = vpop.f32.mrf.mxu1  ;;  %2869 = vmatmul.mubr.f32.gmra.mxu1 %v1911_v42  ;;  %v2336_v63 = vpop.f32.mrf.mxu0 }
 0x184   :  { %4837 = vst [vmem:[#allocation34_spill] sm:$0xff] %v4267_v60  ;;  %2871 = vmatprep.mubr.msk.f32.mxu1 %vm2901_vm0, %v2900_v0  ;;  %v1864_v63 = vld [vmem:[%s4753_s0 + $0x458] sm:$0xff] }
 0x185   :  { %v2515_v8 = vpop.f32.mrf.mxu1  ;;  %v4276_v7 = vpop.f32.mrf.mxu0  ;;  %2693 = vmatmul.mubr.f32.gmra.mxu0 %v1863_v14  ;;  %v1913_v14 = vld [vmem:[%s4753_s0 + $0x5e0] sm:$0xff] }
 0x186   :  { %4838 = vst [vmem:[#allocation35_spill] sm:$0xff] %v4276_v7  ;;  %2695 = vmatprep.mubr.msk.f32.mxu0 %vm2901_vm0, %v2900_v0 }
 0x187   :  { %v4283_v42 = vpop.f32.mrf.mxu1  ;;  %2872 = vmatmul.mubr.f32.gmra.mxu1 %v1912_v28  ;;  %v2339_v22 = vpop.f32.mrf.mxu0 }
 0x188   :  { %4839 = vst [vmem:[#allocation36_spill] sm:$0xff] %v4283_v42  ;;  %2874 = vmatprep.mubr.msk.f32.mxu1 %vm2901_vm0, %v2900_v0  ;;  %v1865_v22 = vld [vmem:[%s4753_s0 + $0x460] sm:$0xff] }
 0x189   :  { %v2518_v8 = vpop.f32.mrf.mxu1  ;;  %v4292_v56 = vpop.f32.mrf.mxu0  ;;  %2696 = vmatmul.mubr.f32.gmra.mxu0 %v1864_v63  ;;  %v1914_v63 = vld [vmem:[%s4753_s0 + $0x5e8] sm:$0xff] }
 0x18a   :  { %4840 = vst [vmem:[#allocation37_spill] sm:$0xff] %v4292_v56  ;;  %2698 = vmatprep.mubr.msk.f32.mxu0 %vm2901_vm0, %v2900_v0 }
 0x18b   :  { %v4299_v28 = vpop.f32.mrf.mxu1  ;;  %2875 = vmatmul.mubr.f32.gmra.mxu1 %v1913_v14  ;;  %v2342_v60 = vpop.f32.mrf.mxu0 }
 0x18c   :  { %4841 = vst [vmem:[#allocation38_spill] sm:$0xff] %v4299_v28  ;;  %2877 = vmatprep.mubr.msk.f32.mxu1 %vm2901_vm0, %v2900_v0  ;;  %v1866_v60 = vld [vmem:[%s4753_s0 + $0x468] sm:$0xff] }
 0x18d   :  { %v2521_v8 = vpop.f32.mrf.mxu1  ;;  %v4308_v7 = vpop.f32.mrf.mxu0  ;;  %2699 = vmatmul.mubr.f32.gmra.mxu0 %v1865_v22  ;;  %v1915_v22 = vld [vmem:[%s4753_s0 + $0x5f0] sm:$0xff] }
 0x18e   :  { %4842 = vst [vmem:[#allocation39_spill] sm:$0xff] %v4308_v7  ;;  %2701 = vmatprep.mubr.msk.f32.mxu0 %vm2901_vm0, %v2900_v0 }
 0x18f   :  { %v4315_v14 = vpop.f32.mrf.mxu1  ;;  %2878 = vmatmul.mubr.f32.gmra.mxu1 %v1914_v63  ;;  %v2345_v42 = vpop.f32.mrf.mxu0 }
 0x190   :  { %4843 = vst [vmem:[#allocation40_spill] sm:$0xff] %v4315_v14  ;;  %2880 = vmatprep.mubr.msk.f32.mxu1 %vm2901_vm0, %v2900_v0  ;;  %v1867_v42 = vld [vmem:[%s4753_s0 + $0x470] sm:$0xff] }
 0x191   :  { %v2524_v8 = vpop.f32.mrf.mxu1  ;;  %v4324_v56 = vpop.f32.mrf.mxu0  ;;  %2702 = vmatmul.mubr.f32.gmra.mxu0 %v1866_v60  ;;  %v1916_v60 = vld [vmem:[%s4753_s0 + $0x5f8] sm:$0xff] }
 0x192   :  { %4844 = vst [vmem:[#allocation41_spill] sm:$0xff] %v4324_v56  ;;  %2704 = vmatprep.mubr.msk.f32.mxu0 %vm2901_vm0, %v2900_v0 }
 0x193   :  { %v4331_v63 = vpop.f32.mrf.mxu1  ;;  %2881 = vmatmul.mubr.f32.gmra.mxu1 %v1915_v22  ;;  %v2348_v28 = vpop.f32.mrf.mxu0 }
 0x194   :  { %4845 = vst [vmem:[#allocation42_spill] sm:$0xff] %v4331_v63  ;;  %2883 = vmatprep.mubr.msk.f32.mxu1 %vm2901_vm0, %v2900_v0  ;;  %v1868_v28 = vld [vmem:[%s4753_s0 + $0x478] sm:$0xff] }
 0x195   :  { %v2527_v8 = vpop.f32.mrf.mxu1  ;;  %v4340_v7 = vpop.f32.mrf.mxu0  ;;  %2705 = vmatmul.mubr.f32.gmra.mxu0 %v1867_v42  ;;  %v1917_v42 = vld [vmem:[%s4753_s0 + $0x600] sm:$0xff] }
 0x196   :  { %4846 = vst [vmem:[#allocation43_spill] sm:$0xff] %v4340_v7  ;;  %2707 = vmatprep.mubr.msk.f32.mxu0 %vm2901_vm0, %v2900_v0 }
 0x197   :  { %v4347_v22 = vpop.f32.mrf.mxu1  ;;  %2884 = vmatmul.mubr.f32.gmra.mxu1 %v1916_v60  ;;  %v2351_v14 = vpop.f32.mrf.mxu0 }
 0x198   :  { %4847 = vst [vmem:[#allocation44_spill] sm:$0xff] %v4347_v22  ;;  %2886 = vmatprep.mubr.msk.f32.mxu1 %vm2901_vm0, %v2900_v0  ;;  %v1869_v14 = vld [vmem:[%s4753_s0 + $0x480] sm:$0xff] }
 0x199   :  { %v2530_v8 = vpop.f32.mrf.mxu1  ;;  %v4356_v56 = vpop.f32.mrf.mxu0  ;;  %2708 = vmatmul.mubr.f32.gmra.mxu0 %v1868_v28  ;;  %v1918_v28 = vld [vmem:[%s4753_s0 + $0x608] sm:$0xff] }
 0x19a   :  { %4848 = vst [vmem:[#allocation45_spill] sm:$0xff] %v4356_v56  ;;  %2710 = vmatprep.mubr.msk.f32.mxu0 %vm2901_vm0, %v2900_v0 }
 0x19b   :  { %v4363_v60 = vpop.f32.mrf.mxu1  ;;  %2887 = vmatmul.mubr.f32.gmra.mxu1 %v1917_v42  ;;  %v2354_v63 = vpop.f32.mrf.mxu0 }
 0x19c   :  { %4849 = vst [vmem:[#allocation46_spill] sm:$0xff] %v4363_v60  ;;  %2889 = vmatprep.mubr.msk.f32.mxu1 %vm2901_vm0, %v2900_v0  ;;  %v1870_v63 = vld [vmem:[%s4753_s0 + $0x488] sm:$0xff] }
 0x19d   :  { %v2533_v8 = vpop.f32.mrf.mxu1  ;;  %v4372_v7 = vpop.f32.mrf.mxu0  ;;  %2711 = vmatmul.mubr.f32.gmra.mxu0 %v1869_v14  ;;  %v1919_v14 = vld [vmem:[%s4753_s0 + $0x610] sm:$0xff] }
 0x19e   :  { %4850 = vst [vmem:[#allocation47_spill] sm:$0xff] %v4372_v7  ;;  %2713 = vmatprep.mubr.msk.f32.mxu0 %vm2901_vm0, %v2900_v0 }
 0x19f   :  { %v4379_v42 = vpop.f32.mrf.mxu1  ;;  %2890 = vmatmul.mubr.f32.gmra.mxu1 %v1918_v28  ;;  %v2357_v22 = vpop.f32.mrf.mxu0 }
 0x1a0   :  { %4851 = vst [vmem:[#allocation48_spill] sm:$0xff] %v4379_v42  ;;  %2892 = vmatprep.mubr.msk.f32.mxu1 %vm2901_vm0, %v2900_v0  ;;  %v1871_v22 = vld [vmem:[%s4753_s0 + $0x490] sm:$0xff] }
 0x1a1   :  { %v2536_v8 = vpop.f32.mrf.mxu1  ;;  %v4388_v56 = vpop.f32.mrf.mxu0  ;;  %2714 = vmatmul.mubr.f32.gmra.mxu0 %v1870_v63  ;;  %v1920_v63 = vld [vmem:[%s4753_s0 + $0x618] sm:$0xff] }
 0x1a2   :  { %4852 = vst [vmem:[#allocation49_spill] sm:$0xff] %v4388_v56  ;;  %2716 = vmatprep.mubr.msk.f32.mxu0 %vm2901_vm0, %v2900_v0 }
 0x1a3   :  { %v4395_v28 = vpop.f32.mrf.mxu1  ;;  %2893 = vmatmul.mubr.f32.gmra.mxu1 %v1919_v14  ;;  %v2360_v60 = vpop.f32.mrf.mxu0 }
 0x1a4   :  { %4853 = vst [vmem:[#allocation50_spill] sm:$0xff] %v4395_v28  ;;  %2895 = vmatprep.mubr.msk.f32.mxu1 %vm2901_vm0, %v2900_v0  ;;  %v4410_v60 = vld [vmem:[%s4754_s2] ss:$0 sm:$0xff] }
 0x1a5   :  { %v2539_v8 = vpop.f32.mrf.mxu1  ;;  %v914_v7 = vpop.f32.mrf.mxu0  ;;  %2717 = vmatmul.mubr.f32.gmra.mxu0 %v1871_v22  ;;  %v4855_v22 = vmax.f32 %v3636_v59, %v3643_v61 }
 0x1a6   :  { %v1158_v21 = vmax.f32 %v4854_v46, %v914_v7 }
 0x1a7   :  { %v1323_v23 = vpop.f32.mrf.mxu1  ;;  %2896 = vmatmul.mubr.f32.gmra.mxu1 %v1920_v63  ;;  %v2574_v14 = vpop.f32.mrf.mxu0 }
 0x1a8   :  { %v1567_v0 = vmax.f32 %v1158_v21, %v1323_v23  ;;  %v4856_v23 = vmax.f32 %v3652_v3, %v3659_v5 }
 0x1a9   :  { %v2753_v42 = vpop.f32.mrf.mxu1  ;;  %v919_v28 = vpop.f32.mrf.mxu0 }
 0x1aa   :  { %v1623_v56 = vadd.f32 %v4410_v60, %v1567_v0  ;;  %v1159_v8 = vmax.f32 %v4855_v22, %v919_v28 }
 0x1ab   :  { %v1328_v35 = vpop.f32.mrf.mxu1  ;;  %v2577_v52 = vpop.f32.mrf.mxu0 }
 0x1ac   :  { %v1672_v54 = vmax.f32 %v1623_v56, 0.0  ;;  %v1568_v7 = vmax.f32 %v1159_v8, %v1328_v35  ;;  %v4857_v35 = vmax.f32 %v3668_v10, %v3675_v12 }
 0x1ad   :  { %v2756_v46 = vpop.f32.mrf.mxu1  ;;  %v924_v13 = vpop.f32.mrf.mxu0 }
 0x1ae   :  { %1721 = vst [vmem:[%s4755_s3] sm:$0xff] %v1672_v54  ;;  %v1624_v21 = vadd.f32 %v4410_v60, %v1568_v7  ;;  %v1160_v42 = vmax.f32 %v4856_v23, %v924_v13  ;;  %v4858_v46 = vmax.f32 %v3684_v17, %v3691_v19 }
 0x1af   :  { %v1333_v63 = vpop.f32.mrf.mxu1  ;;  %v2580_v14 = vpop.f32.mrf.mxu0 }
 0x1b0   :  { %v1673_v59 = vmax.f32 %v1624_v21, 0.0  ;;  %v1569_v61 = vmax.f32 %v1160_v42, %v1333_v63 }
 0x1b1   :  { %v2759_v28 = vpop.f32.mrf.mxu1  ;;  %v929_v0 = vpop.f32.mrf.mxu0 }
 0x1b2   :  { %1722 = vst [vmem:[%s4755_s3 + $0x8] sm:$0xff] %v1673_v59  ;;  %v1625_v56 = vadd.f32 %v4410_v60, %v1569_v61  ;;  %v1161_v22 = vmax.f32 %v4857_v35, %v929_v0  ;;  %v4859_v61 = vmax.f32 %v3700_v24, %v3707_v26 }
 0x1b3   :  { %v1338_v8 = vpop.f32.mrf.mxu1  ;;  %v2583_v52 = vpop.f32.mrf.mxu0 }
 0x1b4   :  { %v1674_v3 = vmax.f32 %v1625_v56, 0.0  ;;  %v1570_v5 = vmax.f32 %v1161_v22, %v1338_v8  ;;  %v4860_v52 = vmax.f32 %v3716_v31, %v3723_v33 }
 0x1b5   :  { %v2762_v13 = vpop.f32.mrf.mxu1  ;;  %v934_v54 = vpop.f32.mrf.mxu0 }
 0x1b6   :  { %1723 = vst [vmem:[%s4755_s3 + $0x10] sm:$0xff] %v1674_v3  ;;  %v1626_v7 = vadd.f32 %v4410_v60, %v1570_v5  ;;  %v1162_v21 = vmax.f32 %v4858_v46, %v934_v54 }
 0x1b7   :  { %v1343_v23 = vpop.f32.mrf.mxu1  ;;  %v2586_v42 = vpop.f32.mrf.mxu0 }
 0x1b8   :  { %v1675_v10 = vmax.f32 %v1626_v7, 0.0  ;;  %v1571_v12 = vmax.f32 %v1162_v21, %v1343_v23  ;;  %v4861_v21 = vmax.f32 %v3732_v38, %v3739_v40 }
 0x1b9   :  { %v2765_v63 = vpop.f32.mrf.mxu1  ;;  %v939_v14 = vpop.f32.mrf.mxu0 }
 0x1ba   :  { %1724 = vst [vmem:[%s4755_s3 + $0x18] sm:$0xff] %v1675_v10  ;;  %v1627_v59 = vadd.f32 %v4410_v60, %v1571_v12  ;;  %v1163_v28 = vmax.f32 %v4859_v61, %v939_v14 }
 0x1bb   :  { %v1348_v0 = vpop.f32.mrf.mxu1  ;;  %v2589_v56 = vpop.f32.mrf.mxu0 }
 0x1bc   :  { %v1676_v17 = vmax.f32 %v1627_v59, 0.0  ;;  %v1572_v19 = vmax.f32 %v1163_v28, %v1348_v0  ;;  %v4862_v59 = vmax.f32 %v3748_v45, %v3755_v47 }
 0x1bd   :  { %v2768_v35 = vpop.f32.mrf.mxu1  ;;  %v944_v22 = vpop.f32.mrf.mxu0 }
 0x1be   :  { %1725 = vst [vmem:[%s4755_s3 + $0x20] sm:$0xff] %v1676_v17  ;;  %v1628_v8 = vadd.f32 %v4410_v60, %v1572_v19  ;;  %v1164_v3 = vmax.f32 %v4860_v52, %v944_v22  ;;  %v4863_v35 = vmax.f32 %v3764_v53, %v3771_v57 }
 0x1bf   :  { %v1353_v5 = vpop.f32.mrf.mxu1  ;;  %v2592_v13 = vpop.f32.mrf.mxu0 }
 0x1c0   :  { %v1677_v24 = vmax.f32 %v1628_v8, 0.0  ;;  %v1573_v26 = vmax.f32 %v1164_v3, %v1353_v5 }
 0x1c1   :  { %v2771_v54 = vpop.f32.mrf.mxu1  ;;  %v949_v7 = vpop.f32.mrf.mxu0 }
 0x1c2   :  { %1726 = vst [vmem:[%s4755_s3 + $0x28] sm:$0xff] %v1677_v24  ;;  %v1629_v46 = vadd.f32 %v4410_v60, %v1573_v26  ;;  %v1165_v23 = vmax.f32 %v4861_v21, %v949_v7  ;;  %v4864_v24 = vmax.f32 %v3780_v2, %v3787_v6 }
 0x1c3   :  { %v1358_v42 = vpop.f32.mrf.mxu1  ;;  %v2595_v10 = vpop.f32.mrf.mxu0 }
 0x1c4   :  { %v1678_v31 = vmax.f32 %v1629_v46, 0.0  ;;  %v1574_v33 = vmax.f32 %v1165_v23, %v1358_v42  ;;  %v4865_v42 = vmax.f32 %v3796_v15, %v3803_v18 }
 0x1c5   :  { %v2774_v12 = vpop.f32.mrf.mxu1  ;;  %v954_v63 = vpop.f32.mrf.mxu0 }
 0x1c6   :  { %1727 = vst [vmem:[%s4755_s3 + $0x30] sm:$0xff] %v1678_v31  ;;  %v1630_v14 = vadd.f32 %v4410_v60, %v1574_v33  ;;  %v1166_v61 = vmax.f32 %v4862_v59, %v954_v63  ;;  %v4866_v59 = vmax.f32 %v3812_v27, %v3819_v30 }
 0x1c7   :  { %v1363_v28 = vpop.f32.mrf.mxu1  ;;  %v2598_v0 = vpop.f32.mrf.mxu0 }
 0x1c8   :  { %v1679_v38 = vmax.f32 %v1630_v14, 0.0  ;;  %v1575_v40 = vmax.f32 %v1166_v61, %v1363_v28 }
 0x1c9   :  { %v2777_v56 = vpop.f32.mrf.mxu1  ;;  %v959_v17 = vpop.f32.mrf.mxu0 }
 0x1ca   :  { %1728 = vst [vmem:[%s4755_s3 + $0x38] sm:$0xff] %v1679_v38  ;;  %v1631_v19 = vadd.f32 %v4410_v60, %v1575_v40  ;;  %v1167_v22 = vmax.f32 %v4863_v35, %v959_v17  ;;  %v4867_v17 = vmax.f32 %v3828_v39, %v3835_v43 }
 0x1cb   :  { %v1368_v8 = vpop.f32.mrf.mxu1  ;;  %v2601_v52 = vpop.f32.mrf.mxu0 }
 0x1cc   :  { %v1680_v45 = vmax.f32 %v1631_v19, 0.0  ;;  %v1576_v47 = vmax.f32 %v1167_v22, %v1368_v8 }
 0x1cd   :  { %v2780_v3 = vpop.f32.mrf.mxu1  ;;  %v964_v5 = vpop.f32.mrf.mxu0 }
 0x1ce   :  { %1729 = vst [vmem:[%s4755_s3 + $0x40] sm:$0xff] %v1680_v45  ;;  %v1632_v13 = vadd.f32 %v4410_v60, %v1576_v47  ;;  %v1168_v26 = vmax.f32 %v4864_v24, %v964_v5  ;;  %v4868_v47 = vmax.f32 %v3844_v51, %v3851_v58 }
 0x1cf   :  { %v1373_v54 = vpop.f32.mrf.mxu1  ;;  %v2604_v7 = vpop.f32.mrf.mxu0 }
 0x1d0   :  { %v1681_v53 = vmax.f32 %v1632_v13, 0.0  ;;  %v1577_v57 = vmax.f32 %v1168_v26, %v1373_v54  ;;  %v4869_v7 = vmax.f32 %v3860_v11, %v3867_v16 }
 0x1d1   :  { %v2783_v46 = vpop.f32.mrf.mxu1  ;;  %v969_v21 = vpop.f32.mrf.mxu0 }
 0x1d2   :  { %1730 = vst [vmem:[%s4755_s3 + $0x48] sm:$0xff] %v1681_v53  ;;  %v1633_v23 = vadd.f32 %v4410_v60, %v1577_v57  ;;  %v1169_v10 = vmax.f32 %v4865_v42, %v969_v21 }
 0x1d3   :  { %v1378_v31 = vpop.f32.mrf.mxu1  ;;  %v2607_v33 = vpop.f32.mrf.mxu0 }
 0x1d4   :  { %v1682_v2 = vmax.f32 %v1633_v23, 0.0  ;;  %v1578_v6 = vmax.f32 %v1169_v10, %v1378_v31  ;;  %v4870_v10 = vmax.f32 %v3876_v32, %v3883_v37 }
 0x1d5   :  { %v2786_v12 = vpop.f32.mrf.mxu1  ;;  %v974_v63 = vpop.f32.mrf.mxu0 }
 0x1d6   :  { %1731 = vst [vmem:[%s4755_s3 + $0x50] sm:$0xff] %v1682_v2  ;;  %v1634_v14 = vadd.f32 %v4410_v60, %v1578_v6  ;;  %v1170_v61 = vmax.f32 %v4866_v59, %v974_v63 }
 0x1d7   :  { %v1383_v28 = vpop.f32.mrf.mxu1  ;;  %v2610_v0 = vpop.f32.mrf.mxu0 }
 0x1d8   :  { %v1683_v15 = vmax.f32 %v1634_v14, 0.0  ;;  %v1579_v18 = vmax.f32 %v1170_v61, %v1383_v28  ;;  %v4871_v14 = vmax.f32 %v3892_v55, %v3899_v4 }
 0x1d9   :  { %v2789_v38 = vpop.f32.mrf.mxu1  ;;  %v979_v40 = vpop.f32.mrf.mxu0 }
 0x1da   :  { %1732 = vst [vmem:[%s4755_s3 + $0x58] sm:$0xff] %v1683_v15  ;;  %v1635_v56 = vadd.f32 %v4410_v60, %v1579_v18  ;;  %v1171_v19 = vmax.f32 %v4867_v17, %v979_v40  ;;  %v4872_v38 = vmax.f32 %v3908_v29, %v3915_v41 }
 0x1db   :  { %v1388_v35 = vpop.f32.mrf.mxu1  ;;  %v2613_v22 = vpop.f32.mrf.mxu0 }
 0x1dc   :  { %v1684_v27 = vmax.f32 %v1635_v56, 0.0  ;;  %v1580_v30 = vmax.f32 %v1171_v19, %v1388_v35 }
 0x1dd   :  { %v2792_v8 = vpop.f32.mrf.mxu1  ;;  %v984_v52 = vpop.f32.mrf.mxu0 }
 0x1de   :  { %1733 = vst [vmem:[%s4755_s3 + $0x60] sm:$0xff] %v1684_v27  ;;  %v1636_v45 = vadd.f32 %v4410_v60, %v1580_v30  ;;  %v1172_v3 = vmax.f32 %v4868_v47, %v984_v52  ;;  %v4873_v27 = vmax.f32 %v3924_v25, %v3931_v48 }
 0x1df   :  { %v1393_v5 = vpop.f32.mrf.mxu1  ;;  %v2616_v13 = vpop.f32.mrf.mxu0 }
 0x1e0   :  { %v1685_v39 = vmax.f32 %v1636_v45, 0.0  ;;  %v1581_v43 = vmax.f32 %v1172_v3, %v1393_v5  ;;  %v4874_v5 = vmax.f32 %v3940_v44, %v3947_v62 }
 0x1e1   :  { %v2795_v24 = vpop.f32.mrf.mxu1  ;;  %v989_v26 = vpop.f32.mrf.mxu0 }
 0x1e2   :  { %1734 = vst [vmem:[%s4755_s3 + $0x68] sm:$0xff] %v1685_v39  ;;  %v1637_v54 = vadd.f32 %v4410_v60, %v1581_v43  ;;  %v1173_v53 = vmax.f32 %v4869_v7, %v989_v26  ;;  %v4875_v7 = vmax.f32 %v3956_v1, %v3963_v36 }
 0x1e3   :  { %v1398_v57 = vpop.f32.mrf.mxu1  ;;  %v2619_v46 = vpop.f32.mrf.mxu0 }
 0x1e4   :  { %v1686_v51 = vmax.f32 %v1637_v54, 0.0  ;;  %v1582_v58 = vmax.f32 %v1173_v53, %v1398_v57 }
 0x1e5   :  { %v2798_v21 = vpop.f32.mrf.mxu1  ;;  %v994_v23 = vpop.f32.mrf.mxu0 }
 0x1e6   :  { %1735 = vst [vmem:[%s4755_s3 + $0x70] sm:$0xff] %v1686_v51  ;;  %v1638_v42 = vadd.f32 %v4410_v60, %v1582_v58  ;;  %v1174_v31 = vmax.f32 %v4870_v10, %v994_v23  ;;  %v4876_v23 = vmax.f32 %v3972_v34, %v3979_v20 }
 0x1e7   :  { %v1403_v33 = vpop.f32.mrf.mxu1  ;;  %v2622_v2 = vpop.f32.mrf.mxu0 }
 0x1e8   :  { %v1687_v11 = vmax.f32 %v1638_v42, 0.0  ;;  %v1583_v16 = vmax.f32 %v1174_v31, %v1403_v33 }
 0x1e9   :  { %v2801_v6 = vpop.f32.mrf.mxu1  ;;  %v999_v12 = vpop.f32.mrf.mxu0 }
 0x1ea   :  { %1736 = vst [vmem:[%s4755_s3 + $0x78] sm:$0xff] %v1687_v11  ;;  %v1639_v63 = vadd.f32 %v4410_v60, %v1583_v16  ;;  %v1175_v59 = vmax.f32 %v4871_v14, %v999_v12  ;;  %v4877_v16 = vmax.f32 %v3988_v9, %v3995_v50 }
 0x1eb   :  { %v1408_v61 = vpop.f32.mrf.mxu1  ;;  %v2625_v28 = vpop.f32.mrf.mxu0 }
 0x1ec   :  { %v1688_v32 = vmax.f32 %v1639_v63, 0.0  ;;  %v1584_v37 = vmax.f32 %v1175_v59, %v1408_v61  ;;  %v4878_v28 = vld [vmem:[#allocation2_spill] sm:$0xff] }
 0x1ed   :  { %v2804_v0 = vpop.f32.mrf.mxu1  ;;  %v1004_v15 = vpop.f32.mrf.mxu0 }
 0x1ee   :  { %1737 = vst [vmem:[%s4755_s3 + $0x80] sm:$0xff] %v1688_v32  ;;  %v1640_v18 = vadd.f32 %v4410_v60, %v1584_v37  ;;  %v1176_v40 = vmax.f32 %v4872_v38, %v1004_v15  ;;  %v4879_v32 = vmax.f32 %v4004_v49, %v4878_v28 }
 0x1ef   :  { %v1413_v56 = vpop.f32.mrf.mxu1  ;;  %v2628_v17 = vpop.f32.mrf.mxu0 }
 0x1f0   :  { %v1689_v55 = vmax.f32 %v1640_v18, 0.0  ;;  %v1585_v4 = vmax.f32 %v1176_v40, %v1413_v56  ;;  %v4880_v56 = vld [vmem:[#allocation3_spill] sm:$0xff]  ;;  %v4881_v17 = vld [vmem:[#allocation4_spill] sm:$0xff] }
 0x1f1   :  { %v2807_v19 = vpop.f32.mrf.mxu1  ;;  %v1009_v35 = vpop.f32.mrf.mxu0 }
 0x1f2   :  { %1738 = vst [vmem:[%s4755_s3 + $0x88] sm:$0xff] %v1689_v55  ;;  %v1641_v22 = vadd.f32 %v4410_v60, %v1585_v4  ;;  %v1177_v30 = vmax.f32 %v4873_v27, %v1009_v35  ;;  %v4882_v55 = vmax.f32 %v4880_v56, %v4881_v17 }
 0x1f3   :  { %v1418_v8 = vpop.f32.mrf.mxu1  ;;  %v2631_v52 = vpop.f32.mrf.mxu0 }
 0x1f4   :  { %v1690_v29 = vmax.f32 %v1641_v22, 0.0  ;;  %v1586_v41 = vmax.f32 %v1177_v30, %v1418_v8  ;;  %v4883_v52 = vld [vmem:[#allocation5_spill] sm:$0xff] }
 0x1f5   :  { %v2810_v45 = vpop.f32.mrf.mxu1  ;;  %v1014_v47 = vpop.f32.mrf.mxu0 }
 0x1f6   :  { %1739 = vst [vmem:[%s4755_s3 + $0x90] sm:$0xff] %v1690_v29  ;;  %v1642_v3 = vadd.f32 %v4410_v60, %v1586_v41  ;;  %v1178_v13 = vmax.f32 %v4874_v5, %v1014_v47  ;;  %v4884_v29 = vld [vmem:[#allocation6_spill] sm:$0xff] }
 0x1f7   :  { %v1423_v39 = vpop.f32.mrf.mxu1  ;;  %v2634_v43 = vpop.f32.mrf.mxu0  ;;  %v4885_v41 = vmax.f32 %v4883_v52, %v4884_v29 }
 0x1f8   :  { %v1691_v25 = vmax.f32 %v1642_v3, 0.0  ;;  %v1587_v48 = vmax.f32 %v1178_v13, %v1423_v39 }
 0x1f9   :  { %v2813_v24 = vpop.f32.mrf.mxu1  ;;  %v1019_v26 = vpop.f32.mrf.mxu0 }
 0x1fa   :  { %1740 = vst [vmem:[%s4755_s3 + $0x98] sm:$0xff] %v1691_v25  ;;  %v1643_v54 = vadd.f32 %v4410_v60, %v1587_v48  ;;  %v1179_v53 = vmax.f32 %v4875_v7, %v1019_v26  ;;  %v4886_v48 = vld [vmem:[#allocation7_spill] sm:$0xff]  ;;  %v4887_v24 = vld [vmem:[#allocation8_spill] sm:$0xff] }
 0x1fb   :  { %v1428_v57 = vpop.f32.mrf.mxu1  ;;  %v2637_v46 = vpop.f32.mrf.mxu0  ;;  %v4888_v26 = vmax.f32 %v4886_v48, %v4887_v24 }
 0x1fc   :  { %v1692_v44 = vmax.f32 %v1643_v54, 0.0  ;;  %v1588_v62 = vmax.f32 %v1179_v53, %v1428_v57 }
 0x1fd   :  { %v2816_v51 = vpop.f32.mrf.mxu1  ;;  %v1024_v58 = vpop.f32.mrf.mxu0 }
 0x1fe   :  { %1741 = vst [vmem:[%s4755_s3 + $0xa0] sm:$0xff] %v1692_v44  ;;  %v1644_v21 = vadd.f32 %v4410_v60, %v1588_v62  ;;  %v1180_v42 = vmax.f32 %v4876_v23, %v1024_v58  ;;  %v4889_v58 = vld [vmem:[#allocation9_spill] sm:$0xff] }
 0x1ff   :  { %v1433_v10 = vpop.f32.mrf.mxu1  ;;  %v2640_v31 = vpop.f32.mrf.mxu0 }
 0x200   :  { %v1693_v1 = vmax.f32 %v1644_v21, 0.0  ;;  %v1589_v36 = vmax.f32 %v1180_v42, %v1433_v10  ;;  %v4890_v21 = vld [vmem:[#allocation10_spill] sm:$0xff] }
 0x201   :  { %v2819_v33 = vpop.f32.mrf.mxu1  ;;  %v1029_v2 = vpop.f32.mrf.mxu0  ;;  %v4891_v23 = vmax.f32 %v4889_v58, %v4890_v21 }
 0x202   :  { %1742 = vst [vmem:[%s4755_s3 + $0xa8] sm:$0xff] %v1693_v1  ;;  %v1645_v11 = vadd.f32 %v4410_v60, %v1589_v36  ;;  %v1181_v6 = vmax.f32 %v4877_v16, %v1029_v2  ;;  %v4892_v16 = vld [vmem:[#allocation11_spill] sm:$0xff] }
 0x203   :  { %v1438_v12 = vpop.f32.mrf.mxu1  ;;  %v2643_v63 = vpop.f32.mrf.mxu0 }
 0x204   :  { %v1694_v34 = vmax.f32 %v1645_v11, 0.0  ;;  %v1590_v20 = vmax.f32 %v1181_v6, %v1438_v12  ;;  %v4893_v6 = vld [vmem:[#allocation12_spill] sm:$0xff] }
 0x205   :  { %v2822_v14 = vpop.f32.mrf.mxu1  ;;  %v1034_v59 = vpop.f32.mrf.mxu0  ;;  %v4894_v12 = vmax.f32 %v4892_v16, %v4893_v6 }
 0x206   :  { %1743 = vst [vmem:[%s4755_s3 + $0xb0] sm:$0xff] %v1694_v34  ;;  %v1646_v61 = vadd.f32 %v4410_v60, %v1590_v20  ;;  %v1182_v37 = vmax.f32 %v4879_v32, %v1034_v59 }
 0x207   :  { %v1443_v0 = vpop.f32.mrf.mxu1  ;;  %v2646_v15 = vpop.f32.mrf.mxu0 }
 0x208   :  { %v1695_v9 = vmax.f32 %v1646_v61, 0.0  ;;  %v1591_v50 = vmax.f32 %v1182_v37, %v1443_v0  ;;  %v4895_v37 = vld [vmem:[#allocation13_spill] sm:$0xff]  ;;  %v4896_v0 = vld [vmem:[#allocation14_spill] sm:$0xff] }
 0x209   :  { %v2825_v18 = vpop.f32.mrf.mxu1  ;;  %v1039_v38 = vpop.f32.mrf.mxu0  ;;  %v4897_v15 = vmax.f32 %v4895_v37, %v4896_v0 }
 0x20a   :  { %1744 = vst [vmem:[%s4755_s3 + $0xb8] sm:$0xff] %v1695_v9  ;;  %v1647_v40 = vadd.f32 %v4410_v60, %v1591_v50  ;;  %v1183_v4 = vmax.f32 %v4882_v55, %v1039_v38 }
 0x20b   :  { %v1448_v19 = vpop.f32.mrf.mxu1  ;;  %v2649_v35 = vpop.f32.mrf.mxu0 }
 0x20c   :  { %v1696_v49 = vmax.f32 %v1647_v40, 0.0  ;;  %v1592_v22 = vmax.f32 %v1183_v4, %v1448_v19  ;;  %v4898_v4 = vld [vmem:[#allocation15_spill] sm:$0xff]  ;;  %v4899_v19 = vld [vmem:[#allocation16_spill] sm:$0xff] }
 0x20d   :  { %v2828_v27 = vpop.f32.mrf.mxu1  ;;  %v1044_v30 = vpop.f32.mrf.mxu0  ;;  %v4900_v35 = vmax.f32 %v4898_v4, %v4899_v19 }
 0x20e   :  { %1745 = vst [vmem:[%s4755_s3 + $0xc0] sm:$0xff] %v1696_v49  ;;  %v1648_v8 = vadd.f32 %v4410_v60, %v1592_v22  ;;  %v1184_v45 = vmax.f32 %v4885_v41, %v1044_v30 }
 0x20f   :  { %v1453_v47 = vpop.f32.mrf.mxu1  ;;  %v2652_v3 = vpop.f32.mrf.mxu0 }
 0x210   :  { %v1697_v5 = vmax.f32 %v1648_v8, 0.0  ;;  %v1593_v13 = vmax.f32 %v1184_v45, %v1453_v47  ;;  %v4901_v45 = vld [vmem:[#allocation17_spill] sm:$0xff]  ;;  %v4902_v47 = vld [vmem:[#allocation18_spill] sm:$0xff] }
 0x211   :  { %v2831_v39 = vpop.f32.mrf.mxu1  ;;  %v1049_v43 = vpop.f32.mrf.mxu0  ;;  %v4903_v3 = vmax.f32 %v4901_v45, %v4902_v47 }
 0x212   :  { %1746 = vst [vmem:[%s4755_s3 + $0xc8] sm:$0xff] %v1697_v5  ;;  %v1649_v25 = vadd.f32 %v4410_v60, %v1593_v13  ;;  %v1185_v54 = vmax.f32 %v4888_v26, %v1049_v43 }
 0x213   :  { %v1458_v7 = vpop.f32.mrf.mxu1  ;;  %v2655_v53 = vpop.f32.mrf.mxu0 }
 0x214   :  { %v1698_v57 = vmax.f32 %v1649_v25, 0.0  ;;  %v1594_v46 = vmax.f32 %v1185_v54, %v1458_v7  ;;  %v4904_v54 = vld [vmem:[#allocation19_spill] sm:$0xff]  ;;  %v4905_v7 = vld [vmem:[#allocation20_spill] sm:$0xff] }
 0x215   :  { %v2834_v44 = vpop.f32.mrf.mxu1  ;;  %v1054_v62 = vpop.f32.mrf.mxu0  ;;  %v4906_v53 = vmax.f32 %v4904_v54, %v4905_v7 }
 0x216   :  { %1747 = vst [vmem:[%s4755_s3 + $0xd0] sm:$0xff] %v1698_v57  ;;  %v1650_v51 = vadd.f32 %v4410_v60, %v1594_v46  ;;  %v1186_v42 = vmax.f32 %v4891_v23, %v1054_v62 }
 0x217   :  { %v1463_v10 = vpop.f32.mrf.mxu1  ;;  %v2658_v31 = vpop.f32.mrf.mxu0 }
 0x218   :  { %v1699_v1 = vmax.f32 %v1650_v51, 0.0  ;;  %v1595_v36 = vmax.f32 %v1186_v42, %v1463_v10  ;;  %v4907_v42 = vld [vmem:[#allocation21_spill] sm:$0xff]  ;;  %v4908_v10 = vld [vmem:[#allocation22_spill] sm:$0xff] }
 0x219   :  { %v2837_v33 = vpop.f32.mrf.mxu1  ;;  %v1059_v2 = vpop.f32.mrf.mxu0  ;;  %v4909_v31 = vmax.f32 %v4907_v42, %v4908_v10 }
 0x21a   :  { %1748 = vst [vmem:[%s4755_s3 + $0xd8] sm:$0xff] %v1699_v1  ;;  %v1651_v11 = vadd.f32 %v4410_v60, %v1595_v36  ;;  %v1187_v63 = vmax.f32 %v4894_v12, %v1059_v2 }
 0x21b   :  { %v1468_v34 = vpop.f32.mrf.mxu1  ;;  %v2661_v20 = vpop.f32.mrf.mxu0 }
 0x21c   :  { %v1700_v14 = vmax.f32 %v1651_v11, 0.0  ;;  %v1596_v59 = vmax.f32 %v1187_v63, %v1468_v34  ;;  %v4910_v63 = vld [vmem:[#allocation23_spill] sm:$0xff]  ;;  %v4911_v34 = vld [vmem:[#allocation24_spill] sm:$0xff] }
 0x21d   :  { %v2840_v61 = vpop.f32.mrf.mxu1  ;;  %v1064_v28 = vpop.f32.mrf.mxu0  ;;  %v4912_v20 = vmax.f32 %v4910_v63, %v4911_v34 }
 0x21e   :  { %1749 = vst [vmem:[%s4755_s3 + $0xe0] sm:$0xff] %v1700_v14  ;;  %v1652_v32 = vadd.f32 %v4410_v60, %v1596_v59  ;;  %v1188_v9 = vmax.f32 %v4897_v15, %v1064_v28 }
 0x21f   :  { %v1473_v50 = vpop.f32.mrf.mxu1  ;;  %v2664_v18 = vpop.f32.mrf.mxu0 }
 0x220   :  { %v1701_v38 = vmax.f32 %v1652_v32, 0.0  ;;  %v1597_v40 = vmax.f32 %v1188_v9, %v1473_v50  ;;  %v4913_v9 = vld [vmem:[#allocation25_spill] sm:$0xff]  ;;  %v4914_v50 = vld [vmem:[#allocation26_spill] sm:$0xff] }
 0x221   :  { %v2843_v56 = vpop.f32.mrf.mxu1  ;;  %v1069_v17 = vpop.f32.mrf.mxu0  ;;  %v4915_v18 = vmax.f32 %v4913_v9, %v4914_v50 }
 0x222   :  { %1750 = vst [vmem:[%s4755_s3 + $0xe8] sm:$0xff] %v1701_v38  ;;  %v1653_v55 = vadd.f32 %v4410_v60, %v1597_v40  ;;  %v1189_v49 = vmax.f32 %v4900_v35, %v1069_v17 }
 0x223   :  { %v1478_v22 = vpop.f32.mrf.mxu1  ;;  %v2667_v27 = vpop.f32.mrf.mxu0 }
 0x224   :  { %v1702_v30 = vmax.f32 %v1653_v55, 0.0  ;;  %v1598_v8 = vmax.f32 %v1189_v49, %v1478_v22  ;;  %v4916_v49 = vld [vmem:[#allocation27_spill] sm:$0xff]  ;;  %v4917_v22 = vld [vmem:[#allocation28_spill] sm:$0xff] }
 0x225   :  { %v2846_v52 = vpop.f32.mrf.mxu1  ;;  %v1074_v29 = vpop.f32.mrf.mxu0  ;;  %v4918_v27 = vmax.f32 %v4916_v49, %v4917_v22 }
 0x226   :  { %1751 = vst [vmem:[%s4755_s3 + $0xf0] sm:$0xff] %v1702_v30  ;;  %v1654_v41 = vadd.f32 %v4410_v60, %v1598_v8  ;;  %v1190_v5 = vmax.f32 %v4903_v3, %v1074_v29 }
 0x227   :  { %v1483_v13 = vpop.f32.mrf.mxu1  ;;  %v2670_v39 = vpop.f32.mrf.mxu0 }
 0x228   :  { %v1703_v43 = vmax.f32 %v1654_v41, 0.0  ;;  %v1599_v25 = vmax.f32 %v1190_v5, %v1483_v13  ;;  %v4919_v5 = vld [vmem:[#allocation29_spill] sm:$0xff]  ;;  %v4920_v13 = vld [vmem:[#allocation30_spill] sm:$0xff] }
 0x229   :  { %v2849_v48 = vpop.f32.mrf.mxu1  ;;  %v1079_v24 = vpop.f32.mrf.mxu0  ;;  %v4921_v39 = vmax.f32 %v4919_v5, %v4920_v13 }
 0x22a   :  { %1752 = vst [vmem:[%s4755_s3 + $0xf8] sm:$0xff] %v1703_v43  ;;  %v1655_v26 = vadd.f32 %v4410_v60, %v1599_v25  ;;  %v1191_v57 = vmax.f32 %v4906_v53, %v1079_v24 }
 0x22b   :  { %v1488_v46 = vpop.f32.mrf.mxu1  ;;  %v2673_v44 = vpop.f32.mrf.mxu0 }
 0x22c   :  { %v1704_v62 = vmax.f32 %v1655_v26, 0.0  ;;  %v1600_v51 = vmax.f32 %v1191_v57, %v1488_v46  ;;  %v4922_v57 = vld [vmem:[#allocation31_spill] sm:$0xff]  ;;  %v4923_v46 = vld [vmem:[#allocation32_spill] sm:$0xff] }
 0x22d   :  { %v2852_v58 = vpop.f32.mrf.mxu1  ;;  %v1084_v21 = vpop.f32.mrf.mxu0  ;;  %v4924_v44 = vmax.f32 %v4922_v57, %v4923_v46 }
 0x22e   :  { %1753 = vst [vmem:[%s4755_s3 + $0x100] sm:$0xff] %v1704_v62  ;;  %v1656_v23 = vadd.f32 %v4410_v60, %v1600_v51  ;;  %v1192_v1 = vmax.f32 %v4909_v31, %v1084_v21 }
 0x22f   :  { %v1493_v36 = vpop.f32.mrf.mxu1  ;;  %v2676_v33 = vpop.f32.mrf.mxu0 }
 0x230   :  { %v1705_v2 = vmax.f32 %v1656_v23, 0.0  ;;  %v1601_v11 = vmax.f32 %v1192_v1, %v1493_v36  ;;  %v4925_v1 = vld [vmem:[#allocation33_spill] sm:$0xff]  ;;  %v4926_v36 = vld [vmem:[#allocation34_spill] sm:$0xff] }
 0x231   :  { %v2855_v16 = vpop.f32.mrf.mxu1  ;;  %v1089_v6 = vpop.f32.mrf.mxu0  ;;  %v4927_v33 = vmax.f32 %v4925_v1, %v4926_v36 }
 0x232   :  { %1754 = vst [vmem:[%s4755_s3 + $0x108] sm:$0xff] %v1705_v2  ;;  %v1657_v12 = vadd.f32 %v4410_v60, %v1601_v11  ;;  %v1193_v14 = vmax.f32 %v4912_v20, %v1089_v6 }
 0x233   :  { %v1498_v59 = vpop.f32.mrf.mxu1  ;;  %v2679_v61 = vpop.f32.mrf.mxu0 }
 0x234   :  { %v1706_v28 = vmax.f32 %v1657_v12, 0.0  ;;  %v1602_v32 = vmax.f32 %v1193_v14, %v1498_v59  ;;  %v4928_v14 = vld [vmem:[#allocation35_spill] sm:$0xff]  ;;  %v4929_v59 = vld [vmem:[#allocation36_spill] sm:$0xff] }
 0x235   :  { %v2858_v37 = vpop.f32.mrf.mxu1  ;;  %v1094_v0 = vpop.f32.mrf.mxu0  ;;  %v4930_v61 = vmax.f32 %v4928_v14, %v4929_v59 }
 0x236   :  { %1755 = vst [vmem:[%s4755_s3 + $0x110] sm:$0xff] %v1706_v28  ;;  %v1658_v15 = vadd.f32 %v4410_v60, %v1602_v32  ;;  %v1194_v38 = vmax.f32 %v4915_v18, %v1094_v0 }
 0x237   :  { %v1503_v40 = vpop.f32.mrf.mxu1  ;;  %v2682_v56 = vpop.f32.mrf.mxu0 }
 0x238   :  { %v1707_v17 = vmax.f32 %v1658_v15, 0.0  ;;  %v1603_v55 = vmax.f32 %v1194_v38, %v1503_v40  ;;  %v4931_v38 = vld [vmem:[#allocation37_spill] sm:$0xff]  ;;  %v4932_v40 = vld [vmem:[#allocation38_spill] sm:$0xff] }
 0x239   :  { %v2861_v4 = vpop.f32.mrf.mxu1  ;;  %v1099_v19 = vpop.f32.mrf.mxu0  ;;  %v4933_v56 = vmax.f32 %v4931_v38, %v4932_v40 }
 0x23a   :  { %1756 = vst [vmem:[%s4755_s3 + $0x118] sm:$0xff] %v1707_v17  ;;  %v1659_v35 = vadd.f32 %v4410_v60, %v1603_v55  ;;  %v1195_v30 = vmax.f32 %v4918_v27, %v1099_v19 }
 0x23b   :  { %v1508_v8 = vpop.f32.mrf.mxu1  ;;  %v2685_v52 = vpop.f32.mrf.mxu0 }
 0x23c   :  { %v1708_v29 = vmax.f32 %v1659_v35, 0.0  ;;  %v1604_v41 = vmax.f32 %v1195_v30, %v1508_v8  ;;  %v4934_v30 = vld [vmem:[#allocation39_spill] sm:$0xff]  ;;  %v4935_v8 = vld [vmem:[#allocation40_spill] sm:$0xff] }
 0x23d   :  { %v2864_v45 = vpop.f32.mrf.mxu1  ;;  %v1104_v47 = vpop.f32.mrf.mxu0  ;;  %v4936_v52 = vmax.f32 %v4934_v30, %v4935_v8 }
 0x23e   :  { %1757 = vst [vmem:[%s4755_s3 + $0x120] sm:$0xff] %v1708_v29  ;;  %v1660_v3 = vadd.f32 %v4410_v60, %v1604_v41  ;;  %v1196_v43 = vmax.f32 %v4921_v39, %v1104_v47 }
 0x23f   :  { %v1513_v25 = vpop.f32.mrf.mxu1  ;;  %v2688_v48 = vpop.f32.mrf.mxu0 }
 0x240   :  { %v1709_v24 = vmax.f32 %v1660_v3, 0.0  ;;  %v1605_v26 = vmax.f32 %v1196_v43, %v1513_v25  ;;  %v4937_v43 = vld [vmem:[#allocation41_spill] sm:$0xff]  ;;  %v4938_v25 = vld [vmem:[#allocation42_spill] sm:$0xff] }
 0x241   :  { %v2867_v54 = vpop.f32.mrf.mxu1  ;;  %v1109_v7 = vpop.f32.mrf.mxu0  ;;  %v4939_v48 = vmax.f32 %v4937_v43, %v4938_v25 }
 0x242   :  { %1758 = vst [vmem:[%s4755_s3 + $0x128] sm:$0xff] %v1709_v24  ;;  %v1661_v53 = vadd.f32 %v4410_v60, %v1605_v26  ;;  %v1197_v62 = vmax.f32 %v4924_v44, %v1109_v7 }
 0x243   :  { %v1518_v51 = vpop.f32.mrf.mxu1  ;;  %v2691_v58 = vpop.f32.mrf.mxu0 }
 0x244   :  { %v1710_v21 = vmax.f32 %v1661_v53, 0.0  ;;  %v1606_v23 = vmax.f32 %v1197_v62, %v1518_v51  ;;  %v4940_v62 = vld [vmem:[#allocation43_spill] sm:$0xff]  ;;  %v4941_v51 = vld [vmem:[#allocation44_spill] sm:$0xff] }
 0x245   :  { %v2870_v42 = vpop.f32.mrf.mxu1  ;;  %v1114_v10 = vpop.f32.mrf.mxu0  ;;  %v4942_v58 = vmax.f32 %v4940_v62, %v4941_v51 }
 0x246   :  { %1759 = vst [vmem:[%s4755_s3 + $0x130] sm:$0xff] %v1710_v21  ;;  %v1662_v31 = vadd.f32 %v4410_v60, %v1606_v23  ;;  %v1198_v2 = vmax.f32 %v4927_v33, %v1114_v10 }
 0x247   :  { %v1523_v11 = vpop.f32.mrf.mxu1  ;;  %v2694_v16 = vpop.f32.mrf.mxu0 }
 0x248   :  { %v1711_v6 = vmax.f32 %v1662_v31, 0.0  ;;  %v1607_v12 = vmax.f32 %v1198_v2, %v1523_v11  ;;  %v4943_v2 = vld [vmem:[#allocation45_spill] sm:$0xff]  ;;  %v4944_v11 = vld [vmem:[#allocation46_spill] sm:$0xff] }
 0x249   :  { %v2873_v63 = vpop.f32.mrf.mxu1  ;;  %v1119_v34 = vpop.f32.mrf.mxu0  ;;  %v4945_v16 = vmax.f32 %v4943_v2, %v4944_v11 }
 0x24a   :  { %1760 = vst [vmem:[%s4755_s3 + $0x138] sm:$0xff] %v1711_v6  ;;  %v1663_v20 = vadd.f32 %v4410_v60, %v1607_v12  ;;  %v1199_v28 = vmax.f32 %v4930_v61, %v1119_v34 }
 0x24b   :  { %v1528_v32 = vpop.f32.mrf.mxu1  ;;  %v2697_v37 = vpop.f32.mrf.mxu0 }
 0x24c   :  { %v1712_v0 = vmax.f32 %v1663_v20, 0.0  ;;  %v1608_v15 = vmax.f32 %v1199_v28, %v1528_v32  ;;  %v4946_v28 = vld [vmem:[#allocation47_spill] sm:$0xff]  ;;  %v4947_v32 = vld [vmem:[#allocation48_spill] sm:$0xff] }
 0x24d   :  { %v2876_v9 = vpop.f32.mrf.mxu1  ;;  %v1124_v50 = vpop.f32.mrf.mxu0  ;;  %v4948_v37 = vmax.f32 %v4946_v28, %v4947_v32 }
 0x24e   :  { %1761 = vst [vmem:[%s4755_s3 + $0x140] sm:$0xff] %v1712_v0  ;;  %v1664_v18 = vadd.f32 %v4410_v60, %v1608_v15  ;;  %v1200_v17 = vmax.f32 %v4933_v56, %v1124_v50 }
 0x24f   :  { %v1533_v55 = vpop.f32.mrf.mxu1  ;;  %v2700_v4 = vpop.f32.mrf.mxu0 }
 0x250   :  { %v1713_v19 = vmax.f32 %v1664_v18, 0.0  ;;  %v1609_v35 = vmax.f32 %v1200_v17, %v1533_v55  ;;  %v4949_v17 = vld [vmem:[#allocation49_spill] sm:$0xff]  ;;  %v4950_v55 = vld [vmem:[#allocation50_spill] sm:$0xff] }
 0x251   :  { %v2879_v49 = vpop.f32.mrf.mxu1  ;;  %v1129_v22 = vpop.f32.mrf.mxu0  ;;  %v4951_v4 = vmax.f32 %v4949_v17, %v4950_v55 }
 0x252   :  { %1762 = vst [vmem:[%s4755_s3 + $0x148] sm:$0xff] %v1713_v19  ;;  %v1665_v27 = vadd.f32 %v4410_v60, %v1609_v35  ;;  %v1201_v29 = vmax.f32 %v4936_v52, %v1129_v22 }
 0x253   :  { %v1538_v41 = vpop.f32.mrf.mxu1  ;;  %v2703_v45 = vpop.f32.mrf.mxu0 }
 0x254   :  { %v1714_v47 = vmax.f32 %v1665_v27, 0.0  ;;  %v1610_v3 = vmax.f32 %v1201_v29, %v1538_v41 }
 0x255   :  { %v2882_v5 = vpop.f32.mrf.mxu1  ;;  %v1134_v13 = vpop.f32.mrf.mxu0 }
 0x256   :  { %1763 = vst [vmem:[%s4755_s3 + $0x150] sm:$0xff] %v1714_v47  ;;  %v1666_v39 = vadd.f32 %v4410_v60, %v1610_v3  ;;  %v1202_v24 = vmax.f32 %v4939_v48, %v1134_v13 }
 0x257   :  { %v1543_v26 = vpop.f32.mrf.mxu1  ;;  %v2706_v54 = vpop.f32.mrf.mxu0 }
 0x258   :  { %v1715_v7 = vmax.f32 %v1666_v39, 0.0  ;;  %v1611_v53 = vmax.f32 %v1202_v24, %v1543_v26 }
 0x259   :  { %v2885_v57 = vpop.f32.mrf.mxu1  ;;  %v1139_v46 = vpop.f32.mrf.mxu0 }
 0x25a   :  { %1764 = vst [vmem:[%s4755_s3 + $0x158] sm:$0xff] %v1715_v7  ;;  %v1667_v44 = vadd.f32 %v4410_v60, %v1611_v53  ;;  %v1203_v21 = vmax.f32 %v4942_v58, %v1139_v46 }
 0x25b   :  { %v1548_v23 = vpop.f32.mrf.mxu1  ;;  %v2709_v42 = vpop.f32.mrf.mxu0 }
 0x25c   :  { %v1716_v10 = vmax.f32 %v1667_v44, 0.0  ;;  %v1612_v31 = vmax.f32 %v1203_v21, %v1548_v23 }
 0x25d   :  { %v2888_v1 = vpop.f32.mrf.mxu1  ;;  %v1144_v36 = vpop.f32.mrf.mxu0 }
 0x25e   :  { %1765 = vst [vmem:[%s4755_s3 + $0x160] sm:$0xff] %v1716_v10  ;;  %v1668_v33 = vadd.f32 %v4410_v60, %v1612_v31  ;;  %v1204_v6 = vmax.f32 %v4945_v16, %v1144_v36 }
 0x25f   :  { %v1553_v12 = vpop.f32.mrf.mxu1  ;;  %v2712_v63 = vpop.f32.mrf.mxu0 }
 0x260   :  { %v1717_v34 = vmax.f32 %v1668_v33, 0.0  ;;  %v1613_v20 = vmax.f32 %v1204_v6, %v1553_v12 }
 0x261   :  { %v2891_v14 = vpop.f32.mrf.mxu1  ;;  %v1149_v59 = vpop.f32.mrf.mxu0 }
 0x262   :  { %1766 = vst [vmem:[%s4755_s3 + $0x168] sm:$0xff] %v1717_v34  ;;  %v1669_v61 = vadd.f32 %v4410_v60, %v1613_v20  ;;  %v1205_v0 = vmax.f32 %v4948_v37, %v1149_v59 }
 0x263   :  { %v1558_v15 = vpop.f32.mrf.mxu1  ;;  %v2715_v9 = vpop.f32.mrf.mxu0 }
 0x264   :  { %v1718_v50 = vmax.f32 %v1669_v61, 0.0  ;;  %v1614_v18 = vmax.f32 %v1205_v0, %v1558_v15 }
 0x265   :  { %v2894_v38 = vpop.f32.mrf.mxu1  ;;  %v1154_v40 = vpop.f32.mrf.mxu0 }
 0x266   :  { %1767 = vst [vmem:[%s4755_s3 + $0x170] sm:$0xff] %v1718_v50  ;;  %v1670_v56 = vadd.f32 %v4410_v60, %v1614_v18  ;;  %v1206_v19 = vmax.f32 %v4951_v4, %v1154_v40 }
 0x267   :  { %v1563_v35 = vpop.f32.mrf.mxu1  ;;  %v2718_v49 = vpop.f32.mrf.mxu0 }
 0x268   :  { %v1719_v22 = vmax.f32 %v1670_v56, 0.0  ;;  %v1615_v27 = vmax.f32 %v1206_v19, %v1563_v35 }
 0x269   :  { %v2897_v30 = vpop.f32.mrf.mxu1 }
 0x26a   :  { %1768 = vst [vmem:[%s4755_s3 + $0x178] sm:$0xff] %v1719_v22  ;;  %v1671_v8 = vadd.f32 %v4410_v60, %v1615_v27 }
 0x26c   :  { %v1720_v52 = vmax.f32 %v1671_v8, 0.0 }
 0x26e   :  { %1769 = vst [vmem:[%s4755_s3 + $0x180] sm:$0xff] %v1720_v52 }

// kernel: cnn_forward.4
= control target key start
LH: loop header
LB: loop body
LE: loop exit
PB: predicated region body
PF: predicated region fallthrough
CT: control target
= control target key end

     0   :  { %s1346_s1 = inlined_call_operand.vmem [shape: f32[256,128], index: 1, kind: input, shape index: {}]   ;;  %s1347_s0 = inlined_call_operand.vmem [shape: f32[4,56,256], index: 0, kind: input, shape index: {}]   ;;  %s1348_s2 = inlined_call_operand.vmem [shape: f32[1,128], index: 2, kind: input, shape index: {}]   ;;  %s1349_s3 = inlined_call_operand.vmem [shape: f32[56,128], index: 3, kind: output, shape index: {}]  }
   0x1   :  { %v836_v0 = vld [vmem:[%s1346_s1 + $0xf8] sm:$0xff]  ;;  %v846_v2 = vld [vmem:[%s1346_s1 + $0xf0] sm:$0xff]  ;;  %v860_v4 = vld [vmem:[%s1346_s1 + $0xe8] sm:$0xff] }
   0x2   :  { %v841_v1 = vld [vmem:[%s1346_s1 + $0x78] sm:$0xff]  ;;  %601 = vmatprep.subr.mxu0 %v836_v0  ;;  %654 = vmatprep.subr.mxu1 %v836_v0  ;;  %v853_v3 = vld [vmem:[%s1346_s1 + $0x70] sm:$0xff]  ;;  %v867_v5 = vld [vmem:[%s1346_s1 + $0x68] sm:$0xff] }
   0x3   :  { %602 = vmatpush3.msra.mxu0 %v841_v1  ;;  %655 = vmatpush3.msra.mxu1 %v841_v1  ;;  %v874_v6 = vld [vmem:[%s1346_s1 + $0xe0] sm:$0xff]  ;;  %v888_v8 = vld [vmem:[%s1346_s1 + $0xd8] sm:$0xff]  ;;  %v902_v10 = vld [vmem:[%s1346_s1 + $0xd0] sm:$0xff] }
   0x4   :  { %603 = vmatprep.subr.mxu0 %v846_v2  ;;  %656 = vmatprep.subr.mxu1 %v846_v2  ;;  %v881_v7 = vld [vmem:[%s1346_s1 + $0x60] sm:$0xff]  ;;  %v895_v9 = vld [vmem:[%s1346_s1 + $0x58] sm:$0xff]  ;;  %v909_v11 = vld [vmem:[%s1346_s1 + $0x50] sm:$0xff] }
   0x5   :  { %604 = vmatpush3.msra.mxu0 %v853_v3  ;;  %657 = vmatpush3.msra.mxu1 %v853_v3  ;;  %v916_v12 = vld [vmem:[%s1346_s1 + $0xc8] sm:$0xff]  ;;  %v930_v14 = vld [vmem:[%s1346_s1 + $0xc0] sm:$0xff]  ;;  %v944_v16 = vld [vmem:[%s1346_s1 + $0xb8] sm:$0xff] }
   0x6   :  { %605 = vmatprep.subr.mxu0 %v860_v4  ;;  %658 = vmatprep.subr.mxu1 %v860_v4  ;;  %v923_v13 = vld [vmem:[%s1346_s1 + $0x48] sm:$0xff]  ;;  %v937_v15 = vld [vmem:[%s1346_s1 + $0x40] sm:$0xff]  ;;  %v951_v17 = vld [vmem:[%s1346_s1 + $0x38] sm:$0xff] }
   0x7   :  { %606 = vmatpush3.msra.mxu0 %v867_v5  ;;  %659 = vmatpush3.msra.mxu1 %v867_v5  ;;  %v958_v18 = vld [vmem:[%s1346_s1 + $0xb0] sm:$0xff]  ;;  %v972_v20 = vld [vmem:[%s1346_s1 + $0xa8] sm:$0xff]  ;;  %v986_v22 = vld [vmem:[%s1346_s1 + $0xa0] sm:$0xff] }
   0x8   :  { %607 = vmatprep.subr.mxu0 %v874_v6  ;;  %660 = vmatprep.subr.mxu1 %v874_v6  ;;  %v965_v19 = vld [vmem:[%s1346_s1 + $0x30] sm:$0xff]  ;;  %v979_v21 = vld [vmem:[%s1346_s1 + $0x28] sm:$0xff]  ;;  %v993_v23 = vld [vmem:[%s1346_s1 + $0x20] sm:$0xff] }
   0x9   :  { %608 = vmatpush3.msra.mxu0 %v881_v7  ;;  %661 = vmatpush3.msra.mxu1 %v881_v7  ;;  %v1000_v24 = vld [vmem:[%s1346_s1 + $0x98] sm:$0xff]  ;;  %v1014_v26 = vld [vmem:[%s1346_s1 + $0x90] sm:$0xff]  ;;  %v1028_v28 = vld [vmem:[%s1346_s1 + $0x88] sm:$0xff] }
   0xa   :  { %609 = vmatprep.subr.mxu0 %v888_v8  ;;  %662 = vmatprep.subr.mxu1 %v888_v8  ;;  %v1007_v25 = vld [vmem:[%s1346_s1 + $0x18] sm:$0xff]  ;;  %v1021_v27 = vld [vmem:[%s1346_s1 + $0x10] sm:$0xff]  ;;  %v1035_v29 = vld [vmem:[%s1346_s1 + $0x8] sm:$0xff] }
   0xb   :  { %610 = vmatpush3.msra.mxu0 %v895_v9  ;;  %663 = vmatpush3.msra.mxu1 %v895_v9  ;;  %v1042_v30 = vld [vmem:[%s1346_s1 + $0x80] sm:$0xff]  ;;  %v47_v32 = vld [vmem:[%s1347_s0 + $0x8] sm:$0xff]  ;;  %v559_v33 = vld [vmem:[%s1347_s0 + $0x78] sm:$0xff] }
   0xc   :  { %611 = vmatprep.subr.mxu0 %v902_v10  ;;  %664 = vmatprep.subr.mxu1 %v902_v10  ;;  %v1049_v31 = vld [vmem:[%s1346_s1] sm:$0xff]  ;;  %v558_v35 = vld [vmem:[%s1347_s0 + $0x70] sm:$0xff]  ;;  %v49_v36 = vld [vmem:[%s1347_s0 + $0x18] sm:$0xff] }
   0xd   :  { %612 = vmatpush3.msra.mxu0 %v909_v11  ;;  %665 = vmatpush3.msra.mxu1 %v909_v11  ;;  %v46_v34 = vld [vmem:[%s1347_s0] sm:$0xff]  ;;  %v561_v37 = vld [vmem:[%s1347_s0 + $0x88] sm:$0xff]  ;;  %v48_v38 = vld [vmem:[%s1347_s0 + $0x10] sm:$0xff] }
   0xe   :  { %613 = vmatprep.subr.mxu0 %v916_v12  ;;  %666 = vmatprep.subr.mxu1 %v916_v12  ;;  %v560_v39 = vld [vmem:[%s1347_s0 + $0x80] sm:$0xff]  ;;  %v51_v40 = vld [vmem:[%s1347_s0 + $0x28] sm:$0xff]  ;;  %v563_v41 = vld [vmem:[%s1347_s0 + $0x98] sm:$0xff] }
   0xf   :  { %614 = vmatpush3.msra.mxu0 %v923_v13  ;;  %667 = vmatpush3.msra.mxu1 %v923_v13  ;;  %v50_v42 = vld [vmem:[%s1347_s0 + $0x20] sm:$0xff]  ;;  %v562_v43 = vld [vmem:[%s1347_s0 + $0x90] sm:$0xff]  ;;  %v53_v44 = vld [vmem:[%s1347_s0 + $0x38] sm:$0xff] }
  0x10   :  { %615 = vmatprep.subr.mxu0 %v930_v14  ;;  %668 = vmatprep.subr.mxu1 %v930_v14  ;;  %v565_v45 = vld [vmem:[%s1347_s0 + $0xa8] sm:$0xff]  ;;  %v52_v46 = vld [vmem:[%s1347_s0 + $0x30] sm:$0xff]  ;;  %v564_v47 = vld [vmem:[%s1347_s0 + $0xa0] sm:$0xff] }
  0x11   :  { %616 = vmatpush3.msra.mxu0 %v937_v15  ;;  %669 = vmatpush3.msra.mxu1 %v937_v15  ;;  %v55_v48 = vld [vmem:[%s1347_s0 + $0x48] sm:$0xff]  ;;  %v567_v49 = vld [vmem:[%s1347_s0 + $0xb8] sm:$0xff]  ;;  %v54_v50 = vld [vmem:[%s1347_s0 + $0x40] sm:$0xff] }
  0x12   :  { %617 = vmatprep.subr.mxu0 %v944_v16  ;;  %670 = vmatprep.subr.mxu1 %v944_v16  ;;  %v566_v51 = vld [vmem:[%s1347_s0 + $0xb0] sm:$0xff]  ;;  %v57_v52 = vld [vmem:[%s1347_s0 + $0x58] sm:$0xff]  ;;  %v569_v53 = vld [vmem:[%s1347_s0 + $0xc8] sm:$0xff] }
  0x13   :  { %618 = vmatpush3.msra.mxu0 %v951_v17  ;;  %671 = vmatpush3.msra.mxu1 %v951_v17  ;;  %v56_v54 = vld [vmem:[%s1347_s0 + $0x50] sm:$0xff]  ;;  %v568_v55 = vld [vmem:[%s1347_s0 + $0xc0] sm:$0xff]  ;;  %v59_v56 = vld [vmem:[%s1347_s0 + $0x68] sm:$0xff] }
  0x14   :  { %619 = vmatprep.subr.mxu0 %v958_v18  ;;  %672 = vmatprep.subr.mxu1 %v958_v18  ;;  %v571_v57 = vld [vmem:[%s1347_s0 + $0xd8] sm:$0xff]  ;;  %v58_v58 = vld [vmem:[%s1347_s0 + $0x60] sm:$0xff]  ;;  %v570_v59 = vld [vmem:[%s1347_s0 + $0xd0] sm:$0xff] }
  0x15   :  { %620 = vmatpush3.msra.mxu0 %v965_v19  ;;  %673 = vmatpush3.msra.mxu1 %v965_v19  ;;  %v573_v60 = vld [vmem:[%s1347_s0 + $0xe8] sm:$0xff]  ;;  %v587_v61 = vld [vmem:[%s1347_s0 + $0x158] sm:$0xff]  ;;  %v572_v62 = vld [vmem:[%s1347_s0 + $0xe0] sm:$0xff] }
  0x16   :  { %621 = vmatprep.subr.mxu0 %v972_v20  ;;  %674 = vmatprep.subr.mxu1 %v972_v20  ;;  %v586_v63 = vld [vmem:[%s1347_s0 + $0x150] sm:$0xff] }
  0x17   :  { %622 = vmatpush3.msra.mxu0 %v979_v21  ;;  %675 = vmatpush3.msra.mxu1 %v979_v21 }
  0x18   :  { %623 = vmatprep.subr.mxu0 %v986_v22  ;;  %676 = vmatprep.subr.mxu1 %v986_v22 }
  0x19   :  { %624 = vmatpush3.msra.mxu0 %v993_v23  ;;  %677 = vmatpush3.msra.mxu1 %v993_v23 }
  0x1a   :  { %625 = vmatprep.subr.mxu0 %v1000_v24  ;;  %678 = vmatprep.subr.mxu1 %v1000_v24 }
  0x1b   :  { %626 = vmatpush3.msra.mxu0 %v1007_v25  ;;  %679 = vmatpush3.msra.mxu1 %v1007_v25 }
  0x1c   :  { %627 = vmatprep.subr.mxu0 %v1014_v26  ;;  %680 = vmatprep.subr.mxu1 %v1014_v26 }
  0x1d   :  { %628 = vmatpush3.msra.mxu0 %v1021_v27  ;;  %681 = vmatpush3.msra.mxu1 %v1021_v27 }
  0x1e   :  { %629 = vmatprep.subr.mxu0 %v1028_v28  ;;  %682 = vmatprep.subr.mxu1 %v1028_v28 }
  0x1f   :  { %630 = vmatpush3.msra.mxu0 %v1035_v29  ;;  %683 = vmatpush3.msra.mxu1 %v1035_v29 }
  0x20   :  { %631 = vmatprep.subr.mxu0 %v1042_v30  ;;  %684 = vmatprep.subr.mxu1 %v1042_v30 }
  0x21   :  { %632 = vmatpush3.msra.mxu0 %v1049_v31  ;;  %124 = vmatprep.mubr.f32.mxu0 %v47_v32 }
  0x22   :  { %685 = vmatpush3.msra.mxu1 %v1049_v31  ;;  %239 = vmatprep.mubr.f32.mxu1 %v559_v33 }
  0x23   :  { %125 = vmatmul.mubr.f32.vlgmr.msra.gmra.mxu0 %v46_v34  ;;  %240 = vmatmul.mubr.f32.vlgmr.msra.gmra.mxu1 %v558_v35 }
  0x24   :  { %707 = vmatprep.subr.mxu0 %v836_v0  ;;  %760 = vmatprep.subr.mxu1 %v836_v0  ;;  %v575_v0 = vld [vmem:[%s1347_s0 + $0xf8] sm:$0xff] }
  0x25   :  { %708 = vmatpush3.msra.mxu0 %v841_v1  ;;  %761 = vmatpush3.msra.mxu1 %v841_v1  ;;  %v589_v1 = vld [vmem:[%s1347_s0 + $0x168] sm:$0xff] }
  0x26   :  { %709 = vmatprep.subr.mxu0 %v846_v2  ;;  %762 = vmatprep.subr.mxu1 %v846_v2  ;;  %v574_v2 = vld [vmem:[%s1347_s0 + $0xf0] sm:$0xff] }
  0x27   :  { %710 = vmatpush3.msra.mxu0 %v853_v3  ;;  %763 = vmatpush3.msra.mxu1 %v853_v3  ;;  %v588_v3 = vld [vmem:[%s1347_s0 + $0x160] sm:$0xff] }
  0x28   :  { %711 = vmatprep.subr.mxu0 %v860_v4  ;;  %764 = vmatprep.subr.mxu1 %v860_v4  ;;  %v577_v4 = vld [vmem:[%s1347_s0 + $0x108] sm:$0xff] }
  0x29   :  { %129 = vmatprep.mubr.f32.mxu0 %v49_v36  ;;  %244 = vmatprep.mubr.f32.mxu1 %v561_v37 }
  0x2a   :  { %712 = vmatpush3.msra.mxu0 %v867_v5  ;;  %765 = vmatpush3.msra.mxu1 %v867_v5  ;;  %v591_v5 = vld [vmem:[%s1347_s0 + $0x178] sm:$0xff] }
  0x2b   :  { %130 = vmatmul.mubr.f32.gmra.mxu0 %v48_v38  ;;  %245 = vmatmul.mubr.f32.gmra.mxu1 %v560_v39 }
  0x2c   :  { %713 = vmatprep.subr.mxu0 %v874_v6  ;;  %766 = vmatprep.subr.mxu1 %v874_v6  ;;  %v576_v6 = vld [vmem:[%s1347_s0 + $0x100] sm:$0xff] }
  0x2d   :  { %714 = vmatpush3.msra.mxu0 %v881_v7  ;;  %767 = vmatpush3.msra.mxu1 %v881_v7  ;;  %v590_v7 = vld [vmem:[%s1347_s0 + $0x170] sm:$0xff] }
  0x2e   :  { %715 = vmatprep.subr.mxu0 %v888_v8  ;;  %768 = vmatprep.subr.mxu1 %v888_v8  ;;  %v579_v8 = vld [vmem:[%s1347_s0 + $0x118] sm:$0xff] }
  0x2f   :  { %134 = vmatprep.mubr.f32.mxu0 %v51_v40  ;;  %249 = vmatprep.mubr.f32.mxu1 %v563_v41 }
  0x30   :  { %716 = vmatpush3.msra.mxu0 %v895_v9  ;;  %769 = vmatpush3.msra.mxu1 %v895_v9  ;;  %v593_v9 = vld [vmem:[%s1347_s0 + $0x188] sm:$0xff] }
  0x31   :  { %135 = vmatmul.mubr.f32.gmra.mxu0 %v50_v42  ;;  %250 = vmatmul.mubr.f32.gmra.mxu1 %v562_v43 }
  0x32   :  { %717 = vmatprep.subr.mxu0 %v902_v10  ;;  %770 = vmatprep.subr.mxu1 %v902_v10  ;;  %v578_v10 = vld [vmem:[%s1347_s0 + $0x110] sm:$0xff] }
  0x33   :  { %718 = vmatpush3.msra.mxu0 %v909_v11  ;;  %771 = vmatpush3.msra.mxu1 %v909_v11  ;;  %v592_v11 = vld [vmem:[%s1347_s0 + $0x180] sm:$0xff] }
  0x34   :  { %719 = vmatprep.subr.mxu0 %v916_v12  ;;  %772 = vmatprep.subr.mxu1 %v916_v12  ;;  %v581_v12 = vld [vmem:[%s1347_s0 + $0x128] sm:$0xff] }
  0x35   :  { %139 = vmatprep.mubr.f32.mxu0 %v53_v44  ;;  %254 = vmatprep.mubr.f32.mxu1 %v565_v45 }
  0x36   :  { %720 = vmatpush3.msra.mxu0 %v923_v13  ;;  %773 = vmatpush3.msra.mxu1 %v923_v13  ;;  %v595_v13 = vld [vmem:[%s1347_s0 + $0x198] sm:$0xff] }
  0x37   :  { %140 = vmatmul.mubr.f32.gmra.mxu0 %v52_v46  ;;  %255 = vmatmul.mubr.f32.gmra.mxu1 %v564_v47 }
  0x38   :  { %721 = vmatprep.subr.mxu0 %v930_v14  ;;  %774 = vmatprep.subr.mxu1 %v930_v14  ;;  %v580_v14 = vld [vmem:[%s1347_s0 + $0x120] sm:$0xff] }
  0x39   :  { %722 = vmatpush3.msra.mxu0 %v937_v15  ;;  %775 = vmatpush3.msra.mxu1 %v937_v15  ;;  %v594_v15 = vld [vmem:[%s1347_s0 + $0x190] sm:$0xff] }
  0x3a   :  { %723 = vmatprep.subr.mxu0 %v944_v16  ;;  %776 = vmatprep.subr.mxu1 %v944_v16  ;;  %v583_v16 = vld [vmem:[%s1347_s0 + $0x138] sm:$0xff] }
  0x3b   :  { %144 = vmatprep.mubr.f32.mxu0 %v55_v48  ;;  %259 = vmatprep.mubr.f32.mxu1 %v567_v49 }
  0x3c   :  { %724 = vmatpush3.msra.mxu0 %v951_v17  ;;  %777 = vmatpush3.msra.mxu1 %v951_v17  ;;  %v597_v17 = vld [vmem:[%s1347_s0 + $0x1a8] sm:$0xff] }
  0x3d   :  { %145 = vmatmul.mubr.f32.gmra.mxu0 %v54_v50  ;;  %260 = vmatmul.mubr.f32.gmra.mxu1 %v566_v51 }
  0x3e   :  { %725 = vmatprep.subr.mxu0 %v958_v18  ;;  %778 = vmatprep.subr.mxu1 %v958_v18  ;;  %v582_v18 = vld [vmem:[%s1347_s0 + $0x130] sm:$0xff] }
  0x3f   :  { %726 = vmatpush3.msra.mxu0 %v965_v19  ;;  %779 = vmatpush3.msra.mxu1 %v965_v19  ;;  %v596_v19 = vld [vmem:[%s1347_s0 + $0x1a0] sm:$0xff] }
  0x40   :  { %727 = vmatprep.subr.mxu0 %v972_v20  ;;  %780 = vmatprep.subr.mxu1 %v972_v20  ;;  %v585_v20 = vld [vmem:[%s1347_s0 + $0x148] sm:$0xff] }
  0x41   :  { %149 = vmatprep.mubr.f32.mxu0 %v57_v52  ;;  %264 = vmatprep.mubr.f32.mxu1 %v569_v53 }
  0x42   :  { %728 = vmatpush3.msra.mxu0 %v979_v21  ;;  %781 = vmatpush3.msra.mxu1 %v979_v21  ;;  %v599_v21 = vld [vmem:[%s1347_s0 + $0x1b8] sm:$0xff] }
  0x43   :  { %150 = vmatmul.mubr.f32.gmra.mxu0 %v56_v54  ;;  %265 = vmatmul.mubr.f32.gmra.mxu1 %v568_v55 }
  0x44   :  { %729 = vmatprep.subr.mxu0 %v986_v22  ;;  %782 = vmatprep.subr.mxu1 %v986_v22  ;;  %v584_v22 = vld [vmem:[%s1347_s0 + $0x140] sm:$0xff] }
  0x45   :  { %730 = vmatpush3.msra.mxu0 %v993_v23  ;;  %783 = vmatpush3.msra.mxu1 %v993_v23  ;;  %v598_v23 = vld [vmem:[%s1347_s0 + $0x1b0] sm:$0xff] }
  0x46   :  { %731 = vmatprep.subr.mxu0 %v1000_v24  ;;  %784 = vmatprep.subr.mxu1 %v1000_v24 }
  0x47   :  { %154 = vmatprep.mubr.f32.mxu0 %v59_v56  ;;  %269 = vmatprep.mubr.f32.mxu1 %v571_v57 }
  0x48   :  { %732 = vmatpush3.msra.mxu0 %v1007_v25  ;;  %785 = vmatpush3.msra.mxu1 %v1007_v25 }
  0x49   :  { %155 = vmatmul.mubr.f32.gmra.mxu0 %v58_v58  ;;  %270 = vmatmul.mubr.f32.gmra.mxu1 %v570_v59 }
  0x4a   :  { %733 = vmatprep.subr.mxu0 %v1014_v26  ;;  %786 = vmatprep.subr.mxu1 %v1014_v26 }
  0x4b   :  { %734 = vmatpush3.msra.mxu0 %v1021_v27  ;;  %787 = vmatpush3.msra.mxu1 %v1021_v27 }
  0x4c   :  { %735 = vmatprep.subr.mxu0 %v1028_v28  ;;  %788 = vmatprep.subr.mxu1 %v1028_v28 }
  0x4d   :  { %736 = vmatpush3.msra.mxu0 %v1035_v29  ;;  %789 = vmatpush3.msra.mxu1 %v1035_v29 }
  0x4e   :  { %737 = vmatprep.subr.mxu0 %v1042_v30  ;;  %790 = vmatprep.subr.mxu1 %v1042_v30 }
  0x4f   :  { %738 = vmatpush3.msra.mxu0 %v1049_v31  ;;  %361 = vmatprep.mubr.f32.mxu0 %v573_v60 }
  0x50   :  { %791 = vmatpush3.msra.mxu1 %v1049_v31  ;;  %483 = vmatprep.mubr.f32.mxu1 %v587_v61 }
  0x51   :  { %362 = vmatmul.mubr.f32.vlgmr.msra.gmra.mxu0 %v572_v62  ;;  %484 = vmatmul.mubr.f32.vlgmr.msra.gmra.mxu1 %v586_v63 }
  0x52   :  { %366 = vmatprep.mubr.f32.mxu0 %v575_v0  ;;  %488 = vmatprep.mubr.f32.mxu1 %v589_v1 }
  0x55   :  { %367 = vmatmul.mubr.f32.gmra.mxu0 %v574_v2  ;;  %489 = vmatmul.mubr.f32.gmra.mxu1 %v588_v3  ;;  %v1308_v3 = vld [vmem:[%s1348_s2] ss:$0 sm:$0xff] }
  0x56   :  { %371 = vmatprep.mubr.f32.mxu0 %v577_v4  ;;  %493 = vmatprep.mubr.f32.mxu1 %v591_v5 }
  0x59   :  { %372 = vmatmul.mubr.f32.gmra.mxu0 %v576_v6  ;;  %494 = vmatmul.mubr.f32.gmra.mxu1 %v590_v7 }
  0x5a   :  { %376 = vmatprep.mubr.f32.mxu0 %v579_v8  ;;  %498 = vmatprep.mubr.f32.mxu1 %v593_v9 }
  0x5d   :  { %377 = vmatmul.mubr.f32.gmra.mxu0 %v578_v10  ;;  %499 = vmatmul.mubr.f32.gmra.mxu1 %v592_v11 }
  0x5e   :  { %381 = vmatprep.mubr.f32.mxu0 %v581_v12  ;;  %503 = vmatprep.mubr.f32.mxu1 %v595_v13 }
  0x61   :  { %382 = vmatmul.mubr.f32.gmra.mxu0 %v580_v14  ;;  %504 = vmatmul.mubr.f32.gmra.mxu1 %v594_v15 }
  0x62   :  { %386 = vmatprep.mubr.f32.mxu0 %v583_v16  ;;  %508 = vmatprep.mubr.f32.mxu1 %v597_v17 }
  0x65   :  { %387 = vmatmul.mubr.f32.gmra.mxu0 %v582_v18  ;;  %509 = vmatmul.mubr.f32.gmra.mxu1 %v596_v19 }
  0x66   :  { %391 = vmatprep.mubr.f32.mxu0 %v585_v20  ;;  %513 = vmatprep.mubr.f32.mxu1 %v599_v21 }
  0x69   :  { %392 = vmatmul.mubr.f32.gmra.mxu0 %v584_v22  ;;  %514 = vmatmul.mubr.f32.gmra.mxu1 %v598_v23 }
  0xe3   :  { %v633_v24 = vpop.f32.mrf.mxu0  ;;  %v686_v25 = vpop.f32.mrf.mxu1 }
  0xe5   :  { %v634_v26 = vpop.f32.mrf.mxu0  ;;  %v687_v27 = vpop.f32.mrf.mxu1 }
  0xe6   :  { %v635_v52 = vadd.f32 %v634_v26, %v633_v24  ;;  %v688_v53 = vadd.f32 %v687_v27, %v686_v25 }
  0xe8   :  { %v275_v60 = vmax.f32 %v635_v52, %v688_v53 }
  0xeb   :  { %v636_v28 = vpop.f32.mrf.mxu0  ;;  %v689_v29 = vpop.f32.mrf.mxu1 }
  0xed   :  { %v637_v30 = vpop.f32.mrf.mxu0  ;;  %v690_v31 = vpop.f32.mrf.mxu1 }
  0xee   :  { %v638_v56 = vadd.f32 %v637_v30, %v636_v28  ;;  %v691_v57 = vadd.f32 %v690_v31, %v689_v29 }
  0xf0   :  { %v276_v2 = vmax.f32 %v638_v56, %v691_v57 }
  0xf1   :  { %v639_v32 = vpop.f32.mrf.mxu0  ;;  %v692_v33 = vpop.f32.mrf.mxu1 }
  0xf3   :  { %v640_v34 = vpop.f32.mrf.mxu0  ;;  %v693_v35 = vpop.f32.mrf.mxu1 }
  0xf4   :  { %v641_v6 = vadd.f32 %v640_v34, %v639_v32  ;;  %v694_v7 = vadd.f32 %v693_v35, %v692_v33 }
  0xf6   :  { %v277_v19 = vmax.f32 %v641_v6, %v694_v7 }
  0xf7   :  { %v642_v36 = vpop.f32.mrf.mxu0  ;;  %v695_v37 = vpop.f32.mrf.mxu1 }
  0xf9   :  { %v643_v38 = vpop.f32.mrf.mxu0  ;;  %v696_v39 = vpop.f32.mrf.mxu1 }
  0xfa   :  { %v644_v15 = vadd.f32 %v643_v38, %v642_v36  ;;  %v697_v16 = vadd.f32 %v696_v39, %v695_v37 }
  0xfc   :  { %v278_v28 = vmax.f32 %v644_v15, %v697_v16 }
  0xfd   :  { %v645_v40 = vpop.f32.mrf.mxu0  ;;  %v698_v41 = vpop.f32.mrf.mxu1 }
  0xff   :  { %v646_v42 = vpop.f32.mrf.mxu0  ;;  %v699_v43 = vpop.f32.mrf.mxu1 }
 0x100   :  { %v647_v29 = vadd.f32 %v646_v42, %v645_v40  ;;  %v700_v32 = vadd.f32 %v699_v43, %v698_v41 }
 0x102   :  { %v279_v43 = vmax.f32 %v647_v29, %v700_v32 }
 0x103   :  { %v1289_v44 = vpop.f32.mrf.mxu0  ;;  %v1291_v45 = vpop.f32.mrf.mxu1 }
 0x105   :  { %v1293_v46 = vpop.f32.mrf.mxu0  ;;  %v1295_v47 = vpop.f32.mrf.mxu1 }
 0x106   :  { %v650_v53 = vadd.f32 %v1293_v46, %v1289_v44  ;;  %v703_v40 = vadd.f32 %v1295_v47, %v1291_v45 }
 0x108   :  { %v280_v44 = vmax.f32 %v650_v53, %v703_v40 }
 0x109   :  { %v1297_v48 = vpop.f32.mrf.mxu0  ;;  %v1299_v49 = vpop.f32.mrf.mxu1 }
 0x10b   :  { %v1301_v50 = vpop.f32.mrf.mxu0  ;;  %v1303_v51 = vpop.f32.mrf.mxu1 }
 0x10c   :  { %v653_v45 = vadd.f32 %v1301_v50, %v1297_v48 }
 0x111   :  { %v739_v54 = vpop.f32.mrf.mxu0  ;;  %v792_v55 = vpop.f32.mrf.mxu1 }
 0x113   :  { %v740_v58 = vpop.f32.mrf.mxu0  ;;  %v793_v59 = vpop.f32.mrf.mxu1 }
 0x114   :  { %v741_v61 = vadd.f32 %v740_v58, %v739_v54  ;;  %v794_v1 = vadd.f32 %v793_v59, %v792_v55 }
 0x115   :  { %v742_v62 = vpop.f32.mrf.mxu0  ;;  %v795_v63 = vpop.f32.mrf.mxu1 }
 0x116   :  { %v397_v0 = vmax.f32 %v275_v60, %v741_v61 }
 0x117   :  { %v743_v4 = vpop.f32.mrf.mxu0  ;;  %v796_v5 = vpop.f32.mrf.mxu1 }
 0x118   :  { %v519_v8 = vmax.f32 %v397_v0, %v794_v1  ;;  %v744_v9 = vadd.f32 %v743_v4, %v742_v62  ;;  %v797_v14 = vadd.f32 %v796_v5, %v795_v63  ;;  %v706_v62 = vadd.f32 %v1303_v51, %v1299_v49 }
 0x119   :  { %v745_v10 = vpop.f32.mrf.mxu0  ;;  %v798_v11 = vpop.f32.mrf.mxu1 }
 0x11a   :  { %v533_v12 = vadd.f32 %v1308_v3, %v519_v8  ;;  %v398_v13 = vmax.f32 %v276_v2, %v744_v9  ;;  %v281_v50 = vmax.f32 %v653_v45, %v706_v62 }
 0x11b   :  { %v746_v17 = vpop.f32.mrf.mxu0  ;;  %v799_v18 = vpop.f32.mrf.mxu1 }
 0x11c   :  { %v540_v20 = vmax.f32 %v533_v12, 0.0  ;;  %v520_v21 = vmax.f32 %v398_v13, %v797_v14  ;;  %v747_v22 = vadd.f32 %v746_v17, %v745_v10  ;;  %v800_v27 = vadd.f32 %v799_v18, %v798_v11 }
 0x11d   :  { %v748_v23 = vpop.f32.mrf.mxu0  ;;  %v801_v24 = vpop.f32.mrf.mxu1 }
 0x11e   :  { %547 = vst [vmem:[%s1349_s3] sm:$0xff] %v540_v20  ;;  %v534_v25 = vadd.f32 %v1308_v3, %v520_v21  ;;  %v399_v26 = vmax.f32 %v277_v19, %v747_v22 }
 0x11f   :  { %v749_v30 = vpop.f32.mrf.mxu0  ;;  %v802_v31 = vpop.f32.mrf.mxu1 }
 0x120   :  { %v541_v33 = vmax.f32 %v534_v25, 0.0  ;;  %v521_v34 = vmax.f32 %v399_v26, %v800_v27  ;;  %v750_v35 = vadd.f32 %v749_v30, %v748_v23  ;;  %v803_v52 = vadd.f32 %v802_v31, %v801_v24 }
 0x121   :  { %v751_v36 = vpop.f32.mrf.mxu0  ;;  %v804_v37 = vpop.f32.mrf.mxu1 }
 0x122   :  { %548 = vst [vmem:[%s1349_s3 + $0x8] sm:$0xff] %v541_v33  ;;  %v535_v38 = vadd.f32 %v1308_v3, %v521_v34  ;;  %v400_v39 = vmax.f32 %v278_v28, %v750_v35 }
 0x123   :  { %v752_v41 = vpop.f32.mrf.mxu0  ;;  %v805_v42 = vpop.f32.mrf.mxu1 }
 0x124   :  { %v542_v54 = vmax.f32 %v535_v38, 0.0  ;;  %v522_v55 = vmax.f32 %v400_v39, %v803_v52  ;;  %v753_v56 = vadd.f32 %v752_v41, %v751_v36  ;;  %v806_v61 = vadd.f32 %v805_v42, %v804_v37 }
 0x125   :  { %v754_v57 = vpop.f32.mrf.mxu0  ;;  %v807_v58 = vpop.f32.mrf.mxu1 }
 0x126   :  { %549 = vst [vmem:[%s1349_s3 + $0x10] sm:$0xff] %v542_v54  ;;  %v536_v59 = vadd.f32 %v1308_v3, %v522_v55  ;;  %v401_v60 = vmax.f32 %v279_v43, %v753_v56 }
 0x127   :  { %v755_v46 = vpop.f32.mrf.mxu0  ;;  %v808_v47 = vpop.f32.mrf.mxu1 }
 0x128   :  { %v543_v63 = vmax.f32 %v536_v59, 0.0  ;;  %v523_v0 = vmax.f32 %v401_v60, %v806_v61  ;;  %v756_v1 = vadd.f32 %v755_v46, %v754_v57  ;;  %v809_v7 = vadd.f32 %v808_v47, %v807_v58 }
 0x129   :  { %v757_v2 = vpop.f32.mrf.mxu0  ;;  %v810_v4 = vpop.f32.mrf.mxu1 }
 0x12a   :  { %550 = vst [vmem:[%s1349_s3 + $0x18] sm:$0xff] %v543_v63  ;;  %v537_v5 = vadd.f32 %v1308_v3, %v523_v0  ;;  %v402_v6 = vmax.f32 %v280_v44, %v756_v1 }
 0x12b   :  { %v758_v8 = vpop.f32.mrf.mxu0  ;;  %v811_v48 = vpop.f32.mrf.mxu1 }
 0x12c   :  { %v544_v9 = vmax.f32 %v537_v5, 0.0  ;;  %v524_v10 = vmax.f32 %v402_v6, %v809_v7  ;;  %v759_v11 = vadd.f32 %v758_v8, %v757_v2  ;;  %v812_v12 = vadd.f32 %v811_v48, %v810_v4 }
 0x12e   :  { %551 = vst [vmem:[%s1349_s3 + $0x20] sm:$0xff] %v544_v9  ;;  %v538_v49 = vadd.f32 %v1308_v3, %v524_v10  ;;  %v403_v51 = vmax.f32 %v281_v50, %v759_v11 }
 0x130   :  { %v545_v13 = vmax.f32 %v538_v49, 0.0  ;;  %v525_v14 = vmax.f32 %v403_v51, %v812_v12 }
 0x132   :  { %552 = vst [vmem:[%s1349_s3 + $0x28] sm:$0xff] %v545_v13  ;;  %v539_v15 = vadd.f32 %v1308_v3, %v525_v14 }
 0x134   :  { %v546_v16 = vmax.f32 %v539_v15, 0.0 }
 0x136   :  { %553 = vst [vmem:[%s1349_s3 + $0x30] sm:$0xff] %v546_v16 }

// kernel: cnn_forward.5
= control target key start
LH: loop header
LB: loop body
LE: loop exit
PB: predicated region body
PF: predicated region fallthrough
CT: control target
= control target key end

     0   :  { %vm614_vm0 = vmmov 0   ;;  %s1001_s1 = inlined_call_operand.vmem [shape: f32[512,128], index: 1, kind: input, shape index: {}]   ;;  %s1002_s0 = inlined_call_operand.vmem [shape: f32[8,512], index: 0, kind: input, shape index: {}]   ;;  %s1003_s3 = inlined_call_operand.vmem [shape: f32[128,128], index: 3, kind: input, shape index: {}]   ;;  %s1004_s5 = inlined_call_operand.vmem [shape: f32[128,128], index: 5, kind: input, shape index: {}]   ;;  %s1005_s2 = inlined_call_operand.vmem [shape: f32[1,128], index: 2, kind: input, shape index: {}]   ;;  %s1006_s4 = inlined_call_operand.vmem [shape: f32[1,128], index: 4, kind: input, shape index: {}]   ;;  %s1007_s6 = inlined_call_operand.vmem [shape: f32[1,128], index: 6, kind: input, shape index: {}]   ;;  %s1008_s7 = inlined_call_operand.vmem [shape: f32[8,128], index: 7, kind: output, shape index: {}]  }
   0x1   :  { %v61_v0 = vld [vmem:[%s1001_s1 + $0xf8] sm:$0xff]  ;;  %v60_v4 = vld [vmem:[%s1001_s1 + $0xf0] sm:$0xff]  ;;  %v59_v8 = vld [vmem:[%s1001_s1 + $0xe8] sm:$0xff] }
   0x2   :  { %v93_v1 = vld [vmem:[%s1001_s1 + $0x1f8] sm:$0xff]  ;;  %437 = vmatprep.subr.mxu0 %v61_v0  ;;  %v92_v5 = vld [vmem:[%s1001_s1 + $0x1f0] sm:$0xff]  ;;  %v91_v9 = vld [vmem:[%s1001_s1 + $0x1e8] sm:$0xff] }
   0x3   :  { %v45_v2 = vld [vmem:[%s1001_s1 + $0x78] sm:$0xff]  ;;  %472 = vmatprep.subr.mxu1 %v93_v1  ;;  %v44_v6 = vld [vmem:[%s1001_s1 + $0x70] sm:$0xff]  ;;  %v43_v10 = vld [vmem:[%s1001_s1 + $0x68] sm:$0xff] }
   0x4   :  { %v77_v3 = vld [vmem:[%s1001_s1 + $0x178] sm:$0xff]  ;;  %438 = vmatpush3.msra.mxu0 %v45_v2  ;;  %v76_v7 = vld [vmem:[%s1001_s1 + $0x170] sm:$0xff]  ;;  %v75_v11 = vld [vmem:[%s1001_s1 + $0x168] sm:$0xff] }
   0x5   :  { %473 = vmatpush3.msra.mxu1 %v77_v3  ;;  %439 = vmatprep.subr.mxu0 %v60_v4  ;;  %v58_v12 = vld [vmem:[%s1001_s1 + $0xe0] sm:$0xff]  ;;  %v57_v16 = vld [vmem:[%s1001_s1 + $0xd8] sm:$0xff]  ;;  %v56_v20 = vld [vmem:[%s1001_s1 + $0xd0] sm:$0xff] }
   0x6   :  { %474 = vmatprep.subr.mxu1 %v92_v5  ;;  %440 = vmatpush3.msra.mxu0 %v44_v6  ;;  %v90_v13 = vld [vmem:[%s1001_s1 + $0x1e0] sm:$0xff]  ;;  %v89_v17 = vld [vmem:[%s1001_s1 + $0x1d8] sm:$0xff]  ;;  %v88_v21 = vld [vmem:[%s1001_s1 + $0x1d0] sm:$0xff]  ;;  %v613_v5 = vmov 0.0  }
   0x7   :  { %475 = vmatpush3.msra.mxu1 %v76_v7  ;;  %441 = vmatprep.subr.mxu0 %v59_v8  ;;  %v42_v14 = vld [vmem:[%s1001_s1 + $0x60] sm:$0xff]  ;;  %v41_v18 = vld [vmem:[%s1001_s1 + $0x58] sm:$0xff]  ;;  %v40_v22 = vld [vmem:[%s1001_s1 + $0x50] sm:$0xff] }
   0x8   :  { %476 = vmatprep.subr.mxu1 %v91_v9  ;;  %v74_v15 = vld [vmem:[%s1001_s1 + $0x160] sm:$0xff]  ;;  %442 = vmatpush3.msra.mxu0 %v43_v10  ;;  %v73_v19 = vld [vmem:[%s1001_s1 + $0x158] sm:$0xff]  ;;  %v72_v23 = vld [vmem:[%s1001_s1 + $0x150] sm:$0xff] }
   0x9   :  { %477 = vmatpush3.msra.mxu1 %v75_v11  ;;  %443 = vmatprep.subr.mxu0 %v58_v12  ;;  %v55_v24 = vld [vmem:[%s1001_s1 + $0xc8] sm:$0xff]  ;;  %v54_v28 = vld [vmem:[%s1001_s1 + $0xc0] sm:$0xff]  ;;  %v53_v32 = vld [vmem:[%s1001_s1 + $0xb8] sm:$0xff] }
   0xa   :  { %478 = vmatprep.subr.mxu1 %v90_v13  ;;  %444 = vmatpush3.msra.mxu0 %v42_v14  ;;  %v87_v25 = vld [vmem:[%s1001_s1 + $0x1c8] sm:$0xff]  ;;  %v86_v29 = vld [vmem:[%s1001_s1 + $0x1c0] sm:$0xff]  ;;  %v85_v33 = vld [vmem:[%s1001_s1 + $0x1b8] sm:$0xff] }
   0xb   :  { %479 = vmatpush3.msra.mxu1 %v74_v15  ;;  %445 = vmatprep.subr.mxu0 %v57_v16  ;;  %v39_v26 = vld [vmem:[%s1001_s1 + $0x48] sm:$0xff]  ;;  %v38_v30 = vld [vmem:[%s1001_s1 + $0x40] sm:$0xff]  ;;  %v37_v34 = vld [vmem:[%s1001_s1 + $0x38] sm:$0xff] }
   0xc   :  { %480 = vmatprep.subr.mxu1 %v89_v17  ;;  %446 = vmatpush3.msra.mxu0 %v41_v18  ;;  %v71_v27 = vld [vmem:[%s1001_s1 + $0x148] sm:$0xff]  ;;  %v70_v31 = vld [vmem:[%s1001_s1 + $0x140] sm:$0xff]  ;;  %v69_v35 = vld [vmem:[%s1001_s1 + $0x138] sm:$0xff] }
   0xd   :  { %481 = vmatpush3.msra.mxu1 %v73_v19  ;;  %447 = vmatprep.subr.mxu0 %v56_v20  ;;  %v52_v36 = vld [vmem:[%s1001_s1 + $0xb0] sm:$0xff]  ;;  %v51_v40 = vld [vmem:[%s1001_s1 + $0xa8] sm:$0xff]  ;;  %v50_v44 = vld [vmem:[%s1001_s1 + $0xa0] sm:$0xff] }
   0xe   :  { %482 = vmatprep.subr.mxu1 %v88_v21  ;;  %448 = vmatpush3.msra.mxu0 %v40_v22  ;;  %v84_v37 = vld [vmem:[%s1001_s1 + $0x1b0] sm:$0xff]  ;;  %v83_v41 = vld [vmem:[%s1001_s1 + $0x1a8] sm:$0xff]  ;;  %v82_v45 = vld [vmem:[%s1001_s1 + $0x1a0] sm:$0xff] }
   0xf   :  { %483 = vmatpush3.msra.mxu1 %v72_v23  ;;  %449 = vmatprep.subr.mxu0 %v55_v24  ;;  %v36_v38 = vld [vmem:[%s1001_s1 + $0x30] sm:$0xff]  ;;  %v35_v42 = vld [vmem:[%s1001_s1 + $0x28] sm:$0xff]  ;;  %v34_v46 = vld [vmem:[%s1001_s1 + $0x20] sm:$0xff] }
  0x10   :  { %484 = vmatprep.subr.mxu1 %v87_v25  ;;  %450 = vmatpush3.msra.mxu0 %v39_v26  ;;  %v68_v39 = vld [vmem:[%s1001_s1 + $0x130] sm:$0xff]  ;;  %v67_v43 = vld [vmem:[%s1001_s1 + $0x128] sm:$0xff]  ;;  %v66_v47 = vld [vmem:[%s1001_s1 + $0x120] sm:$0xff] }
  0x11   :  { %485 = vmatpush3.msra.mxu1 %v71_v27  ;;  %451 = vmatprep.subr.mxu0 %v54_v28  ;;  %v49_v48 = vld [vmem:[%s1001_s1 + $0x98] sm:$0xff]  ;;  %v48_v52 = vld [vmem:[%s1001_s1 + $0x90] sm:$0xff]  ;;  %v47_v56 = vld [vmem:[%s1001_s1 + $0x88] sm:$0xff] }
  0x12   :  { %486 = vmatprep.subr.mxu1 %v86_v29  ;;  %452 = vmatpush3.msra.mxu0 %v38_v30  ;;  %v81_v49 = vld [vmem:[%s1001_s1 + $0x198] sm:$0xff]  ;;  %v80_v53 = vld [vmem:[%s1001_s1 + $0x190] sm:$0xff]  ;;  %v79_v57 = vld [vmem:[%s1001_s1 + $0x188] sm:$0xff] }
  0x13   :  { %487 = vmatpush3.msra.mxu1 %v70_v31  ;;  %453 = vmatprep.subr.mxu0 %v53_v32  ;;  %v33_v50 = vld [vmem:[%s1001_s1 + $0x18] sm:$0xff]  ;;  %v32_v54 = vld [vmem:[%s1001_s1 + $0x10] sm:$0xff]  ;;  %v31_v58 = vld [vmem:[%s1001_s1 + $0x8] sm:$0xff] }
  0x14   :  { %488 = vmatprep.subr.mxu1 %v85_v33  ;;  %454 = vmatpush3.msra.mxu0 %v37_v34  ;;  %v65_v51 = vld [vmem:[%s1001_s1 + $0x118] sm:$0xff]  ;;  %v64_v55 = vld [vmem:[%s1001_s1 + $0x110] sm:$0xff]  ;;  %v63_v59 = vld [vmem:[%s1001_s1 + $0x108] sm:$0xff] }
  0x15   :  { %489 = vmatpush3.msra.mxu1 %v69_v35  ;;  %455 = vmatprep.subr.mxu0 %v52_v36  ;;  %v46_v60 = vld [vmem:[%s1001_s1 + $0x80] sm:$0xff]  ;;  %v27_v63 = vld [vmem:[%s1002_s0 + $0x8] sm:$0xff]  ;;  %v29_v1 = vld [vmem:[%s1002_s0 + $0x18] sm:$0xff] }
  0x16   :  { %490 = vmatprep.subr.mxu1 %v84_v37  ;;  %456 = vmatpush3.msra.mxu0 %v36_v38  ;;  %v78_v61 = vld [vmem:[%s1001_s1 + $0x180] sm:$0xff]  ;;  %v28_v3 = vld [vmem:[%s1002_s0 + $0x10] sm:$0xff]  ;;  %v257_v4 = vld [vmem:[%s1003_s3 + $0x78] sm:$0xff] }
  0x17   :  { %491 = vmatpush3.msra.mxu1 %v68_v39  ;;  %457 = vmatprep.subr.mxu0 %v51_v40  ;;  %v30_v62 = vld [vmem:[%s1001_s1] sm:$0xff]  ;;  %v256_v6 = vld [vmem:[%s1003_s3 + $0x70] sm:$0xff]  ;;  %v255_v7 = vld [vmem:[%s1003_s3 + $0x68] sm:$0xff] }
  0x18   :  { %492 = vmatprep.subr.mxu1 %v83_v41  ;;  %458 = vmatpush3.msra.mxu0 %v35_v42  ;;  %v62_v0 = vld [vmem:[%s1001_s1 + $0x100] sm:$0xff]  ;;  %v253_v9 = vld [vmem:[%s1003_s3 + $0x58] sm:$0xff]  ;;  %v252_v10 = vld [vmem:[%s1003_s3 + $0x50] sm:$0xff] }
  0x19   :  { %493 = vmatpush3.msra.mxu1 %v67_v43  ;;  %459 = vmatprep.subr.mxu0 %v50_v44  ;;  %v26_v2 = vld [vmem:[%s1002_s0] sm:$0xff]  ;;  %v251_v11 = vld [vmem:[%s1003_s3 + $0x48] sm:$0xff]  ;;  %v249_v13 = vld [vmem:[%s1003_s3 + $0x38] sm:$0xff] }
  0x1a   :  { %494 = vmatprep.subr.mxu1 %v82_v45  ;;  %460 = vmatpush3.msra.mxu0 %v34_v46  ;;  %v254_v8 = vld [vmem:[%s1003_s3 + $0x60] sm:$0xff]  ;;  %v248_v14 = vld [vmem:[%s1003_s3 + $0x30] sm:$0xff]  ;;  %v247_v15 = vld [vmem:[%s1003_s3 + $0x28] sm:$0xff] }
  0x1b   :  { %495 = vmatpush3.msra.mxu1 %v66_v47  ;;  %461 = vmatprep.subr.mxu0 %v49_v48  ;;  %v250_v12 = vld [vmem:[%s1003_s3 + $0x40] sm:$0xff]  ;;  %v245_v17 = vld [vmem:[%s1003_s3 + $0x18] sm:$0xff]  ;;  %v244_v18 = vld [vmem:[%s1003_s3 + $0x10] sm:$0xff] }
  0x1c   :  { %496 = vmatprep.subr.mxu1 %v81_v49  ;;  %462 = vmatpush3.msra.mxu0 %v33_v50  ;;  %v246_v16 = vld [vmem:[%s1003_s3 + $0x20] sm:$0xff]  ;;  %v243_v19 = vld [vmem:[%s1003_s3 + $0x8] sm:$0xff]  ;;  %v351_v21 = vld [vmem:[%s1004_s5 + $0x78] sm:$0xff] }
  0x1d   :  { %497 = vmatpush3.msra.mxu1 %v65_v51  ;;  %463 = vmatprep.subr.mxu0 %v48_v52  ;;  %v242_v20 = vld [vmem:[%s1003_s3] sm:$0xff]  ;;  %v350_v22 = vld [vmem:[%s1004_s5 + $0x70] sm:$0xff]  ;;  %v349_v23 = vld [vmem:[%s1004_s5 + $0x68] sm:$0xff] }
  0x1e   :  { %498 = vmatprep.subr.mxu1 %v80_v53  ;;  %464 = vmatpush3.msra.mxu0 %v32_v54  ;;  %v348_v24 = vld [vmem:[%s1004_s5 + $0x60] sm:$0xff]  ;;  %v347_v25 = vld [vmem:[%s1004_s5 + $0x58] sm:$0xff]  ;;  %v346_v26 = vld [vmem:[%s1004_s5 + $0x50] sm:$0xff] }
  0x1f   :  { %499 = vmatpush3.msra.mxu1 %v64_v55  ;;  %465 = vmatprep.subr.mxu0 %v47_v56  ;;  %v345_v27 = vld [vmem:[%s1004_s5 + $0x48] sm:$0xff]  ;;  %v344_v28 = vld [vmem:[%s1004_s5 + $0x40] sm:$0xff]  ;;  %v343_v29 = vld [vmem:[%s1004_s5 + $0x38] sm:$0xff] }
  0x20   :  { %500 = vmatprep.subr.mxu1 %v79_v57  ;;  %466 = vmatpush3.msra.mxu0 %v31_v58  ;;  %v342_v30 = vld [vmem:[%s1004_s5 + $0x30] sm:$0xff]  ;;  %v341_v31 = vld [vmem:[%s1004_s5 + $0x28] sm:$0xff]  ;;  %v340_v32 = vld [vmem:[%s1004_s5 + $0x20] sm:$0xff] }
  0x21   :  { %501 = vmatpush3.msra.mxu1 %v63_v59  ;;  %467 = vmatprep.subr.mxu0 %v46_v60  ;;  %v339_v33 = vld [vmem:[%s1004_s5 + $0x18] sm:$0xff]  ;;  %v434_v36 = vld [vmem:[%s1005_s2] ss:$0 sm:$0xff]  ;;  %v338_v44 = vld [vmem:[%s1004_s5 + $0x10] sm:$0xff] }
  0x22   :  { %502 = vmatprep.subr.mxu1 %v78_v61  ;;  %468 = vmatpush3.msra.mxu0 %v30_v62  ;;  %v337_v45 = vld [vmem:[%s1004_s5 + $0x8] sm:$0xff]  ;;  %v336_v46 = vld [vmem:[%s1004_s5] sm:$0xff] }
  0x23   :  { %165 = vmatprep.mubr.f32.mxu0 %v27_v63  ;;  %503 = vmatpush3.msra.mxu1 %v62_v0  ;;  %v435_v47 = vld [vmem:[%s1006_s4] ss:$0 sm:$0xff] }
  0x24   :  { %235 = vmatprep.mubr.f32.mxu1 %v29_v1  ;;  %166 = vmatmul.mubr.f32.vlgmr.msra.gmra.mxu0 %v26_v2  ;;  %v436_v52 = vld [vmem:[%s1007_s6] ss:$0 sm:$0xff] }
  0x25   :  { %236 = vmatmul.mubr.f32.vlgmr.msra.gmra.mxu1 %v28_v3  ;;  %541 = vmatprep.subr.mxu0 %v613_v5 }
  0x26   :  { %576 = vmatprep.subr.mxu1 %v613_v5  ;;  %542 = vmatpush3.msra.mxu0 %v257_v4 }
  0x27   :  { %543 = vmatprep.subr.mxu0 %v613_v5  ;;  %573 = vmatprep.mubr.msk.f32.mxu0 %vm614_vm0, %v613_v5 }
  0x28   :  { %544 = vmatpush3.msra.mxu0 %v256_v6  ;;  %608 = vmatprep.mubr.msk.f32.mxu1 %vm614_vm0, %v613_v5 }
  0x29   :  { %545 = vmatprep.subr.mxu0 %v613_v5  ;;  %577 = vmatpush3.msra.mxu1 %v351_v21 }
  0x2a   :  { %546 = vmatpush3.msra.mxu0 %v255_v7  ;;  %578 = vmatprep.subr.mxu1 %v613_v5 }
  0x2b   :  { %547 = vmatprep.subr.mxu0 %v613_v5  ;;  %579 = vmatpush3.msra.mxu1 %v350_v22 }
  0x2c   :  { %548 = vmatpush3.msra.mxu0 %v254_v8  ;;  %580 = vmatprep.subr.mxu1 %v613_v5 }
  0x2d   :  { %549 = vmatprep.subr.mxu0 %v613_v5  ;;  %581 = vmatpush3.msra.mxu1 %v349_v23 }
  0x2e   :  { %550 = vmatpush3.msra.mxu0 %v253_v9  ;;  %582 = vmatprep.subr.mxu1 %v613_v5 }
  0x2f   :  { %551 = vmatprep.subr.mxu0 %v613_v5  ;;  %583 = vmatpush3.msra.mxu1 %v348_v24 }
  0x30   :  { %552 = vmatpush3.msra.mxu0 %v252_v10  ;;  %584 = vmatprep.subr.mxu1 %v613_v5 }
  0x31   :  { %553 = vmatprep.subr.mxu0 %v613_v5  ;;  %585 = vmatpush3.msra.mxu1 %v347_v25 }
  0x32   :  { %554 = vmatpush3.msra.mxu0 %v251_v11  ;;  %586 = vmatprep.subr.mxu1 %v613_v5 }
  0x33   :  { %555 = vmatprep.subr.mxu0 %v613_v5  ;;  %587 = vmatpush3.msra.mxu1 %v346_v26 }
  0x34   :  { %556 = vmatpush3.msra.mxu0 %v250_v12  ;;  %588 = vmatprep.subr.mxu1 %v613_v5 }
  0x35   :  { %557 = vmatprep.subr.mxu0 %v613_v5  ;;  %589 = vmatpush3.msra.mxu1 %v345_v27 }
  0x36   :  { %558 = vmatpush3.msra.mxu0 %v249_v13  ;;  %590 = vmatprep.subr.mxu1 %v613_v5 }
  0x37   :  { %559 = vmatprep.subr.mxu0 %v613_v5  ;;  %591 = vmatpush3.msra.mxu1 %v344_v28 }
  0x38   :  { %560 = vmatpush3.msra.mxu0 %v248_v14  ;;  %592 = vmatprep.subr.mxu1 %v613_v5 }
  0x39   :  { %561 = vmatprep.subr.mxu0 %v613_v5  ;;  %593 = vmatpush3.msra.mxu1 %v343_v29 }
  0x3a   :  { %562 = vmatpush3.msra.mxu0 %v247_v15  ;;  %594 = vmatprep.subr.mxu1 %v613_v5 }
  0x3b   :  { %563 = vmatprep.subr.mxu0 %v613_v5  ;;  %595 = vmatpush3.msra.mxu1 %v342_v30 }
  0x3c   :  { %564 = vmatpush3.msra.mxu0 %v246_v16  ;;  %596 = vmatprep.subr.mxu1 %v613_v5 }
  0x3d   :  { %565 = vmatprep.subr.mxu0 %v613_v5  ;;  %597 = vmatpush3.msra.mxu1 %v341_v31 }
  0x3e   :  { %566 = vmatpush3.msra.mxu0 %v245_v17  ;;  %598 = vmatprep.subr.mxu1 %v613_v5 }
  0x3f   :  { %567 = vmatprep.subr.mxu0 %v613_v5  ;;  %599 = vmatpush3.msra.mxu1 %v340_v32 }
  0x40   :  { %568 = vmatpush3.msra.mxu0 %v244_v18  ;;  %600 = vmatprep.subr.mxu1 %v613_v5 }
  0x41   :  { %569 = vmatprep.subr.mxu0 %v613_v5  ;;  %601 = vmatpush3.msra.mxu1 %v339_v33 }
  0x42   :  { %570 = vmatpush3.msra.mxu0 %v243_v19  ;;  %602 = vmatprep.subr.mxu1 %v613_v5 }
  0x43   :  { %571 = vmatprep.subr.mxu0 %v613_v5  ;;  %603 = vmatpush3.msra.mxu1 %v338_v44 }
  0x44   :  { %572 = vmatpush3.msra.mxu0 %v242_v20  ;;  %604 = vmatprep.subr.mxu1 %v613_v5 }
  0x45   :  { %605 = vmatpush3.msra.mxu1 %v337_v45 }
  0x46   :  { %606 = vmatprep.subr.mxu1 %v613_v5 }
  0x47   :  { %607 = vmatpush3.msra.mxu1 %v336_v46 }
  0xe4   :  { %v469_v34 = vpop.f32.mrf.mxu0 }
  0xe5   :  { %v504_v35 = vpop.f32.mrf.mxu1 }
  0xe6   :  { %v470_v37 = vpop.f32.mrf.mxu0 }
  0xe7   :  { %v505_v38 = vpop.f32.mrf.mxu1  ;;  %v471_v39 = vadd.f32 %v470_v37, %v469_v34 }
  0xe8   :  { %v506_v41 = vadd.f32 %v505_v38, %v504_v35 }
  0xe9   :  { %v168_v40 = vadd.f32 %v471_v39, %v434_v36 }
  0xeb   :  { %v238_v42 = vadd.f32 %v506_v41, %v168_v40 }
  0xed   :  { %v241_v43 = vmax.f32 %v238_v42, 0.0 }
  0xef   :  { %574 = vmatmul.mubr.f32.vlgmr.msra.gmra.mxu0 %v241_v43 }
 0x1af   :  { %v331_v48 = vpop.f32.mrf.mxu0 }
 0x1b0   :  { %v332_v49 = vadd.f32 %v435_v47, %v331_v48 }
 0x1b1   :  { %v575_v50 = vpop.f32.mrf.mxu0 }
 0x1b2   :  { %v335_v51 = vmax.f32 %v332_v49, 0.0 }
 0x1b4   :  { %609 = vmatmul.mubr.f32.vlgmr.msra.gmra.mxu1 %v335_v51 }
 0x274   :  { %v425_v53 = vpop.f32.mrf.mxu1 }
 0x275   :  { %v426_v54 = vadd.f32 %v436_v52, %v425_v53 }
 0x276   :  { %v610_v55 = vpop.f32.mrf.mxu1 }
 0x277   :  { %429 = vst [vmem:[%s1008_s7] sm:$0xff] %v426_v54 }

</bundles_post_ra>
